<compile_context>
chip_gen: v6e
topology: v6e:2x2x1
jax: 0.10.0
libtpu: 0.0.40
codegen_flags: <defaults>
</compile_context>

<pallas_src>
import functools

import jax
import jax.numpy as jnp
from jax.experimental import pallas as pl
from jax.experimental.pallas import tpu as pltpu

GEM_EPS = 1e-6
BN_EPS = 1e-5
N_CLASSES = 5
OUT_PAD = 128          # lane-dense padding of the 5-class output


def _cassava_kernel(p_ref, x_hbm, w1_ref, b1_ref, w2_ref, out_ref,
                    xbuf, xsem, pooled_tmp, pooled_scr, acc_scr, *, c_chunk):
    j = pl.program_id(1)                     # n_hidden tile index (reduction axis)
    p = p_ref[0]                             # GeM exponent (scalar, SMEM)

    # ---- GeM pooling: once per core, streamed over channel chunks via manual DMA ----
    @pl.when(j == 0)
    def _():
        acc_scr[...] = jnp.zeros_like(acc_scr)

        n_chunks = x_hbm.shape[1] // c_chunk
        hw_inv = 1.0 / x_hbm.shape[-1]        # sum * (1/HW) instead of mean
        inv_p = 1.0 / p
        # p is a learnable parameter; use a tolerance (not exact float equality) so a
        # trained p of 3 +/- ulp still takes the pure-VPU cube fast path.
        fast = jnp.abs(p - 3.0) < 1e-6

        def start_fetch(s, slot):
            c0 = pl.multiple_of(s * c_chunk, c_chunk)
            pltpu.make_async_copy(x_hbm.at[:, pl.ds(c0, c_chunk), :],
                                  xbuf.at[slot], xsem.at[slot]).start()

        def wait_fetch(slot):
            pltpu.make_async_copy(x_hbm.at[:, pl.ds(0, c_chunk), :],
                                  xbuf.at[slot], xsem.at[slot]).wait()

        start_fetch(0, 0)

        def chunk_body(s, carry):
            slot = s & 1
            wait_fetch(slot)

            @pl.when(s + 1 < n_chunks)        # prefetch next chunk into the other slot
            def _():
                start_fetch(s + 1, 1 - slot)

            xc = jnp.maximum(xbuf[slot].astype(jnp.float32), GEM_EPS)   # (B, cc, HW)

            @pl.when(fast)                    # p == 3: pure-VPU cube, no per-elem EUP
            def _():
                ssum = jnp.sum(xc * xc * xc, axis=-1) * hw_inv          # (B, cc)
                pooled_tmp[s] = jnp.exp(jnp.log(ssum) * inv_p)

            @pl.when(jnp.logical_not(fast))   # general learnable exponent
            def _():
                ssum = jnp.sum(jnp.exp(jnp.log(xc) * p), axis=-1) * hw_inv
                pooled_tmp[s] = jnp.exp(jnp.log(ssum) * inv_p)

            return carry

        jax.lax.fori_loop(0, n_chunks, chunk_body, 0)

        # Reassemble (n_chunks, B, cc) -> (B, C) with static lane slices (tiny, once).
        for s in range(n_chunks):
            pooled_scr[:, s * c_chunk:(s + 1) * c_chunk] = pooled_tmp[s]

    # ---- head v0 (per n_hidden tile); Dropout(0.3) is identity at inference ----
    # BatchNorm1d (eval) and b1 are pre-folded into w1_ref / b1_ref by the wrapper.
    pooled = pooled_scr[...].astype(jnp.bfloat16)                       # (B, C) bf16
    h = jnp.dot(pooled, w1_ref[...],
                preferred_element_type=jnp.float32) + b1_ref[...]       # (B, tn) f32
    # ELU(alpha=1).  exp(min(h,0)) - 1: abs error vs expm1 <= ~1.2e-7, far below the
    # bf16 matmul noise, and avoids relying on an expm1 lowering rule.
    h = jnp.where(h > 0.0, h, jnp.exp(jnp.minimum(h, 0.0)) - 1.0)
    acc_scr[...] += jnp.dot(h.astype(jnp.bfloat16), w2_ref[...],
                            preferred_element_type=jnp.float32)         # (B, OUT_PAD)

    @pl.when(j == pl.num_programs(1) - 1)
    def _():
        out_ref[...] = acc_scr[...].astype(out_ref.dtype)


def _spec(block_shape, index_map, *, buffers=None):
    """BlockSpec, optionally requesting `buffers`-deep pipelining (best effort)."""
    if buffers is not None:
        try:
            return pl.BlockSpec(block_shape, index_map,
                                pipeline_mode=pl.Buffered(buffers))
        except Exception:       # jax build without pipeline_mode: default 2-deep
            pass
    return pl.BlockSpec(block_shape, index_map)


def cassava_forward(feat_nchw, params, *, tn=512, num_cores=1,
                    c_chunk_max=256, weight_buffers=3):
    """feat_nchw: (B, C, H, W) backbone feature map (bf16 or f32).

    num_cores=1 for v5e/v6e (single TensorCore); num_cores=2 on v7x to split the
    weight stream across both TensorCores (per-core partial sums summed here).
    """
    B, C, H, W = feat_nchw.shape
    HW = H * W
    # NCHW -> (B, C, H*W): trailing-dim merge only (no transpose / HBM round trip).
    # NOTE: if HW is not a multiple of 128 (e.g. 7x7 maps) an NHWC layout (C on the
    # lane axis, GeM reducing over sublanes) would avoid lane-padding waste in GeM.
    x = feat_nchw.reshape(B, C, HW)

    n_hidden = params["w1"].shape[1]
    tn = min(tn, n_hidden)
    assert n_hidden % (num_cores * tn) == 0, (n_hidden, tn, num_cores)
    tiles_per_core = n_hidden // (num_cores * tn)

    # GeM channel chunk: largest 128-multiple divisor of C that is <= c_chunk_max
    # (falls back to a single chunk for small / odd C).
    c_chunk = C
    if C % 128 == 0:
        for cand in range(min(c_chunk_max, C), 0, -128):
            if C % cand == 0:
                c_chunk = cand
                break
    n_chunks = C // c_chunk

    # Fold eval-mode BatchNorm1d (+ b1) into the first Linear:
    #   scale = gamma / sqrt(var+eps);  w1' = w1 * scale;  b1' = (b1 - mean)*scale + beta
    scale = params["gamma"] * jax.lax.rsqrt(params["running_var"] + BN_EPS)
    w1f = (params["w1"].astype(jnp.float32) * scale).astype(jnp.bfloat16)   # (C, nh)
    b1f = ((params["b1"] - params["running_mean"]) * scale
           + params["beta"]).astype(jnp.float32)                            # (1, nh)
    # TODO(synk): for a further ~2x on the w1 streaming bound, store w1f int8
    # (v5e/v6e) / fp8 (v7x) with a per-column scale folded into b1f.

    kernel = functools.partial(_cassava_kernel, c_chunk=c_chunk)

    def run(buffers):
        grid_spec = pltpu.PrefetchScalarGridSpec(
            num_scalar_prefetch=1,                  # GeM exponent p -> SMEM
            grid=(num_cores, tiles_per_core),
            in_specs=[
                pl.BlockSpec(memory_space=pl.ANY),  # x stays in HBM; manual chunk DMA
                _spec((C, tn), lambda c, j, p: (0, c * tiles_per_core + j),
                      buffers=buffers),             # folded w1 tile (bf16)
                pl.BlockSpec((1, tn), lambda c, j, p: (0, c * tiles_per_core + j)),
                _spec((tn, OUT_PAD), lambda c, j, p: (c * tiles_per_core + j, 0),
                      buffers=buffers),             # w2 tile (bf16)
            ],
            out_specs=pl.BlockSpec((None, B, OUT_PAD), lambda c, j, p: (c, 0, 0)),
            scratch_shapes=[
                pltpu.VMEM((2, B, c_chunk, HW), x.dtype),         # x chunk double buf
                pltpu.SemaphoreType.DMA((2,)),
                pltpu.VMEM((n_chunks, B, c_chunk), jnp.float32),  # per-chunk GeM out
                pltpu.VMEM((B, C), jnp.float32),                  # pooled features
                pltpu.VMEM((B, OUT_PAD), jnp.float32),            # lane-dense acc
            ],
        )
        return pl.pallas_call(
            kernel,
            out_shape=jax.ShapeDtypeStruct((num_cores, B, OUT_PAD), jnp.float32),
            grid_spec=grid_spec,
            compiler_params=pltpu.CompilerParams(
                dimension_semantics=("parallel", "arbitrary"),
                vmem_limit_bytes=40 * 1024 * 1024,
            ),
        )(params["p"], x, w1f, b1f, params["w2"])

    try:
        partial_sums = run(weight_buffers)
    except Exception:
        # Defensive: if this jax build rejects Buffered(n) pipelining at lowering,
        # rerun with the default double-buffered pipeline (kernel is identical).
        partial_sums = run(None)

    # Sum per-core partial results, drop lane padding, add the final bias.
    return jnp.sum(partial_sums, axis=0)[:, :N_CLASSES] + params["b2"]


def init_params(key, n_out, n_hidden):
    ks = jax.random.split(key, 8)
    w2 = jnp.zeros((n_hidden, OUT_PAD), jnp.float32)
    w2 = w2.at[:, :N_CLASSES].set(
        jax.random.normal(ks[1], (n_hidden, N_CLASSES), jnp.float32) * 0.02)
    return {
        # GeM exponent p (nn.Parameter, init 3.0)
        "p": jnp.full((1,), 3.0, jnp.float32),
        # Linear(n_out, n_hidden) -- big weight stored bf16 in HBM
        "w1": (jax.random.normal(ks[0], (n_out, n_hidden), jnp.float32)
               * 0.02).astype(jnp.bfloat16),
        "b1": jax.random.normal(ks[3], (1, n_hidden), jnp.float32) * 0.01,
        # BatchNorm1d(n_hidden) -- eval-mode running statistics
        "gamma": 1.0 + 0.1 * jax.random.normal(ks[4], (1, n_hidden), jnp.float32),
        "beta": jax.random.normal(ks[5], (1, n_hidden), jnp.float32) * 0.01,
        "running_mean": jax.random.normal(ks[6], (1, n_hidden), jnp.float32) * 0.1,
        "running_var": 1.0 + 0.1 * jax.random.uniform(ks[7], (1, n_hidden), jnp.float32),
        # Linear(n_hidden, 5), N padded to 128 lanes (cols >= 5 are zero)
        "w2": w2.astype(jnp.bfloat16),
        "b2": jax.random.normal(ks[2], (1, N_CLASSES), jnp.float32) * 0.01,
    }


def reference_forward(feat_nchw, params):
    """Pure-JAX f32 reference of the module's forward pass (eval mode)."""
    x = feat_nchw.astype(jnp.float32)
    p = params["p"][0]
    xp = jnp.power(jnp.maximum(x, GEM_EPS), p)
    pooled = jnp.power(jnp.mean(xp, axis=(2, 3)), 1.0 / p)               # (B, C)
    h = jnp.dot(pooled, params["w1"].astype(jnp.float32),
                precision=jax.lax.Precision.HIGHEST) + params["b1"]
    inv_std = jax.lax.rsqrt(params["running_var"] + BN_EPS)
    h = (h - params["running_mean"]) * inv_std * params["gamma"] + params["beta"]
    h = jnp.where(h > 0, h, jnp.expm1(h))                                # ELU
    out = jnp.dot(h, params["w2"].astype(jnp.float32)[:, :N_CLASSES],
                  precision=jax.lax.Precision.HIGHEST) + params["b2"]
    return out


if __name__ == "__main__":
    # Small TPU-friendly stand-in shapes (real model: C~2560, 16x16 map, n_hidden=4096).
    B, C, H, W = 4, 256, 16, 16
    N_HIDDEN = 512

    key = jax.random.PRNGKey(0)
    k_feat, k_param = jax.random.split(key)
    feat = jax.random.normal(k_feat, (B, C, H, W), jnp.float32).astype(jnp.bfloat16)
    params = init_params(k_param, C, N_HIDDEN)

    ref = jax.block_until_ready(reference_forward(feat, params))

    # Single-core schedule (v5e/v6e), 2 GeM channel chunks, 4 streamed weight tiles.
    out1 = jax.block_until_ready(
        cassava_forward(feat, params, tn=128, num_cores=1, c_chunk_max=128))
    # Two-core partial-sum schedule (v7x layout; runs serially on 1-TC chips).
    out2 = jax.block_until_ready(
        cassava_forward(feat, params, tn=128, num_cores=2, c_chunk_max=128))
    # Learnable GeM exponent p != 3 exercises the general exp/log path.
    params_p = dict(params, p=jnp.full((1,), 2.5, jnp.float32))
    out3 = jax.block_until_ready(
        cassava_forward(feat, params_p, tn=128, num_cores=1, c_chunk_max=128))
    ref3 = jax.block_until_ready(reference_forward(feat, params_p))

    for o, r in ((out1, ref), (out2, ref), (out3, ref3)):
        assert o.shape == (B, N_CLASSES), o.shape
        err = float(jnp.max(jnp.abs(o - r)))
        # bf16-MXU tolerance: weights/activations are bf16, accumulation is f32.
        assert jnp.allclose(o, r, rtol=2e-2, atol=5e-3), f"mismatch vs reference: {err}"

    print("KERNEL_OK")
</pallas_src>

<mosaic_0001>
module attributes {stable_mosaic.version = 11 : i64} {
  func.func @_cassava_kernel(%arg0: i32, %arg1: i32, %arg2: memref<1xf32, #tpu.memory_space<smem>>, %arg3: memref<4x256x256xbf16, #tpu.memory_space<any>>, %arg4: memref<256x128xbf16, #tpu.memory_space<vmem>>, %arg5: memref<1x128xf32, #tpu.memory_space<vmem>>, %arg6: memref<128x128xbf16, #tpu.memory_space<vmem>>, %arg7: memref<1x4x128xf32, #tpu.memory_space<vmem>>, %arg8: memref<2x4x128x256xbf16, #tpu.memory_space<vmem>>, %arg9: memref<2x!tpu.dma_semaphore, #tpu.memory_space<semaphore_mem>>, %arg10: memref<2x4x128xf32, #tpu.memory_space<vmem>>, %arg11: memref<4x256xf32, #tpu.memory_space<vmem>>, %arg12: memref<4x128xf32, #tpu.memory_space<vmem>>) attributes {dimension_semantics = [#tpu.dimension_semantics<parallel>, #tpu.dimension_semantics<arbitrary>], iteration_bounds = array<i64: 1, 4>, scalar_prefetch = 1 : i64, scratch_operands = 5 : i64, tpu.core_type = #tpu.core_type<tc>, window_params = [{}, {transform_indices = @transform_1, window_bounds = array<i64: 256, 128>}, {transform_indices = @transform_2, window_bounds = array<i64: 1, 128>}, {transform_indices = @transform_3, window_bounds = array<i64: 128, 128>}, {transform_indices = @transform_4, window_bounds = array<i64: 1, 4, 128>}]} {
    %c0 = arith.constant 0 : index
    %0 = memref.load %arg2[%c0] : memref<1xf32, #tpu.memory_space<smem>>
    %c0_i32 = arith.constant 0 : i32
    %1 = arith.cmpi eq, %arg1, %c0_i32 : i32
    %2 = arith.extui %1 : i1 to i32
    %c0_i32_0 = arith.constant 0 : i32
    %3 = arith.cmpi ne, %2, %c0_i32_0 : i32
    scf.if %3 {
      %cst_18 = arith.constant 0.000000e+00 : f32
      %28 = vector.broadcast %cst_18 : f32 to vector<4x128xf32>
      %c0_19 = arith.constant 0 : index
      %c0_20 = arith.constant 0 : index
      %29 = vector.load %arg12[%c0_19, %c0_20] : memref<4x128xf32, #tpu.memory_space<vmem>>, vector<4x128xf32>
      tpu.vector_store %arg12[%c0_19, %c0_20], %28 {strides = array<i32>} : memref<4x128xf32, #tpu.memory_space<vmem>>, vector<4x128xf32>,
      %cst_21 = arith.constant 1.000000e+00 : f32
      %30 = arith.divf %cst_21, %0 : f32
      %cst_22 = arith.constant 3.000000e+00 : f32
      %31 = arith.subf %0, %cst_22 : f32
      %32 = math.absf %31 : f32
      %cst_23 = arith.constant 9.99999997E-7 : f32
      %33 = arith.cmpf olt, %32, %cst_23 : f32
      %c0_i32_24 = arith.constant 0 : i32
      %34 = tpu.assume_multiple %c0_i32_24, 128 : i32
      %c0_i32_25 = arith.constant 0 : i32
      %c0_i32_26 = arith.constant 0 : i32
      %c0_i32_27 = arith.constant 0 : i32
      %c0_i32_28 = arith.constant 0 : i32
      %35 = tpu.memref_slice %arg3[%c0_i32_27, %34, %c0_i32_28] : memref<4x256x256xbf16, #tpu.memory_space<any>> -> memref<4x128x256xbf16, #tpu.memory_space<any>>
      %c0_i32_29 = arith.constant 0 : i32
      %c0_i32_30 = arith.constant 0 : i32
      %c0_i32_31 = arith.constant 0 : i32
      %36 = tpu.memref_slice %arg8[%c0_i32_25, %c0_i32_29, %c0_i32_30, %c0_i32_31] : memref<2x4x128x256xbf16, #tpu.memory_space<vmem>> -> memref<1x4x128x256xbf16, #tpu.memory_space<vmem>>
      %37 = tpu.memref_squeeze %36 : memref<1x4x128x256xbf16, #tpu.memory_space<vmem>> -> memref<4x128x256xbf16, #tpu.memory_space<vmem>>
      %38 = tpu.memref_slice %arg9[%c0_i32_26] : memref<2x!tpu.dma_semaphore, #tpu.memory_space<semaphore_mem>> -> memref<1x!tpu.dma_semaphore, #tpu.memory_space<semaphore_mem>>
      %39 = tpu.memref_squeeze %38 : memref<1x!tpu.dma_semaphore, #tpu.memory_space<semaphore_mem>> -> memref<!tpu.dma_semaphore, #tpu.memory_space<semaphore_mem>>
      tpu.enqueue_dma source(%35 : memref<4x128x256xbf16, #tpu.memory_space<any>>) target(%37 : memref<4x128x256xbf16, #tpu.memory_space<vmem>>) target_semaphore(%39 : memref<!tpu.dma_semaphore, #tpu.memory_space<semaphore_mem>>)
      %c0_i32_32 = arith.constant 0 : i32
      %c2_i32 = arith.constant 2 : i32
      %40 = arith.addi %c0_i32_32, %c2_i32 : i32
      %c1_i32 = arith.constant 1 : i32
      scf.for %arg13 = %c0_i32_32 to %40 step %c1_i32  : i32 {
        %c1_i32_42 = arith.constant 1 : i32
        %47 = arith.andi %arg13, %c1_i32_42 : i32
        %c0_i32_43 = arith.constant 0 : i32
        %c0_i32_44 = arith.constant 0 : i32
        %c0_i32_45 = arith.constant 0 : i32
        %48 = tpu.memref_slice %arg3[%c0_i32_43, %c0_i32_44, %c0_i32_45] : memref<4x256x256xbf16, #tpu.memory_space<any>> -> memref<4x128x256xbf16, #tpu.memory_space<any>>
        %c0_i32_46 = arith.constant 0 : i32
        %c0_i32_47 = arith.constant 0 : i32
        %c0_i32_48 = arith.constant 0 : i32
        %49 = tpu.memref_slice %arg8[%47, %c0_i32_46, %c0_i32_47, %c0_i32_48] : memref<2x4x128x256xbf16, #tpu.memory_space<vmem>> -> memref<1x4x128x256xbf16, #tpu.memory_space<vmem>>
        %50 = tpu.memref_squeeze %49 : memref<1x4x128x256xbf16, #tpu.memory_space<vmem>> -> memref<4x128x256xbf16, #tpu.memory_space<vmem>>
        %51 = tpu.memref_slice %arg9[%47] : memref<2x!tpu.dma_semaphore, #tpu.memory_space<semaphore_mem>> -> memref<1x!tpu.dma_semaphore, #tpu.memory_space<semaphore_mem>>
        %52 = tpu.memref_squeeze %51 : memref<1x!tpu.dma_semaphore, #tpu.memory_space<semaphore_mem>> -> memref<!tpu.dma_semaphore, #tpu.memory_space<semaphore_mem>>
        tpu.wait_dma2 semaphore(%52 : memref<!tpu.dma_semaphore, #tpu.memory_space<semaphore_mem>>) src(%48 : memref<4x128x256xbf16, #tpu.memory_space<any>>) dst(%50 : memref<4x128x256xbf16, #tpu.memory_space<vmem>>)
        %c1_i32_49 = arith.constant 1 : i32
        %53 = arith.addi %arg13, %c1_i32_49 : i32
        %c2_i32_50 = arith.constant 2 : i32
        %54 = arith.cmpi slt, %53, %c2_i32_50 : i32
        %55 = arith.extui %54 : i1 to i32
        %c0_i32_51 = arith.constant 0 : i32
        %56 = arith.cmpi ne, %55, %c0_i32_51 : i32
        scf.if %56 {
          %c1_i32_58 = arith.constant 1 : i32
          %68 = arith.addi %arg13, %c1_i32_58 : i32
          %c1_i32_59 = arith.constant 1 : i32
          %69 = arith.subi %c1_i32_59, %47 : i32
          %c128_i32 = arith.constant 128 : i32
          %70 = arith.muli %68, %c128_i32 : i32
          %71 = tpu.assume_multiple %70, 128 : i32
          %c0_i32_60 = arith.constant 0 : i32
          %c0_i32_61 = arith.constant 0 : i32
          %72 = tpu.memref_slice %arg3[%c0_i32_60, %71, %c0_i32_61] : memref<4x256x256xbf16, #tpu.memory_space<any>> -> memref<4x128x256xbf16, #tpu.memory_space<any>>
          %c0_i32_62 = arith.constant 0 : i32
          %c0_i32_63 = arith.constant 0 : i32
          %c0_i32_64 = arith.constant 0 : i32
          %73 = tpu.memref_slice %arg8[%69, %c0_i32_62, %c0_i32_63, %c0_i32_64] : memref<2x4x128x256xbf16, #tpu.memory_space<vmem>> -> memref<1x4x128x256xbf16, #tpu.memory_space<vmem>>
          %74 = tpu.memref_squeeze %73 : memref<1x4x128x256xbf16, #tpu.memory_space<vmem>> -> memref<4x128x256xbf16, #tpu.memory_space<vmem>>
          %75 = tpu.memref_slice %arg9[%69] : memref<2x!tpu.dma_semaphore, #tpu.memory_space<semaphore_mem>> -> memref<1x!tpu.dma_semaphore, #tpu.memory_space<semaphore_mem>>
          %76 = tpu.memref_squeeze %75 : memref<1x!tpu.dma_semaphore, #tpu.memory_space<semaphore_mem>> -> memref<!tpu.dma_semaphore, #tpu.memory_space<semaphore_mem>>
          tpu.enqueue_dma source(%72 : memref<4x128x256xbf16, #tpu.memory_space<any>>) target(%74 : memref<4x128x256xbf16, #tpu.memory_space<vmem>>) target_semaphore(%76 : memref<!tpu.dma_semaphore, #tpu.memory_space<semaphore_mem>>)
        } else {
        }
        %57 = arith.index_cast %47 : i32 to index
        %c0_52 = arith.constant 0 : index
        %c0_53 = arith.constant 0 : index
        %c0_54 = arith.constant 0 : index
        %58 = vector.load %arg8[%57, %c0_52, %c0_53, %c0_54] : memref<2x4x128x256xbf16, #tpu.memory_space<vmem>>, vector<1x4x128x256xbf16>
        %59 = vector.shape_cast %58 : vector<1x4x128x256xbf16> to vector<4x128x256xbf16>
        %60 = arith.extf %59 : vector<4x128x256xbf16> to vector<4x128x256xf32>
        %cst_55 = arith.constant 9.99999997E-7 : f32
        %61 = vector.broadcast %cst_55 : f32 to vector<4x128x256xf32>
        %62 = arith.maximumf %60, %61 : vector<4x128x256xf32>
        %63 = arith.extui %33 : i1 to i32
        %c0_i32_56 = arith.constant 0 : i32
        %64 = arith.cmpi ne, %63, %c0_i32_56 : i32
        scf.if %64 {
          %68 = arith.mulf %62, %62 : vector<4x128x256xf32>
          %69 = arith.mulf %68, %62 : vector<4x128x256xf32>
          %cst_58 = arith.constant dense<0.000000e+00> : vector<4x128xf32>
          %70 = vector.multi_reduction <add>, %69, %cst_58 [2] : vector<4x128x256xf32> to vector<4x128xf32>
          %cst_59 = arith.constant 3.906250e-03 : f32
          %71 = vector.broadcast %cst_59 : f32 to vector<4x128xf32>
          %72 = arith.mulf %70, %71 : vector<4x128xf32>
          %73 = math.log %72 : vector<4x128xf32>
          %74 = vector.broadcast %30 : f32 to vector<4x128xf32>
          %75 = arith.mulf %73, %74 : vector<4x128xf32>
          %76 = math.exp %75 : vector<4x128xf32>
          %77 = arith.index_cast %arg13 : i32 to index
          %c0_60 = arith.constant 0 : index
          %c0_61 = arith.constant 0 : index
          %78 = vector.load %arg10[%77, %c0_60, %c0_61] : memref<2x4x128xf32, #tpu.memory_space<vmem>>, vector<1x4x128xf32>
          %79 = vector.shape_cast %78 : vector<1x4x128xf32> to vector<4x128xf32>
          %80 = vector.shape_cast %76 : vector<4x128xf32> to vector<1x4x128xf32>
          tpu.vector_store %arg10[%77, %c0_60, %c0_61], %80 {strides = array<i32>} : memref<2x4x128xf32, #tpu.memory_space<vmem>>, vector<1x4x128xf32>,
        } else {
        }
        %true = arith.constant true
        %65 = arith.xori %33, %true : i1
        %66 = arith.extui %65 : i1 to i32
        %c0_i32_57 = arith.constant 0 : i32
        %67 = arith.cmpi ne, %66, %c0_i32_57 : i32
        scf.if %67 {
          %68 = math.log %62 : vector<4x128x256xf32>
          %69 = vector.broadcast %0 : f32 to vector<4x128x256xf32>
          %70 = arith.mulf %68, %69 : vector<4x128x256xf32>
          %71 = math.exp %70 : vector<4x128x256xf32>
          %cst_58 = arith.constant dense<0.000000e+00> : vector<4x128xf32>
          %72 = vector.multi_reduction <add>, %71, %cst_58 [2] : vector<4x128x256xf32> to vector<4x128xf32>
          %cst_59 = arith.constant 3.906250e-03 : f32
          %73 = vector.broadcast %cst_59 : f32 to vector<4x128xf32>
          %74 = arith.mulf %72, %73 : vector<4x128xf32>
          %75 = math.log %74 : vector<4x128xf32>
          %76 = vector.broadcast %30 : f32 to vector<4x128xf32>
          %77 = arith.mulf %75, %76 : vector<4x128xf32>
          %78 = math.exp %77 : vector<4x128xf32>
          %79 = arith.index_cast %arg13 : i32 to index
          %c0_60 = arith.constant 0 : index
          %c0_61 = arith.constant 0 : index
          %80 = vector.load %arg10[%79, %c0_60, %c0_61] : memref<2x4x128xf32, #tpu.memory_space<vmem>>, vector<1x4x128xf32>
          %81 = vector.shape_cast %80 : vector<1x4x128xf32> to vector<4x128xf32>
          %82 = vector.shape_cast %78 : vector<4x128xf32> to vector<1x4x128xf32>
          tpu.vector_store %arg10[%79, %c0_60, %c0_61], %82 {strides = array<i32>} : memref<2x4x128xf32, #tpu.memory_space<vmem>>, vector<1x4x128xf32>,
        } else {
        }
      }
      %c2_i32_33 = arith.constant 2 : i32
      %c0_34 = arith.constant 0 : index
      %c0_35 = arith.constant 0 : index
      %c0_36 = arith.constant 0 : index
      %41 = vector.load %arg10[%c0_34, %c0_35, %c0_36] : memref<2x4x128xf32, #tpu.memory_space<vmem>>, vector<1x4x128xf32>
      %42 = vector.shape_cast %41 : vector<1x4x128xf32> to vector<4x128xf32>
      %c0_37 = arith.constant 0 : index
      %c0_38 = arith.constant 0 : index
      %43 = vector.load %arg11[%c0_37, %c0_38] : memref<4x256xf32, #tpu.memory_space<vmem>>, vector<4x128xf32>
      tpu.vector_store %arg11[%c0_37, %c0_38], %42 {strides = array<i32>} : memref<4x256xf32, #tpu.memory_space<vmem>>, vector<4x128xf32>,
      %c1 = arith.constant 1 : index
      %c0_39 = arith.constant 0 : index
      %c0_40 = arith.constant 0 : index
      %44 = vector.load %arg10[%c1, %c0_39, %c0_40] : memref<2x4x128xf32, #tpu.memory_space<vmem>>, vector<1x4x128xf32>
      %45 = vector.shape_cast %44 : vector<1x4x128xf32> to vector<4x128xf32>
      %c0_41 = arith.constant 0 : index
      %c128 = arith.constant 128 : index
      %46 = vector.load %arg11[%c0_41, %c128] : memref<4x256xf32, #tpu.memory_space<vmem>>, vector<4x128xf32>
      tpu.vector_store %arg11[%c0_41, %c128], %45 {strides = array<i32>} : memref<4x256xf32, #tpu.memory_space<vmem>>, vector<4x128xf32>,
    } else {
    }
    %c0_1 = arith.constant 0 : index
    %c0_2 = arith.constant 0 : index
    %4 = vector.load %arg11[%c0_1, %c0_2] : memref<4x256xf32, #tpu.memory_space<vmem>>, vector<4x256xf32>
    %5 = arith.truncf %4 : vector<4x256xf32> to vector<4x256xbf16>
    %c0_3 = arith.constant 0 : index
    %c0_4 = arith.constant 0 : index
    %6 = vector.load %arg4[%c0_3, %c0_4] : memref<256x128xbf16, #tpu.memory_space<vmem>>, vector<256x128xbf16>
    %cst = arith.constant dense<0.000000e+00> : vector<4x128xf32>
    %7 = tpu.matmul %5, %6, %cst {dimension_numbers = #tpu.dot_dimension_numbers<[1], [0], [0], [1], [0, 0, 1, 1], [], []>} : vector<4x256xbf16>, vector<256x128xbf16>, vector<4x128xf32> -> vector<4x128xf32>
    %c0_5 = arith.constant 0 : index
    %c0_6 = arith.constant 0 : index
    %8 = vector.load %arg5[%c0_5, %c0_6] : memref<1x128xf32, #tpu.memory_space<vmem>>, vector<1x128xf32>
    %9 = vector.broadcast %8 : vector<1x128xf32> to vector<4x128xf32>
    %10 = arith.addf %7, %9 : vector<4x128xf32>
    %cst_7 = arith.constant 0.000000e+00 : f32
    %11 = vector.broadcast %cst_7 : f32 to vector<4x128xf32>
    %12 = arith.cmpf ogt, %10, %11 : vector<4x128xf32>
    %cst_8 = arith.constant 0.000000e+00 : f32
    %13 = vector.broadcast %cst_8 : f32 to vector<4x128xf32>
    %14 = arith.minimumf %10, %13 : vector<4x128xf32>
    %15 = math.exp %14 : vector<4x128xf32>
    %cst_9 = arith.constant 1.000000e+00 : f32
    %16 = vector.broadcast %cst_9 : f32 to vector<4x128xf32>
    %17 = arith.subf %15, %16 : vector<4x128xf32>
    %18 = arith.select %12, %10, %17 : vector<4x128xi1>, vector<4x128xf32>
    %c0_10 = arith.constant 0 : index
    %c0_11 = arith.constant 0 : index
    %19 = vector.load %arg12[%c0_10, %c0_11] : memref<4x128xf32, #tpu.memory_space<vmem>>, vector<4x128xf32>
    %20 = arith.truncf %18 : vector<4x128xf32> to vector<4x128xbf16>
    %c0_12 = arith.constant 0 : index
    %c0_13 = arith.constant 0 : index
    %21 = vector.load %arg6[%c0_12, %c0_13] : memref<128x128xbf16, #tpu.memory_space<vmem>>, vector<128x128xbf16>
    %cst_14 = arith.constant dense<0.000000e+00> : vector<4x128xf32>
    %22 = tpu.matmul %20, %21, %cst_14 {dimension_numbers = #tpu.dot_dimension_numbers<[1], [0], [0], [1], [0, 0, 1, 1], [], []>} : vector<4x128xbf16>, vector<128x128xbf16>, vector<4x128xf32> -> vector<4x128xf32>
    %23 = arith.addf %19, %22 : vector<4x128xf32>
    %c0_15 = arith.constant 0 : index
    %c0_16 = arith.constant 0 : index
    %24 = vector.load %arg12[%c0_15, %c0_16] : memref<4x128xf32, #tpu.memory_space<vmem>>, vector<4x128xf32>
    tpu.vector_store %arg12[%c0_15, %c0_16], %23 {strides = array<i32>} : memref<4x128xf32, #tpu.memory_space<vmem>>, vector<4x128xf32>,
    %c3_i32 = arith.constant 3 : i32
    %25 = arith.cmpi eq, %arg1, %c3_i32 : i32
    %26 = arith.extui %25 : i1 to i32
    %c0_i32_17 = arith.constant 0 : i32
    %27 = arith.cmpi ne, %26, %c0_i32_17 : i32
    scf.if %27 {
      %c0_18 = arith.constant 0 : index
      %c0_19 = arith.constant 0 : index
      %28 = vector.load %arg12[%c0_18, %c0_19] : memref<4x128xf32, #tpu.memory_space<vmem>>, vector<4x128xf32>
      %c0_20 = arith.constant 0 : index
      %c0_21 = arith.constant 0 : index
      %c0_22 = arith.constant 0 : index
      %29 = vector.load %arg7[%c0_20, %c0_21, %c0_22] : memref<1x4x128xf32, #tpu.memory_space<vmem>>, vector<1x4x128xf32>
      %30 = vector.shape_cast %29 : vector<1x4x128xf32> to vector<4x128xf32>
      %31 = vector.shape_cast %28 : vector<4x128xf32> to vector<1x4x128xf32>
      tpu.vector_store %arg7[%c0_20, %c0_21, %c0_22], %31 {strides = array<i32>} : memref<1x4x128xf32, #tpu.memory_space<vmem>>, vector<1x4x128xf32>,
    } else {
    }
    return
  }
  func.func @transform_1(%arg0: i32, %arg1: i32, %arg2: memref<1xf32, #tpu.memory_space<smem>>) -> (i32, i32) {
    %c4_i32 = arith.constant 4 : i32
    %0 = arith.muli %arg0, %c4_i32 : i32
    %1 = arith.addi %0, %arg1 : i32
    %c0_i32 = arith.constant 0 : i32
    %c0_i32_0 = arith.constant 0 : i32
    return %c0_i32, %1 : i32, i32
  }
  func.func @transform_2(%arg0: i32, %arg1: i32, %arg2: memref<1xf32, #tpu.memory_space<smem>>) -> (i32, i32) {
    %c4_i32 = arith.constant 4 : i32
    %0 = arith.muli %arg0, %c4_i32 : i32
    %1 = arith.addi %0, %arg1 : i32
    %c0_i32 = arith.constant 0 : i32
    %c0_i32_0 = arith.constant 0 : i32
    return %c0_i32, %1 : i32, i32
  }
  func.func @transform_3(%arg0: i32, %arg1: i32, %arg2: memref<1xf32, #tpu.memory_space<smem>>) -> (i32, i32) {
    %c4_i32 = arith.constant 4 : i32
    %0 = arith.muli %arg0, %c4_i32 : i32
    %1 = arith.addi %0, %arg1 : i32
    %c0_i32 = arith.constant 0 : i32
    %c0_i32_0 = arith.constant 0 : i32
    return %1, %c0_i32 : i32, i32
  }
  func.func @transform_4(%arg0: i32, %arg1: i32, %arg2: memref<1xf32, #tpu.memory_space<smem>>) -> (i32, i32, i32) {
    %c0_i32 = arith.constant 0 : i32
    %c0_i32_0 = arith.constant 0 : i32
    %c0_i32_1 = arith.constant 0 : i32
    return %arg0, %c0_i32, %c0_i32_0 : i32, i32, i32
  }
}

</mosaic_0001>

<bundles_post_ra>
// kernel: tpu_custom_call.1
= control target key start
LH: loop header
LB: loop body
LE: loop exit
PB: predicated region body
PF: predicated region fallthrough
CT: control target
= control target key end

     0   :  { %s7985_s0 = inlined_call_operand.<no memory space> [shape: f32[1], index: 0, kind: input, shape index: {}]   ;;  %s7986_s1 = inlined_call_operand.hbm [shape: bf16[4,256,256], index: 1, kind: input, shape index: {}]   ;;  %s7987_s2 = inlined_call_operand.hbm [shape: bf16[256,512], index: 2, kind: input, shape index: {}]   ;;  %s7988_s3 = inlined_call_operand.vmem [shape: f32[1,512], index: 3, kind: input, shape index: {}]   ;;  %s7989_s4 = inlined_call_operand.hbm [shape: bf16[512,128], index: 4, kind: input, shape index: {}]   ;;  %s7990_s5 = inlined_call_operand.hbm [shape: f32[1,4,128], index: 5, kind: output, shape index: {}]  }
   0x1   :  { %8116 = sst [smem:[#allocation143_spill]] %s7987_s2 }
   0x2   :  { %8117 = sst [smem:[#allocation144_spill]] %s7989_s4 }
   0x3   :  { %10 = sst [smem:[#allocation8]] %s7985_s0 }
   0x4   :  { %11 = vsyncpa [#allocation10], 0 }
   0x5   :  { %13 = vsyncpa [#allocation10 + $0x1], 0 }
   0x6   :  { %14 = vsyncpa [#allocation13], 0 }
   0x7   :  { %16 = vsyncpa [#allocation13 + $0x1], 0 }
   0x8   :  { %17 = vsyncpa [#allocation11], 0  ;;  %s5506_s20 = smov 0   ;;  %s5508_s21 = smov 0  }
   0x9   :  { %s5510_s22 = smov 0   ;;  %s5512_s23 = smov 0  }
   0xa   :  { %s5514_s24 = smov 0   ;;  %s5516_s25 = smov 0  }
   0xb LB: > { %s7991_s0 = sadd.s32 4294967295, %s5451_s25   ;;  %s32_s26 = sadd.s32 1, %s5447_s24  ;;  %s5451_s25 = sphi %s5516_s25, %s23_s25   ;;  %s5447_s24 = sphi %s5514_s24, %s8566_s24   ;;  %s5443_s23 = sphi %s5512_s23, %s8565_s23   ;;  %s5439_s22 = sphi %s5510_s22, %s8564_s22   ;;  %s5435_s21 = sphi %s5508_s21, %s8563_s21   ;;  %s5431_s20 = sphi %s5506_s20, %s8562_s20  }
   0xc   : > { %p33_p0 = scmp.ge.s32.totalorder %s32_s26, 4  ;;  %s46_s27 = sadd.s32 1, %s5439_s22 }
   0xd   : > { %p53_p1 = scmp.ne.s32.totalorder %s5439_s22, %s5435_s21  ;;  %p54_p2 = scmp.eq.s32.totalorder %s5451_s25, 0 }
   0xe   : > { %s8568_s26 = smov (%p33_p0, %s32_s26), 0  ;;  %p59_p4 = scmp.ne.s32.totalorder %s5435_s21, %s5431_s20 }
   0xf   : > { %8118 = sst [smem:[#allocation21_spill]] %s8568_s26  ;;  %p5542_p3 = por %p54_p2, %p53_p1 }
  0x10   : > { %s43_s29 = ssub.s32 %s5447_s24, %s8568_s26  ;;  %p60_p5 = scmp.eq.s32.totalorder %s7991_s0, 0 }
  0x11   : > { %p44_p6 = scmp.eq.s32.totalorder %s43_s29, 0  ;;  %p4134_p8 = scmp.lt.s32.totalorder %s5451_s25, 4 }
  0x12   : > { %p5551_p7 = por %p60_p5, %p59_p4  ;;  %s5560_s7 = sand.u32 1, %s5439_s22  }
  0x13   : > { %s5557_s6 = scalar_select %p44_p6, %s5439_s22, %s46_s27  }
  0x14   : > { %s4006_s8 = sshll.u32 %s5447_s24, 6  ;;  %s4005_s9 = sshll.u32 %s5560_s7, 7 }
  0x15   : > { %s8121_s2 = sld [smem:[#allocation143_spill]]  ;;  %s173_s13 = scalar_lea.vmem [#allocation9], %s4005_s9 }
  0x16   : > { %s181_s14 = sshll.u32 %s173_s13, 4  ;;  %p5569_p9 = pnand %p4134_p8, %p5542_p3  ;;  %s182_s14 = int_to_ptr.vmem [resolvable:$true] %s181_s14 }
  0x17   : > { %p4010_p10 = scmp.ge.s32.totalorder %s5451_s25, 1  ;;  %s170_s16 = scalar_lea.sflag [#allocation10], %s5560_s7 }
  0x18   : > { %p5263_p11 = pneg %p5569_p9  ;;  %s5274_s17 = scalar_lea.vmem %s182_s14, 2048 }
  0x19   : > { %p5275_p12 = scmp.ne.s32.totalorder %s182_s14, %s5274_s17  ;;  %s5457_s18 = smov [#allocation9]  }
  0x1a   : > { %s5279_s19 = sshll.u32 %s5457_s18, 4  ;;  %s5280_s19 = int_to_ptr.vmem [resolvable:$false] %s5279_s19 }
  0x1b   : > { %s180_s12 = scalar_lea.hbm %s8121_s2, %s4006_s8  ;;  %p5277_p13 = pnand %p5275_p12, %p5263_p11 }
  0x1c   : > { %s5281_s20 = scalar_lea.vmem %s5280_s19, 4096  ;;  %p5282_p1 = scmp.lt.s32.totalorder %s182_s14, %s5280_s19 }
  0x1d   : > { %p5278_p0 = pneg %p5277_p13  ;;  %p5283_p2 = scmp.lt.s32.totalorder %s5281_s20, %s5274_s17 }
  0x1f   : > { %p5284_p3 = por %p5283_p2, %p5282_p1 }
  0x21   : > { %p5285_p4 = pnand %p5284_p3, %p5278_p0 }
  0x23   : > { %5288 = shalt.err (!%p5285_p4)
}
  0x24   : > { %s5458_s27 = smov 256   ;;  %s5459_s28 = smov 64  }
  0x25   : > { %s5460_s29 = smov 4   ;;  %p222_p5 = scmp.lt.s32.totalorder %s5451_s25, 5 }
  0x26   : > { %4130 = dma.hbm_to_vmem [thread:$0]  (!%p5569_p9), %s180_s12, 2048, %s182_s14, %s170_s16, %s5458_s27, %s5459_s28, %s5460_s29  }
  0x27   : > { %s4007_s8 = sshll.u32 %s5560_s7, 6  ;;  %s4058_s9 = sshll.u32 %s5447_s24, 10 }
  0x28   : > { %p5587_p6 = pnand %p4010_p10, %p222_p5  ;;  %s8124_s4 = sld [smem:[#allocation144_spill]] }
  0x29   : > { %s205_s18 = scalar_lea.vmem [#allocation12], %s4007_s8  ;;  %s202_s20 = scalar_lea.sflag [#allocation13], %s5560_s7 }
  0x2a   : > { %s214_s19 = sshll.u32 %s205_s18, 4  ;;  %s5461_s12 = smov [#allocation12]   ;;  %s215_s19 = int_to_ptr.vmem [resolvable:$true] %s214_s19 }
  0x2b   : > { %s5302_s0 = scalar_lea.vmem %s215_s19, 1024  ;;  %s5307_s14 = sshll.u32 %s5461_s12, 4  ;;  %s5308_s14 = int_to_ptr.vmem [resolvable:$false] %s5307_s14 }
  0x2c   : > { %p5303_p8 = scmp.ne.s32.totalorder %s215_s19, %s5302_s0  ;;  %s5309_s16 = scalar_lea.vmem %s5308_s14, 2048 }
  0x2d   : > { %p5310_p10 = scmp.lt.s32.totalorder %s215_s19, %s5308_s14  ;;  %p5311_p0 = scmp.lt.s32.totalorder %s5309_s16, %s5302_s0 }
  0x2e   : > { %s213_s17 = scalar_lea.hbm %s8124_s4, %s4058_s9  ;;  %p5305_p12 = pnand %p5303_p8, %p5263_p11 }
  0x2f   : > { %p5312_p1 = por %p5311_p0, %p5310_p10 }
  0x30   : > { %p5306_p13 = pneg %p5305_p12 }
  0x32   : > { %p5313_p2 = pnand %p5312_p1, %p5306_p13 }
  0x34   : > { %5316 = shalt.err (!%p5313_p2)
}
  0x35   : > { %4133 = dma.hbm_to_vmem [thread:$0]  (!%p5569_p9), %s213_s17, 1024, %s215_s19, %s202_s20, %s5459_s28, %s5459_s28, %s5460_s29  }
  0x36   : > { %226 = sbr.rel (%p5587_p6) target bundleno = 1507 (0x5e3), region = 32  ;;  %s228_s7 = sand.u32 (!%p5587_p6), 1, %s5435_s21  }
  0x37   : > { %s4011_s27 = sshll.u32 (!%p5587_p6), %s228_s7, 7  ;;  %s229_s8 = scalar_lea.sflag (!%p5587_p6), [#allocation10], %s228_s7 }
  0x38   : > { %s5603_s9 = scalar_lea.vmem (!%p5587_p6), [#allocation9], %s4011_s27 }
  0x3b   : > { %5416 = dma.done.wait (%p5551_p7), %s229_s8, 2048  }
  0x3c   : > { %5418 = vsyncadd (%p5551_p7), %s229_s8, 4294965248  ;;  %s4012_s0 = sshll.u32 %s228_s7, 6  ;;  %s238_s11 = scalar_lea.sflag [#allocation13], %s228_s7 }
  0x3d   : > { %s5609_s15 = scalar_lea.vmem [#allocation12], %s4012_s0 }
  0x3e   : > { %5420 = dma.done.wait (%p5551_p7), %s238_s11, 1024  }
  0x3f   : > { %5422 = vsyncadd (%p5551_p7), %s238_s11, 4294966272  ;;  %p273_p9 = scmp.lt.s32.totalorder %s5443_s23, 3  ;;  %s282_s28 = sld [smem:[#allocation8]] }
  0x40   : > { %p4013_p11 = scmp.ne.s32.totalorder %s5443_s23, 0 }
  0x41   : > { %s5617_s29 = scalar_select %p273_p9, %s5443_s23, 3 }
  0x42   : > { %286 = sbr.rel (%p4013_p11) target bundleno = 1033 (0x409), region = 44 }
  0x47   : > { %v5624_v0 = vstv %s282_s28  ;;  %s4014_s18 = sadd.f32 -3.0, %s282_s28  ;;  %v5462_v1 = vmov 0.0   ;;  %s5463_s30 = smov [#allocation2]  }
  0x48   : > { %8125 = vst [vmem:[#allocation22_spill] sm:$0xff] %v5624_v0  ;;  %287 = vst [vmem:[#allocation6] sm:$0xf] %v5462_v1  ;;  %4208 = vrcp.f32 %v5624_v0  ;;  %s298_s19 = sshll.u32 %s5463_s30, 4  ;;  %s5629_s19 = int_to_ptr.vmem [resolvable:$true] %s298_s19 }
  0x49   : > { %s5627_s20 = sand.u32 2147483647, %s4014_s18  ;;  %s5325_s12 = scalar_lea.vmem %s5629_s19, 8192 }
  0x4a   : > { %p293_p7 = scmp.lt.f32.partialorder %s5627_s20, 1e-06  ;;  %p5326_p3 = scmp.ne.s32.totalorder %s5629_s19, %s5325_s12 }
  0x4b   : > { %s7992_s14 = scalar_lea.vmem %s5629_s19, 16384  ;;  %p5330_p4 = scmp.lt.s32.totalorder %s5629_s19, %s5629_s19 }
  0x4c   : > { %p5331_p5 = scmp.lt.s32.totalorder %s7992_s14, %s5325_s12 }
  0x4e   : > { %p5332_p6 = por %p5331_p5, %p5330_p4 }
  0x50   : > { %p5333_p8 = pnand %p5332_p6, %p5326_p3 }
  0x52   : > { %5336 = shalt.err (!%p5333_p8)  }
  0x53   : > { %s5464_s16 = smov 4096   ;;  %s5465_s7 = smov 2048  }
  0x54   : > { %s5466_s27 = smov 128   ;;  %s5645_s28 = smov 0  }
  0x55   : > { %301 = dma.hbm_to_vmem [thread:$0]  %s7986_s1, 8192, %s5629_s19, [#allocation3], %s5464_s16, %s5465_s7, %s5466_s27  ;;  %v4209_v2 = vpop.eup %4208 }
  0x56   : > { %4115 = vpush %v4209_v2 }
  0x87   : > { %s5643_s11 = spop %4115 }
  0x88 LB: >> { %s308_s10 = sand.u32 1, %s5455_s28  ;;  %s5455_s28 = sphi %s5645_s28, %s8556_s28  }
  0x89   : >> { %s4059_s13 = sshll.u32 %s308_s10, 9  ;;  %s312_s30 = scalar_lea.sflag [#allocation3], %s308_s10 }
  0x8a   : >> { %s5651_s18 = scalar_lea.vmem [#allocation2], %s4059_s13 }
  0x8b   : >> { %5423 = dma.done.wait %s312_s30, 8192 }
  0x8c   : >> { %5424 = vsyncadd %s312_s30, 4294959104  ;;  %s5654_s12 = sadd.s32 1, %s5455_s28   ;;  %s323_s16 = ssub.s32 1, %s308_s10 }
  0x8d   : >> { %p4135_p13 = scmp.lt.s32.totalorder %s5654_s12, 2  ;;  %s4060_s7 = sshll.u32 %s5455_s28, 7 }
  0x8e   : >> { %s4063_s27 = sshll.u32 %s323_s16, 9  ;;  %s4061_s8 = sadd.s32 128, %s4060_s7 }
  0x8f   : >> { %s325_s0 = sshra.s32 %s4061_s8, 3  ;;  %s332_s13 = scalar_lea.vmem [#allocation2], %s4063_s27 }
  0x90   : >> { %s4062_s17 = sshll.u32 %s325_s0, 7  ;;  %s335_s14 = sshll.u32 %s332_s13, 4  ;;  %s336_s14 = int_to_ptr.vmem [resolvable:$true] %s335_s14 }
  0x91   : >> { %s5662_s30 = scalar_lea.hbm %s7986_s1, %s4062_s17  ;;  %s333_s26 = scalar_lea.sflag [#allocation3], %s323_s16 }
  0x92   : >> { %s5337_s10 = scalar_lea.hbm %s5662_s30, 8192  ;;  %s5341_s27 = scalar_lea.hbm %s7986_s1, 16384 }
  0x93   : >> { %p5338_p10 = scmp.ne.s32.totalorder %s5662_s30, %s5337_s10  ;;  %p5342_p2 = scmp.lt.s32.totalorder %s5662_s30, %s7986_s1 }
  0x94   : >> { %p5343_p9 = scmp.lt.s32.totalorder %s5341_s27, %s5337_s10 }
  0x95   : >> { %p5339_p0 = pnand %p5338_p10, %p4135_p13 }
  0x96   : >> { %p5344_p11 = por %p5343_p9, %p5342_p2 }
  0x97   : >> { %p5340_p1 = pneg %p5339_p0 }
  0x99   : >> { %p5345_p3 = pnand %p5344_p11, %p5340_p1 }
  0x9b   : >> { %5348 = shalt.err (!%p5345_p3)  }
  0x9c   : >> { %s5349_s2 = scalar_lea.vmem %s336_s14, 8192  ;;  %p5356_p8 = scmp.lt.s32.totalorder %s336_s14, %s5629_s19 }
  0x9d   : >> { %p5350_p4 = scmp.ne.s32.totalorder %s336_s14, %s5349_s2  ;;  %s8126_s4 = scalar_lea.vmem %s5629_s19, 16384 }
  0x9e   : >> { %p5357_p10 = scmp.lt.s32.totalorder %s8126_s4, %s5349_s2 }
  0x9f   : >> { %p5351_p5 = pnand %p5350_p4, %p4135_p13 }
  0xa0   : >> { %p5358_p0 = por %p5357_p10, %p5356_p8 }
  0xa1   : >> { %p5352_p6 = pneg %p5351_p5 }
  0xa3   : >> { %p5359_p12 = pnand %p5358_p0, %p5352_p6 }
  0xa5   : >> { %5362 = shalt.err (!%p5359_p12)  }
  0xa6   : >> { %s5467_s17 = smov 4096   ;;  %s5468_s16 = smov 2048   ;;  %vm1570_vm0 = vcmask (%p293_p7), 130112   ;;  %vm1577_vm1 = vcmask (%p293_p7), 195712   ;;  %vm1584_vm2 = vcmask (%p293_p7), 261312   ;;  %vm1591_vm3 = vcmask (%p293_p7), 326912  }
  0xa7   : >> { %s5469_s10 = smov 128   ;;  %vm1598_vm4 = vcmask (%p293_p7), 392512   ;;  %vm1605_vm5 = vcmask (%p293_p7), 458112   ;;  %vm1612_vm6 = vcmask (%p293_p7), 523712   ;;  %vm1619_vm7 = vcmask (%p293_p7), 589312  }
  0xa8   : >> { %4122 = dma.hbm_to_vmem [thread:$0]  (%p4135_p13), %s5662_s30, 8192, %s336_s14, %s333_s26, %s5467_s17, %s5468_s16, %s5469_s10  ;;  %vm1626_vm8 = vcmask (%p293_p7), 654912   ;;  %vm1633_vm9 = vcmask (%p293_p7), 720512   ;;  %vm1640_vm10 = vcmask (%p293_p7), 786112   ;;  %vm1647_vm11 = vcmask (%p293_p7), 851712  }
  0xa9   : >> { %v5684_v3 = vld [vmem:[%s5651_s18] sm:$0xff]  ;;  %v5687_v4 = vld [vmem:[%s5651_s18 + $0x8] sm:$0xff]  ;;  %v5690_v5 = vld [vmem:[%s5651_s18 + $0x10] sm:$0xff]  ;;  %vm1654_vm12 = vcmask (%p293_p7), 917312   ;;  %vm1661_vm13 = vcmask (%p293_p7), 982912   ;;  %vm1668_vm14 = vcmask (%p293_p7), 1048512  }
  0xaa   : >> { %v5693_v6 = vld [vmem:[%s5651_s18 + $0x18] sm:$0xff]  ;;  %v5696_v7 = vld [vmem:[%s5651_s18 + $0x20] sm:$0xff]  ;;  %v5699_v8 = vld [vmem:[%s5651_s18 + $0x28] sm:$0xff]  ;;  %v403_v10 = vunpack.c.l.bf16 %v5684_v3  ;;  %v404_v13 = vunpack.c.h.bf16 %v5684_v3  ;;  %v405_v14 = vunpack.c.l.bf16 %v5687_v4  ;;  %v406_v15 = vunpack.c.h.bf16 %v5687_v4  ;;  %s4023_s26 = sshll.u32 (%p293_p7), %s5455_s28, 2 }
  0xab   : >> { %v5702_v9 = vld [vmem:[%s5651_s18 + $0x30] sm:$0xff]  ;;  %v5706_v11 = vld [vmem:[%s5651_s18 + $0x38] sm:$0xff]  ;;  %v5709_v12 = vld [vmem:[%s5651_s18 + $0x40] sm:$0xff]  ;;  %v407_v16 = vunpack.c.l.bf16 %v5690_v5  ;;  %v408_v19 = vunpack.c.h.bf16 %v5690_v5  ;;  %v409_v20 = vunpack.c.l.bf16 %v5693_v6  ;;  %v8130_v4 = vunpack.c.h.bf16 %v5693_v6  ;;  %s1915_s14 = scalar_lea.vmem (%p293_p7), [#allocation4], %s4023_s26 }
  0xac   : >> { %v5716_v17 = vld [vmem:[%s5651_s18 + $0x48] sm:$0xff]  ;;  %v5719_v18 = vld [vmem:[%s5651_s18 + $0x50] sm:$0xff]  ;;  %v5726_v23 = vld [vmem:[%s5651_s18 + $0x58] sm:$0xff]  ;;  %v5919_v33 = vmax.f32 %v403_v10, 1e-06  ;;  %v8148_v0 = vunpack.c.l.bf16 %v5709_v12  ;;  %vm1907_vm15 = vcmask (%p293_p7), 1041409  }
  0xad   : >> { %v5729_v24 = vld [vmem:[%s5651_s18 + $0x60] sm:$0xff]  ;;  %v5736_v29 = vld [vmem:[%s5651_s18 + $0x68] sm:$0xff]  ;;  %v5739_v30 = vld [vmem:[%s5651_s18 + $0x70] sm:$0xff]  ;;  %v5923_v27 = vmax.f32 %v404_v13, 1e-06  ;;  %v8136_v13 = vunpack.c.l.bf16 %v5699_v8 }
  0xae   : >> { %v5746_v35 = vld [vmem:[%s5651_s18 + $0x78] sm:$0xff]  ;;  %v5749_v36 = vld [vmem:[%s5651_s18 + $0x80] sm:$0xff]  ;;  %v5756_v41 = vld [vmem:[%s5651_s18 + $0x88] sm:$0xff]  ;;  %v5927_v31 = vmax.f32 %v405_v14, 1e-06 }
  0xaf   : >> { %v5759_v42 = vld [vmem:[%s5651_s18 + $0x90] sm:$0xff]  ;;  %v5766_v47 = vld [vmem:[%s5651_s18 + $0x98] sm:$0xff]  ;;  %v5769_v48 = vld [vmem:[%s5651_s18 + $0xa0] sm:$0xff]  ;;  %v5932_v26 = vmax.f32 %v406_v15, 1e-06 }
  0xb0   : >> { %v5776_v53 = vld [vmem:[%s5651_s18 + $0xa8] sm:$0xff]  ;;  %v5779_v54 = vld [vmem:[%s5651_s18 + $0xb0] sm:$0xff]  ;;  %v5786_v59 = vld [vmem:[%s5651_s18 + $0xb8] sm:$0xff]  ;;  %v5936_v22 = vmax.f32 %v407_v16, 1e-06  ;;  %v8132_v16 = vunpack.c.l.bf16 %v5696_v7 }
  0xb1   : >> { %v5789_v60 = vld [vmem:[%s5651_s18 + $0xc0] sm:$0xff]  ;;  %v5796_v2 = vld [vmem:[%s5651_s18 + $0xc8] sm:$0xff]  ;;  %v5799_v56 = vld [vmem:[%s5651_s18 + $0xd0] sm:$0xff]  ;;  %v5940_v3 = vmax.f32 %v408_v19, 1e-06  ;;  %v8134_v19 = vunpack.c.h.bf16 %v5696_v7  ;;  %v8142_v7 = vunpack.c.h.bf16 %v5702_v9 }
  0xb2   : >> { %v5806_v62 = vld [vmem:[%s5651_s18 + $0xd8] sm:$0xff]  ;;  %v5809_v52 = vld [vmem:[%s5651_s18 + $0xe0] sm:$0xff]  ;;  %v5816_v57 = vld [vmem:[%s5651_s18 + $0xe8] sm:$0xff]  ;;  %8127 = vst [vmem:[#allocation23_spill] sm:$0xff] %v5936_v22  ;;  %v5948_v14 = vmax.f32 %v409_v20, 1e-06  ;;  %v8138_v20 = vunpack.c.h.bf16 %v5699_v8 }
  0xb3   : >> { %v5819_v50 = vld [vmem:[%s5651_s18 + $0xf0] sm:$0xff]  ;;  %v5826_v63 = vld [vmem:[%s5651_s18 + $0xf8] sm:$0xff]  ;;  %v5829_v46 = vld [vmem:[%s5651_s18 + $0x100] sm:$0xff]  ;;  %8128 = vst [vmem:[#allocation24_spill] sm:$0xff] %v5940_v3  ;;  %v5952_v15 = vmax.f32 %v8130_v4, 1e-06 }
  0xb4   : >> { %v5836_v61 = vld [vmem:[%s5651_s18 + $0x108] sm:$0xff]  ;;  %v5839_v44 = vld [vmem:[%s5651_s18 + $0x110] sm:$0xff]  ;;  %v5846_v58 = vld [vmem:[%s5651_s18 + $0x118] sm:$0xff]  ;;  %8129 = vst [vmem:[#allocation25_spill] sm:$0xff] %v5948_v14  ;;  %v5956_v28 = vmax.f32 %v8132_v16, 1e-06  ;;  %v8140_v16 = vunpack.c.l.bf16 %v5702_v9 }
  0xb5   : >> { %v5849_v40 = vld [vmem:[%s5651_s18 + $0x120] sm:$0xff]  ;;  %v5856_v1 = vld [vmem:[%s5651_s18 + $0x128] sm:$0xff]  ;;  %v5859_v38 = vld [vmem:[%s5651_s18 + $0x130] sm:$0xff]  ;;  %8131 = vst [vmem:[#allocation26_spill] sm:$0xff] %v5952_v15  ;;  %v5961_v37 = vmax.f32 %v8134_v19, 1e-06 }
  0xb6   : >> { %v5866_v55 = vld [vmem:[%s5651_s18 + $0x138] sm:$0xff]  ;;  %v5869_v34 = vld [vmem:[%s5651_s18 + $0x140] sm:$0xff]  ;;  %v5876_v32 = vld [vmem:[%s5651_s18 + $0x148] sm:$0xff]  ;;  %8133 = vst [vmem:[#allocation27_spill] sm:$0xff] %v5956_v28  ;;  %v5965_v43 = vmax.f32 %v8136_v13, 1e-06  ;;  %v8144_v13 = vunpack.c.l.bf16 %v5706_v11 }
  0xb7   : >> { %v5879_v51 = vld [vmem:[%s5651_s18 + $0x150] sm:$0xff]  ;;  %v5886_v39 = vld [vmem:[%s5651_s18 + $0x158] sm:$0xff]  ;;  %v5889_v49 = vld [vmem:[%s5651_s18 + $0x160] sm:$0xff]  ;;  %8135 = vst [vmem:[#allocation28_spill] sm:$0xff] %v5961_v37  ;;  %v5969_v6 = vmax.f32 %v8138_v20, 1e-06  ;;  %v8146_v20 = vunpack.c.h.bf16 %v5706_v11  ;;  %v8154_v11 = vunpack.c.h.bf16 %v5716_v17 }
  0xb8   : >> { %v5900_v25 = vld [vmem:[%s5651_s18 + $0x168] sm:$0xff]  ;;  %v5907_v45 = vld [vmem:[%s5651_s18 + $0x170] sm:$0xff]  ;;  %v5914_v21 = vld [vmem:[%s5651_s18 + $0x178] sm:$0xff]  ;;  %8137 = vst [vmem:[#allocation29_spill] sm:$0xff] %v5965_v43  ;;  %v5977_v28 = vmax.f32 %v8140_v16, 1e-06  ;;  %v8150_v16 = vunpack.c.h.bf16 %v5709_v12 }
  0xb9   : >> { %v5943_v10 = vld [vmem:[%s5651_s18 + $0x180] sm:$0xff]  ;;  %8139 = vst [vmem:[#allocation30_spill] sm:$0xff] %v5969_v6  ;;  %v5972_v4 = vld [vmem:[%s5651_s18 + $0x188] sm:$0xff]  ;;  %v5981_v19 = vmax.f32 %v8142_v7, 1e-06  ;;  %v6001_v7 = vld [vmem:[%s5651_s18 + $0x190] sm:$0xff] }
  0xba   : >> { %8141 = vst [vmem:[#allocation31_spill] sm:$0xff] %v5977_v28  ;;  %v5985_v5 = vmax.f32 %v8144_v13, 1e-06  ;;  %v5990_v6 = vmax.f32 %v8146_v20, 1e-06  ;;  %v8152_v13 = vunpack.c.l.bf16 %v5716_v17 }
  0xbb   : >> { %8143 = vst [vmem:[#allocation32_spill] sm:$0xff] %v5981_v19  ;;  %v5994_v43 = vmax.f32 %v8148_v0, 1e-06  ;;  %v5998_v9 = vmax.f32 %v8150_v16, 1e-06  ;;  %v8156_v0 = vunpack.c.l.bf16 %v5719_v18  ;;  %v8158_v16 = vunpack.c.h.bf16 %v5719_v18 }
  0xbc   : >> { %8145 = vst [vmem:[#allocation33_spill] sm:$0xff] %v5985_v5  ;;  %8147 = vst [vmem:[#allocation34_spill] sm:$0xff] %v5990_v6  ;;  %v6006_v5 = vmax.f32 %v8152_v13, 1e-06  ;;  %v6010_v20 = vmax.f32 %v8154_v11, 1e-06  ;;  %v8160_v19 = vunpack.c.l.bf16 %v5726_v23  ;;  %v8162_v13 = vunpack.c.h.bf16 %v5726_v23 }
  0xbd   : >> { %8149 = vst [vmem:[#allocation35_spill] sm:$0xff] %v5994_v43  ;;  %8151 = vst [vmem:[#allocation36_spill] sm:$0xff] %v5998_v9  ;;  %v6014_v8 = vmax.f32 %v8156_v0, 1e-06  ;;  %v6019_v9 = vmax.f32 %v8158_v16, 1e-06  ;;  %v8164_v0 = vunpack.c.l.bf16 %v5729_v24  ;;  %v8166_v18 = vunpack.c.h.bf16 %v5729_v24 }
  0xbe   : >> { %8153 = vst [vmem:[#allocation37_spill] sm:$0xff] %v6006_v5  ;;  %8155 = vst [vmem:[#allocation38_spill] sm:$0xff] %v6010_v20  ;;  %v6023_v43 = vmax.f32 %v8160_v19, 1e-06  ;;  %v6027_v17 = vmax.f32 %v8162_v13, 1e-06  ;;  %v8168_v19 = vunpack.c.l.bf16 %v5736_v29  ;;  %v8170_v13 = vunpack.c.h.bf16 %v5736_v29 }
  0xbf   : >> { %8157 = vst [vmem:[#allocation39_spill] sm:$0xff] %v6014_v8  ;;  %8159 = vst [vmem:[#allocation40_spill] sm:$0xff] %v6019_v9  ;;  %v6030_v11 = vld [vmem:[%s5651_s18 + $0x198] sm:$0xff]  ;;  %v6035_v8 = vmax.f32 %v8164_v0, 1e-06  ;;  %v8172_v20 = vunpack.c.l.bf16 %v5739_v30  ;;  %v8174_v0 = vunpack.c.h.bf16 %v5739_v30  ;;  %v8178_v29 = vunpack.c.h.bf16 %v5746_v35 }
  0xc0   : >> { %8161 = vst [vmem:[#allocation41_spill] sm:$0xff] %v6023_v43  ;;  %8163 = vst [vmem:[#allocation42_spill] sm:$0xff] %v6027_v17  ;;  %v6039_v16 = vmax.f32 %v8166_v18, 1e-06  ;;  %v6043_v12 = vmax.f32 %v8168_v19, 1e-06  ;;  %v8176_v19 = vunpack.c.l.bf16 %v5746_v35  ;;  %v8204_v9 = vunpack.c.l.bf16 %v5786_v59 }
  0xc1   : >> { %8165 = vst [vmem:[#allocation43_spill] sm:$0xff] %v6035_v8  ;;  %v6048_v17 = vmax.f32 %v8170_v13, 1e-06  ;;  %v6052_v43 = vmax.f32 %v8172_v20, 1e-06  ;;  %v6059_v18 = vld [vmem:[%s5651_s18 + $0x1a0] sm:$0xff]  ;;  %v8180_v20 = vunpack.c.l.bf16 %v5749_v36 }
  0xc2   : >> { %8167 = vst [vmem:[#allocation44_spill] sm:$0xff] %v6039_v16  ;;  %8169 = vst [vmem:[#allocation45_spill] sm:$0xff] %v6043_v12  ;;  %v6056_v24 = vmax.f32 %v8174_v0, 1e-06  ;;  %v6064_v12 = vmax.f32 %v8176_v19, 1e-06  ;;  %v8181_v0 = vunpack.c.h.bf16 %v5749_v36  ;;  %v8182_v16 = vunpack.c.l.bf16 %v5756_v41 }
  0xc3   : >> { %8171 = vst [vmem:[#allocation46_spill] sm:$0xff] %v6048_v17  ;;  %8173 = vst [vmem:[#allocation47_spill] sm:$0xff] %v6052_v43  ;;  %v6068_v13 = vmax.f32 %v8178_v29, 1e-06  ;;  %v6072_v23 = vmax.f32 %v8180_v20, 1e-06  ;;  %v8183_v19 = vunpack.c.h.bf16 %v5756_v41  ;;  %v8184_v20 = vunpack.c.l.bf16 %v5759_v42 }
  0xc4   : >> { %8175 = vst [vmem:[#allocation48_spill] sm:$0xff] %v6056_v24  ;;  %8177 = vst [vmem:[#allocation49_spill] sm:$0xff] %v6064_v12  ;;  %v6077_v24 = vmax.f32 %v8181_v0, 1e-06  ;;  %v6081_v43 = vmax.f32 %v8182_v16, 1e-06  ;;  %v8186_v36 = vunpack.c.h.bf16 %v5759_v42  ;;  %v8188_v16 = vunpack.c.l.bf16 %v5766_v47 }
  0xc5   : >> { %8179 = vst [vmem:[#allocation50_spill] sm:$0xff] %v6068_v13  ;;  %v6085_v35 = vmax.f32 %v8183_v19, 1e-06  ;;  %v6088_v29 = vld [vmem:[%s5651_s18 + $0x1a8] sm:$0xff]  ;;  %v6093_v12 = vmax.f32 %v8184_v20, 1e-06  ;;  %v8190_v19 = vunpack.c.h.bf16 %v5766_v47  ;;  %v8192_v13 = vunpack.c.l.bf16 %v5769_v48 }
  0xc6   : >> { %v6097_v0 = vmax.f32 %v8186_v36, 1e-06  ;;  %v6101_v30 = vmax.f32 %v8188_v16, 1e-06  ;;  %v8194_v20 = vunpack.c.h.bf16 %v5769_v48  ;;  %v6117_v36 = vld [vmem:[%s5651_s18 + $0x1b0] sm:$0xff]  ;;  %v8196_v16 = vunpack.c.l.bf16 %v5776_v53 }
  0xc7   : >> { %8185 = vst [vmem:[#allocation51_spill] sm:$0xff] %v6093_v12  ;;  %v6106_v17 = vmax.f32 %v8190_v19, 1e-06  ;;  %v6110_v8 = vmax.f32 %v8192_v13, 1e-06  ;;  %v8198_v47 = vunpack.c.h.bf16 %v5776_v53  ;;  %v8200_v13 = vunpack.c.l.bf16 %v5779_v54 }
  0xc8   : >> { %8187 = vst [vmem:[#allocation52_spill] sm:$0xff] %v6097_v0  ;;  %8189 = vst [vmem:[#allocation53_spill] sm:$0xff] %v6101_v30  ;;  %v6114_v42 = vmax.f32 %v8194_v20, 1e-06  ;;  %v6122_v5 = vmax.f32 %v8196_v16, 1e-06  ;;  %v8202_v20 = vunpack.c.h.bf16 %v5779_v54  ;;  %v8206_v16 = vunpack.c.h.bf16 %v5786_v59 }
  0xc9   : >> { %8191 = vst [vmem:[#allocation54_spill] sm:$0xff] %v6106_v17  ;;  %8193 = vst [vmem:[#allocation55_spill] sm:$0xff] %v6110_v8  ;;  %v6126_v19 = vmax.f32 %v8198_v47, 1e-06  ;;  %v6130_v41 = vmax.f32 %v8200_v13, 1e-06  ;;  %v8208_v13 = vunpack.c.l.bf16 %v5789_v60  ;;  %v8210_v54 = vunpack.c.h.bf16 %v5789_v60 }
  0xca   : >> { %8195 = vst [vmem:[#allocation56_spill] sm:$0xff] %v6114_v42  ;;  %8197 = vst [vmem:[#allocation57_spill] sm:$0xff] %v6122_v5  ;;  %v6135_v6 = vmax.f32 %v8202_v20, 1e-06  ;;  %v6139_v28 = vmax.f32 %v8204_v9, 1e-06  ;;  %v8212_v9 = vunpack.c.l.bf16 %v5796_v2 }
  0xcb   : >> { %8199 = vst [vmem:[#allocation58_spill] sm:$0xff] %v6126_v19  ;;  %8201 = vst [vmem:[#allocation59_spill] sm:$0xff] %v6130_v41  ;;  %v6143_v53 = vmax.f32 %v8206_v16, 1e-06  ;;  %v6146_v47 = vld [vmem:[%s5651_s18 + $0x1b8] sm:$0xff]  ;;  %v8214_v16 = vunpack.c.h.bf16 %v5796_v2  ;;  %v8216_v19 = vunpack.c.l.bf16 %v5799_v56  ;;  %v8222_v2 = vunpack.c.h.bf16 %v5806_v62 }
  0xcc   : >> { %8203 = vst [vmem:[#allocation60_spill] sm:$0xff] %v6135_v6  ;;  %8205 = vst [vmem:[#allocation61_spill] sm:$0xff] %v6139_v28  ;;  %v6151_v41 = vmax.f32 %v8208_v13, 1e-06  ;;  %v6155_v20 = vmax.f32 %v8210_v54, 1e-06  ;;  %v8218_v13 = vunpack.c.h.bf16 %v5799_v56 }
  0xcd   : >> { %8207 = vst [vmem:[#allocation62_spill] sm:$0xff] %v6143_v53  ;;  %v6159_v48 = vmax.f32 %v8212_v9, 1e-06  ;;  %v6164_v53 = vmax.f32 %v8214_v16, 1e-06  ;;  %v6175_v54 = vld [vmem:[%s5651_s18 + $0x1c0] sm:$0xff]  ;;  %v8220_v9 = vunpack.c.l.bf16 %v5806_v62 }
  0xce   : >> { %8209 = vst [vmem:[#allocation63_spill] sm:$0xff] %v6151_v41  ;;  %8211 = vst [vmem:[#allocation64_spill] sm:$0xff] %v6155_v20  ;;  %v6168_v28 = vmax.f32 %v8216_v19, 1e-06  ;;  %v6172_v60 = vmax.f32 %v8218_v13, 1e-06  ;;  %v8224_v19 = vunpack.c.l.bf16 %v5809_v52  ;;  %v8226_v13 = vunpack.c.h.bf16 %v5809_v52 }
  0xcf   : >> { %8213 = vst [vmem:[#allocation65_spill] sm:$0xff] %v6159_v48  ;;  %8215 = vst [vmem:[#allocation66_spill] sm:$0xff] %v6164_v53  ;;  %v6180_v48 = vmax.f32 %v8220_v9, 1e-06  ;;  %v6184_v16 = vmax.f32 %v8222_v2, 1e-06  ;;  %v8228_v20 = vunpack.c.l.bf16 %v5816_v57  ;;  %v8230_v9 = vunpack.c.h.bf16 %v5816_v57 }
  0xd0   : >> { %8217 = vst [vmem:[#allocation67_spill] sm:$0xff] %v6168_v28  ;;  %8219 = vst [vmem:[#allocation68_spill] sm:$0xff] %v6172_v60  ;;  %v6188_v59 = vmax.f32 %v8224_v19, 1e-06  ;;  %v6193_v60 = vmax.f32 %v8226_v13, 1e-06  ;;  %v8232_v19 = vunpack.c.l.bf16 %v5819_v50  ;;  %v8234_v52 = vunpack.c.h.bf16 %v5819_v50 }
  0xd1   : >> { %8221 = vst [vmem:[#allocation69_spill] sm:$0xff] %v6180_v48  ;;  %8223 = vst [vmem:[#allocation70_spill] sm:$0xff] %v6184_v16  ;;  %v6197_v28 = vmax.f32 %v8228_v20, 1e-06  ;;  %v6201_v62 = vmax.f32 %v8230_v9, 1e-06  ;;  %v8236_v20 = vunpack.c.l.bf16 %v5826_v63  ;;  %v8238_v9 = vunpack.c.h.bf16 %v5826_v63 }
  0xd2   : >> { %8225 = vst [vmem:[#allocation71_spill] sm:$0xff] %v6188_v59  ;;  %8227 = vst [vmem:[#allocation72_spill] sm:$0xff] %v6193_v60  ;;  %v6204_v2 = vld [vmem:[%s5651_s18 + $0x1c8] sm:$0xff]  ;;  %v6209_v59 = vmax.f32 %v8232_v19, 1e-06  ;;  %v8240_v16 = vunpack.c.l.bf16 %v5829_v46  ;;  %v8242_v19 = vunpack.c.h.bf16 %v5829_v46  ;;  %v8246_v63 = vunpack.c.h.bf16 %v5836_v61 }
  0xd3   : >> { %8229 = vst [vmem:[#allocation73_spill] sm:$0xff] %v6197_v28  ;;  %8231 = vst [vmem:[#allocation74_spill] sm:$0xff] %v6201_v62  ;;  %v6213_v13 = vmax.f32 %v8234_v52, 1e-06  ;;  %v6217_v56 = vmax.f32 %v8236_v20, 1e-06  ;;  %v8244_v20 = vunpack.c.l.bf16 %v5836_v61  ;;  %v515_v46 = vunpack.c.l.bf16 %v6175_v54 }
  0xd4   : >> { %8233 = vst [vmem:[#allocation75_spill] sm:$0xff] %v6209_v59  ;;  %v6222_v62 = vmax.f32 %v8238_v9, 1e-06  ;;  %v6226_v28 = vmax.f32 %v8240_v16, 1e-06  ;;  %v6233_v52 = vld [vmem:[%s5651_s18 + $0x1d0] sm:$0xff]  ;;  %v8248_v16 = vunpack.c.l.bf16 %v5839_v44  ;;  %v516_v60 = vunpack.c.h.bf16 %v6175_v54 }
  0xd5   : >> { %8235 = vst [vmem:[#allocation76_spill] sm:$0xff] %v6213_v13  ;;  %8237 = vst [vmem:[#allocation77_spill] sm:$0xff] %v6217_v56  ;;  %v6230_v50 = vmax.f32 %v8242_v19, 1e-06  ;;  %v6238_v56 = vmax.f32 %v8244_v20, 1e-06  ;;  %v8250_v19 = vunpack.c.h.bf16 %v5839_v44  ;;  %v8252_v13 = vunpack.c.l.bf16 %v5846_v58 }
  0xd6   : >> { %8239 = vst [vmem:[#allocation78_spill] sm:$0xff] %v6222_v62  ;;  %8241 = vst [vmem:[#allocation79_spill] sm:$0xff] %v6226_v28  ;;  %v6242_v9 = vmax.f32 %v8246_v63, 1e-06  ;;  %v6246_v57 = vmax.f32 %v8248_v16, 1e-06  ;;  %v8254_v20 = vunpack.c.h.bf16 %v5846_v58  ;;  %v8256_v16 = vunpack.c.l.bf16 %v5849_v40 }
  0xd7   : >> { %8243 = vst [vmem:[#allocation80_spill] sm:$0xff] %v6230_v50  ;;  %8245 = vst [vmem:[#allocation81_spill] sm:$0xff] %v6238_v56  ;;  %v6251_v62 = vmax.f32 %v8250_v19, 1e-06  ;;  %v6255_v59 = vmax.f32 %v8252_v13, 1e-06  ;;  %v8258_v44 = vunpack.c.h.bf16 %v5849_v40  ;;  %v8260_v13 = vunpack.c.l.bf16 %v5856_v1 }
  0xd8   : >> { %8247 = vst [vmem:[#allocation82_spill] sm:$0xff] %v6242_v9  ;;  %8249 = vst [vmem:[#allocation83_spill] sm:$0xff] %v6246_v57  ;;  %v6259_v61 = vmax.f32 %v8254_v20, 1e-06  ;;  %v6262_v63 = vld [vmem:[%s5651_s18 + $0x1d8] sm:$0xff]  ;;  %v517_v58 = vunpack.c.l.bf16 %v6204_v2  ;;  %v8262_v20 = vunpack.c.h.bf16 %v5856_v1  ;;  %v8264_v54 = vunpack.c.l.bf16 %v5859_v38 }
  0xd9   : >> { %8251 = vst [vmem:[#allocation84_spill] sm:$0xff] %v6251_v62  ;;  %8253 = vst [vmem:[#allocation85_spill] sm:$0xff] %v6255_v59  ;;  %v6267_v48 = vmax.f32 %v8256_v16, 1e-06  ;;  %v6271_v19 = vmax.f32 %v8258_v44, 1e-06  ;;  %v8266_v16 = vunpack.c.h.bf16 %v5859_v38  ;;  %v518_v5 = vunpack.c.h.bf16 %v6204_v2 }
  0xda   : >> { %8255 = vst [vmem:[#allocation86_spill] sm:$0xff] %v6259_v61  ;;  %v6275_v53 = vmax.f32 %v8260_v13, 1e-06  ;;  %v6280_v41 = vmax.f32 %v8262_v20, 1e-06  ;;  %v399_v44 = vld [vmem:[%s5651_s18 + $0x1e0] sm:$0xff]  ;;  %v8268_v13 = vunpack.c.l.bf16 %v5866_v55  ;;  %v8272_v20 = vunpack.c.l.bf16 %v5869_v34 }
  0xdb   : >> { %8257 = vst [vmem:[#allocation87_spill] sm:$0xff] %v6267_v48  ;;  %8259 = vst [vmem:[#allocation88_spill] sm:$0xff] %v6271_v19  ;;  %v6284_v6 = vmax.f32 %v8264_v54, 1e-06  ;;  %v6288_v40 = vmax.f32 %v8266_v16, 1e-06  ;;  %v8270_v19 = vunpack.c.h.bf16 %v5866_v55  ;;  %v519_v38 = vunpack.c.l.bf16 %v6233_v52 }
  0xdc   : >> { %8261 = vst [vmem:[#allocation89_spill] sm:$0xff] %v6275_v53  ;;  %8263 = vst [vmem:[#allocation90_spill] sm:$0xff] %v6280_v41  ;;  %v6294_v53 = vmax.f32 %v8268_v13, 1e-06  ;;  %v6302_v54 = vmax.f32 %v8272_v20, 1e-06  ;;  %v8274_v16 = vunpack.c.h.bf16 %v5869_v34  ;;  %v8276_v2 = vunpack.c.l.bf16 %v5876_v32 }
  0xdd   : >> { %8265 = vst [vmem:[#allocation91_spill] sm:$0xff] %v6284_v6  ;;  %8267 = vst [vmem:[#allocation92_spill] sm:$0xff] %v6288_v40  ;;  %v6298_v1 = vmax.f32 %v8270_v19, 1e-06  ;;  %v8278_v13 = vunpack.c.h.bf16 %v5876_v32  ;;  %v400_v19 = vld [vmem:[%s5651_s18 + $0x1e8] sm:$0xff]  ;;  %v8280_v20 = vunpack.c.l.bf16 %v5879_v51  ;;  %v521_v32 = vunpack.c.l.bf16 %v6262_v63 }
  0xde   : >> { %8269 = vst [vmem:[#allocation93_spill] sm:$0xff] %v6294_v53  ;;  %8273 = vst [vmem:[#allocation95_spill] sm:$0xff] %v6302_v54  ;;  %v6307_v40 = vmax.f32 %v8274_v16, 1e-06  ;;  %v6311_v6 = vmax.f32 %v8276_v2, 1e-06  ;;  %v8282_v53 = vunpack.c.h.bf16 %v5879_v51  ;;  %v8284_v16 = vunpack.c.l.bf16 %v5886_v39 }
  0xdf   : >> { %8271 = vst [vmem:[#allocation94_spill] sm:$0xff] %v6298_v1  ;;  %v6315_v55 = vmax.f32 %v8278_v13, 1e-06  ;;  %v520_v1 = vunpack.c.h.bf16 %v6233_v52  ;;  %v6321_v54 = vmax.f32 %v8280_v20, 1e-06  ;;  %v8286_v13 = vunpack.c.h.bf16 %v5886_v39 }
  0xe0   : >> { %8275 = vst [vmem:[#allocation96_spill] sm:$0xff] %v6307_v40  ;;  %8277 = vst [vmem:[#allocation97_spill] sm:$0xff] %v6311_v6  ;;  %v6325_v34 = vmax.f32 %v8282_v53, 1e-06  ;;  %v6329_v2 = vmax.f32 %v8284_v16, 1e-06  ;;  %v8288_v52 = vunpack.c.l.bf16 %v5889_v49  ;;  %v8290_v20 = vunpack.c.h.bf16 %v5889_v49 }
  0xe1   : >> { %8279 = vst [vmem:[#allocation98_spill] sm:$0xff] %v6315_v55  ;;  %8281 = vst [vmem:[#allocation99_spill] sm:$0xff] %v6321_v54  ;;  %v6334_v55 = vmax.f32 %v8286_v13, 1e-06  ;;  %v401_v53 = vld [vmem:[%s5651_s18 + $0x1f0] sm:$0xff]  ;;  %v8292_v16 = vunpack.c.l.bf16 %v5900_v25  ;;  %v8294_v54 = vunpack.c.h.bf16 %v5900_v25  ;;  %v8296_v13 = vunpack.c.l.bf16 %v5907_v45  ;;  %v402_v25 = vld [vmem:[%s5651_s18 + $0x1f8] sm:$0xff] }
  0xe2   : >> { %8283 = vst [vmem:[#allocation100_spill] sm:$0xff] %v6325_v34  ;;  %8285 = vst [vmem:[#allocation101_spill] sm:$0xff] %v6329_v2  ;;  %v6338_v6 = vmax.f32 %v8288_v52, 1e-06  ;;  %v6342_v51 = vmax.f32 %v8290_v20, 1e-06  ;;  %v522_v34 = vunpack.c.h.bf16 %v6262_v63  ;;  %v523_v52 = vunpack.c.l.bf16 %v399_v44 }
  0xe3   : >> { %8287 = vst [vmem:[#allocation102_spill] sm:$0xff] %v6334_v55  ;;  %v6348_v2 = vmax.f32 %v8292_v16, 1e-06  ;;  %v6352_v39 = vmax.f32 %v8294_v54, 1e-06  ;;  %v8298_v49 = vunpack.c.h.bf16 %v5907_v45  ;;  %v8302_v16 = vunpack.c.h.bf16 %v5914_v21 }
  0xe4   : >> { %8289 = vst [vmem:[#allocation103_spill] sm:$0xff] %v6338_v6  ;;  %8291 = vst [vmem:[#allocation104_spill] sm:$0xff] %v6342_v51  ;;  %v6356_v55 = vmax.f32 %v8296_v13, 1e-06  ;;  %v8300_v51 = vunpack.c.l.bf16 %v5914_v21  ;;  %v524_v54 = vunpack.c.h.bf16 %v399_v44  ;;  %v8306_v13 = vunpack.c.h.bf16 %v5943_v10 }
  0xe5   : >> { %8293 = vst [vmem:[#allocation105_spill] sm:$0xff] %v6348_v2  ;;  %8295 = vst [vmem:[#allocation106_spill] sm:$0xff] %v6352_v39  ;;  %v6360_v20 = vmax.f32 %v8298_v49, 1e-06  ;;  %v6368_v2 = vmax.f32 %v8302_v16, 1e-06  ;;  %v8304_v39 = vunpack.c.l.bf16 %v5943_v10  ;;  %v8308_v45 = vunpack.c.l.bf16 %v5972_v4 }
  0xe6   : >> { %8297 = vst [vmem:[#allocation107_spill] sm:$0xff] %v6356_v55  ;;  %v6364_v63 = vmax.f32 %v8300_v51, 1e-06  ;;  %v6377_v55 = vmax.f32 %v8306_v13, 1e-06  ;;  %v525_v51 = vunpack.c.l.bf16 %v400_v19  ;;  %v8312_v16 = vunpack.c.l.bf16 %v6001_v7 }
  0xe7   : >> { %8299 = vst [vmem:[#allocation108_spill] sm:$0xff] %v6360_v20  ;;  %8303 = vst [vmem:[#allocation110_spill] sm:$0xff] %v6368_v2  ;;  %v6373_v6 = vmax.f32 %v8304_v39, 1e-06  ;;  %v6381_v49 = vmax.f32 %v8308_v45, 1e-06  ;;  %v8314_v39 = vunpack.c.h.bf16 %v6001_v7  ;;  %v526_v10 = vunpack.c.h.bf16 %v400_v19 }
  0xe8   : >> { %8301 = vst [vmem:[#allocation109_spill] sm:$0xff] %v6364_v63  ;;  %8307 = vst [vmem:[#allocation112_spill] sm:$0xff] %v6377_v55  ;;  %v8310_v63 = vunpack.c.h.bf16 %v5972_v4  ;;  %v6389_v44 = vmax.f32 %v8312_v16, 1e-06  ;;  %v8316_v13 = vunpack.c.l.bf16 %v6030_v11  ;;  %v8318_v45 = vunpack.c.h.bf16 %v6030_v11 }
  0xe9   : >> { %8305 = vst [vmem:[#allocation111_spill] sm:$0xff] %v6373_v6  ;;  %8309 = vst [vmem:[#allocation113_spill] sm:$0xff] %v6381_v49  ;;  %v6393_v2 = vmax.f32 %v8314_v39, 1e-06  ;;  %v8320_v4 = vunpack.c.l.bf16 %v6059_v18  ;;  %v527_v41 = vunpack.c.l.bf16 %v401_v53  ;;  %v8322_v16 = vunpack.c.h.bf16 %v6059_v18 }
  0xea   : >> { %v6385_v21 = vmax.f32 %v8310_v63, 1e-06  ;;  %8313 = vst [vmem:[#allocation115_spill] sm:$0xff] %v6389_v44  ;;  %v6397_v20 = vmax.f32 %v8316_v13, 1e-06  ;;  %v8324_v7 = vunpack.c.l.bf16 %v6088_v29  ;;  %v8326_v39 = vunpack.c.h.bf16 %v6088_v29 }
  0xeb   : >> { %8315 = vst [vmem:[#allocation116_spill] sm:$0xff] %v6393_v2  ;;  %v6401_v40 = vmax.f32 %v8318_v45, 1e-06  ;;  %v6405_v63 = vmax.f32 %v8320_v4, 1e-06  ;;  %v528_v11 = vunpack.c.h.bf16 %v401_v53  ;;  %v8328_v45 = vunpack.c.l.bf16 %v6117_v36 }
  0xec   : >> { %8311 = vst [vmem:[#allocation114_spill] sm:$0xff] %v6385_v21  ;;  %8317 = vst [vmem:[#allocation117_spill] sm:$0xff] %v6397_v20  ;;  %v6409_v48 = vmax.f32 %v8322_v16, 1e-06  ;;  %v6413_v19 = vmax.f32 %v8324_v7, 1e-06  ;;  %v8330_v4 = vunpack.c.h.bf16 %v6117_v36  ;;  %v8332_v18 = vunpack.c.l.bf16 %v6146_v47 }
  0xed   : >> { %8319 = vst [vmem:[#allocation118_spill] sm:$0xff] %v6401_v40  ;;  %8321 = vst [vmem:[#allocation119_spill] sm:$0xff] %v6405_v63  ;;  %v6417_v13 = vmax.f32 %v8326_v39, 1e-06  ;;  %v6421_v40 = vmax.f32 %v8328_v45, 1e-06  ;;  %v8334_v7 = vunpack.c.h.bf16 %v6146_v47  ;;  %v530_v39 = vunpack.c.h.bf16 %v402_v25 }
  0xee   : >> { %8323 = vst [vmem:[#allocation120_spill] sm:$0xff] %v6409_v48  ;;  %8325 = vst [vmem:[#allocation121_spill] sm:$0xff] %v6413_v19  ;;  %v6425_v63 = vmax.f32 %v8330_v4, 1e-06  ;;  %v6429_v16 = vmax.f32 %v8332_v18, 1e-06  ;;  %v529_v48 = vunpack.c.l.bf16 %v402_v25  ;;  %v697_v25 = vmul.f32 (%p293_p7), %v6085_v35, %v6085_v35 }
  0xef   : >> { %8327 = vst [vmem:[#allocation122_spill] sm:$0xff] %v6417_v13  ;;  %8329 = vst [vmem:[#allocation123_spill] sm:$0xff] %v6421_v40  ;;  %v6433_v19 = vmax.f32 %v8334_v7, 1e-06  ;;  %v6435_v29 = vmax.f32 %v515_v46, 1e-06 }
  0xf0   : >> { %8331 = vst [vmem:[#allocation124_spill] sm:$0xff] %v6425_v63  ;;  %8333 = vst [vmem:[#allocation125_spill] sm:$0xff] %v6429_v16  ;;  %v6437_v53 = vmax.f32 %v516_v60, 1e-06  ;;  %v6439_v45 = vmax.f32 %v517_v58, 1e-06 }
  0xf1   : >> { %8335 = vst [vmem:[#allocation126_spill] sm:$0xff] %v6433_v19  ;;  %8336 = vst [vmem:[#allocation127_spill] sm:$0xff] %v6435_v29  ;;  %v6441_v40 = vmax.f32 %v518_v5, 1e-06  ;;  %v6443_v36 = vmax.f32 %v519_v38, 1e-06 }
  0xf2   : >> { %8337 = vst [vmem:[#allocation128_spill] sm:$0xff] %v6437_v53  ;;  %8338 = vst [vmem:[#allocation129_spill] sm:$0xff] %v6439_v45  ;;  %v6445_v4 = vmax.f32 %v520_v1, 1e-06  ;;  %v6447_v18 = vmax.f32 %v521_v32, 1e-06  ;;  %v695_v32 = vmul.f32 (%p293_p7), %v6077_v24, %v6077_v24 }
  0xf3   : >> { %8339 = vst [vmem:[#allocation130_spill] sm:$0xff] %v6441_v40  ;;  %8340 = vst [vmem:[#allocation131_spill] sm:$0xff] %v6443_v36  ;;  %v6449_v16 = vmax.f32 %v522_v34, 1e-06  ;;  %v6451_v47 = vmax.f32 %v523_v52, 1e-06  ;;  %v694_v34 = vmul.f32 (%p293_p7), %v6072_v23, %v6072_v23  ;;  %v662_v52 = vmul.f32 (%p293_p7), %v5919_v33, %v5919_v33 }
  0xf4   : >> { %8341 = vst [vmem:[#allocation132_spill] sm:$0xff] %v6445_v4  ;;  %8342 = vst [vmem:[#allocation133_spill] sm:$0xff] %v6447_v18  ;;  %v6453_v7 = vmax.f32 %v524_v54, 1e-06  ;;  %v6455_v46 = vmax.f32 %v525_v51, 1e-06  ;;  %v664_v54 = vmul.f32 (%p293_p7), %v5927_v31, %v5927_v31  ;;  %v665_v51 = vmul.f32 (%p293_p7), %v5932_v26, %v5932_v26 }
  0xf5   : >> { %8343 = vst [vmem:[#allocation134_spill] sm:$0xff] %v6449_v16  ;;  %8344 = vst [vmem:[#allocation135_spill] sm:$0xff] %v6451_v47  ;;  %v6457_v60 = vmax.f32 %v526_v10, 1e-06  ;;  %v6459_v58 = vmax.f32 %v527_v41, 1e-06  ;;  %v663_v41 = vmul.f32 (%p293_p7), %v5923_v27, %v5923_v27  ;;  %v822_v10 = vmul.f32 (%p293_p7), %v694_v34, %v6072_v23 }
  0xf6   : >> { %8345 = vst [vmem:[#allocation136_spill] sm:$0xff] %v6453_v7  ;;  %8346 = vst [vmem:[#allocation137_spill] sm:$0xff] %v6455_v46  ;;  %v6461_v5 = vmax.f32 %v528_v11, 1e-06  ;;  %v6463_v38 = vmax.f32 %v529_v48, 1e-06  ;;  %v696_v48 = vmul.f32 (%p293_p7), %v6081_v43, %v6081_v43  ;;  %v823_v11 = vmul.f32 (%p293_p7), %v695_v32, %v6077_v24 }
  0xf7   : >> { %8347 = vst [vmem:[#allocation138_spill] sm:$0xff] %v6457_v60  ;;  %8348 = vst [vmem:[#allocation139_spill] sm:$0xff] %v6459_v58  ;;  %v6465_v1 = vmax.f32 %v530_v39, 1e-06  ;;  %661 = sbr.rel (!%p293_p7) target bundleno = 557 (0x22d), region = 59  ;;  %v790_v39 = vmul.f32 (%p293_p7), %v662_v52, %v5919_v33  ;;  %v792_v58 = vmul.f32 (%p293_p7), %v664_v54, %v5927_v31  ;;  %v793_v60 = vmul.f32 (%p293_p7), %v665_v51, %v5932_v26 }
  0xf8   : >> { %8349 = vst [vmem:[#allocation140_spill] sm:$0xff] %v6461_v5  ;;  %8350 = vst [vmem:[#allocation141_spill] sm:$0xff] %v6463_v38  ;;  %v824_v38 = vmul.f32 (%p293_p7), %v696_v48, %v6081_v43  ;;  %v825_v5 = vmul.f32 (%p293_p7), %v697_v25, %v6085_v35  ;;  %v966_v46 = vadd.f32 (%p293_p7), %v823_v11, %v822_v10 }
  0xf9   : >> { %8351 = vst [vmem:[#allocation142_spill] sm:$0xff] %v6465_v1  ;;  %v791_v1 = vmul.f32 (%p293_p7), %v663_v41, %v5923_v27  ;;  %v698_v47 = vmul.f32 (%p293_p7), %v6093_v12, %v6093_v12  ;;  %v699_v34 = vmul.f32 (%p293_p7), %v6097_v0, %v6097_v0  ;;  %v921_v52 = vadd.f32 (%p293_p7), %v793_v60, %v792_v58 }
  0xfa   : >> { %v969_v32 = vadd.f32 (%p293_p7), %v825_v5, %v824_v38  ;;  %v666_v41 = vmul.f32 (%p293_p7), %v5936_v22, %v5936_v22  ;;  %v667_v48 = vmul.f32 (%p293_p7), %v5940_v3, %v5940_v3  ;;  %967 = vadd.xlane.f32.xlu1 (%p293_p7), %v966_v46  ;;  %v728_v54 = vmul.f32 (%p293_p7), %v6238_v56, %v6238_v56 }
  0xfb   : >> { %v918_v7 = vadd.f32 (%p293_p7), %v791_v1, %v790_v39  ;;  %v826_v25 = vmul.f32 (%p293_p7), %v698_v47, %v6093_v12  ;;  %v827_v1 = vmul.f32 (%p293_p7), %v699_v34, %v6097_v0  ;;  %v729_v60 = vmul.f32 (%p293_p7), %v6242_v9, %v6242_v9 }
  0xfc   : >> { %v794_v51 = vmul.f32 %v666_v41, %v5936_v22  ;;  %v795_v5 = vmul.f32 %v667_v48, %v5940_v3  ;;  %v726_v58 = vmul.f32 %v6226_v28, %v6226_v28  ;;  %v700_v47 = vmul.f32 %v6101_v30, %v6101_v30 }
  0xfd   : >> { %919 = vadd.xlane.f32.xlu0 %v918_v7  ;;  %v972_v38 = vadd.f32 %v827_v1, %v826_v25  ;;  %v727_v7 = vmul.f32 %v6230_v50, %v6230_v50  ;;  %v856_v10 = vmul.f32 %v728_v54, %v6238_v56  ;;  %v857_v11 = vmul.f32 %v729_v60, %v6242_v9 }
  0xfe   : >> { %v924_v46 = vadd.f32 %v795_v5, %v794_v51  ;;  %v701_v39 = vmul.f32 %v6106_v17, %v6106_v17  ;;  %970 = vadd.xlane.f32.xlu1 %v969_v32  ;;  %v854_v34 = vmul.f32 %v726_v58, %v6226_v28  ;;  %v668_v48 = vmul.f32 %v5948_v14, %v5948_v14 }
  0xff   : >> { %v855_v41 = vmul.f32 %v727_v7, %v6230_v50  ;;  %v669_v25 = vmul.f32 %v5952_v15, %v5952_v15  ;;  %v828_v1 = vmul.f32 %v700_v47, %v6101_v30  ;;  %v758_v54 = vmul.f32 %v6373_v6, %v6373_v6 }
 0x100   : >> { %v759_v51 = vmul.f32 %v6377_v55, %v6377_v55  ;;  %v1017_v32 = vadd.f32 %v857_v11, %v856_v10  ;;  %v730_v5 = vmul.f32 %v6246_v57, %v6246_v57  ;;  %v731_v60 = vmul.f32 %v6251_v62, %v6251_v62  ;;  %v8352_v10 = vld [vmem:[#allocation27_spill] sm:$0xff] }
 0x101   : >> { %922 = vadd.xlane.f32.xlu0 %v921_v52  ;;  %v829_v52 = vmul.f32 %v701_v39, %v6106_v17  ;;  %v1014_v58 = vadd.f32 %v855_v41, %v854_v34  ;;  %v796_v7 = vmul.f32 %v668_v48, %v5948_v14  ;;  %v797_v47 = vmul.f32 %v669_v25, %v5952_v15 }
 0x102   : >> { %973 = vadd.xlane.f32.xlu1 %v972_v38  ;;  %v886_v30 = vmul.f32 %v758_v54, %v6373_v6  ;;  %v887_v50 = vmul.f32 %v759_v51, %v6377_v55  ;;  %v670_v11 = vmul.f32 %v8352_v10, %v8352_v10  ;;  %v858_v39 = vmul.f32 %v730_v5, %v6246_v57 }
 0x103   : >> { %v859_v17 = vmul.f32 %v731_v60, %v6251_v62  ;;  %v671_v38 = vmul.f32 %v5961_v37, %v5961_v37  ;;  %v975_v34 = vadd.f32 %v829_v52, %v828_v1  ;;  %v927_v41 = vadd.f32 %v797_v47, %v796_v7  ;;  %v8354_v7 = vld [vmem:[#allocation30_spill] sm:$0xff] }
 0x104   : >> { %v761_v48 = vmul.f32 %v6385_v21, %v6385_v21  ;;  %v1062_v25 = vadd.f32 %v887_v50, %v886_v30  ;;  %v798_v54 = vmul.f32 %v670_v11, %v8352_v10  ;;  %v732_v51 = vmul.f32 %v6255_v59, %v6255_v59 }
 0x105   : >> { %925 = vadd.xlane.f32.xlu0 %v924_v46  ;;  %v760_v46 = vmul.f32 %v6381_v49, %v6381_v49  ;;  %v1020_v5 = vadd.f32 %v859_v17, %v858_v39  ;;  %v799_v60 = vmul.f32 %v671_v38, %v5961_v37  ;;  %v702_v30 = vmul.f32 %v6110_v8, %v6110_v8  ;;  %v8353_v17 = vld [vmem:[#allocation29_spill] sm:$0xff] }
 0x106   : >> { %1018 = vadd.xlane.f32.xlu1 %v1017_v32  ;;  %v733_v32 = vmul.f32 %v6259_v61, %v6259_v61  ;;  %v889_v1 = vmul.f32 %v761_v48, %v6385_v21  ;;  %v703_v50 = vmul.f32 %v6114_v42, %v6114_v42  ;;  %v860_v52 = vmul.f32 %v732_v51, %v6255_v59  ;;  %v8356_v59 = vld [vmem:[#allocation88_spill] sm:$0xff] }
 0x107   : >> { %v888_v62 = vmul.f32 %v760_v46, %v6381_v49  ;;  %v673_v47 = vmul.f32 %v8354_v7, %v8354_v7  ;;  %v930_v10 = vadd.f32 %v799_v60, %v798_v54  ;;  %v762_v39 = vmul.f32 %v6389_v44, %v6389_v44  ;;  %v8355_v54 = vld [vmem:[#allocation87_spill] sm:$0xff] }
 0x108   : >> { %v861_v11 = vmul.f32 %v733_v32, %v6259_v61  ;;  %v763_v38 = vmul.f32 %v6393_v2, %v6393_v2  ;;  %v734_v60 = vmul.f32 %v8355_v54, %v8355_v54 }
 0x109   : >> { %1015 = vadd.xlane.f32.xlu0 %v1014_v58  ;;  %v672_v58 = vmul.f32 %v8353_v17, %v8353_v17  ;;  %v1065_v46 = vadd.f32 %v889_v1, %v888_v62  ;;  %v801_v51 = vmul.f32 %v673_v47, %v8354_v7  ;;  %v890_v32 = vmul.f32 %v762_v39, %v6389_v44  ;;  %v8359_v47 = vld [vmem:[#allocation31_spill] sm:$0xff] }
 0x10a   : >> { %976 = vadd.xlane.f32.xlu1 %v975_v34  ;;  %v830_v34 = vmul.f32 %v702_v30, %v6110_v8  ;;  %v891_v61 = vmul.f32 %v763_v38, %v6393_v2  ;;  %v1023_v1 = vadd.f32 %v861_v11, %v860_v52  ;;  %v862_v7 = vmul.f32 %v734_v60, %v8355_v54 }
 0x10b   : >> { %v800_v48 = vmul.f32 %v672_v58, %v8353_v17  ;;  %v674_v39 = vmul.f32 %v8359_v47, %v8359_v47  ;;  %v764_v11 = vmul.f32 %v6397_v20, %v6397_v20 }
 0x10c   : >> { %v1068_v38 = vadd.f32 %v891_v61, %v890_v32  ;;  %v8362_v61 = vld [vmem:[#allocation89_spill] sm:$0xff]  ;;  %v8364_v32 = vld [vmem:[#allocation59_spill] sm:$0xff] }
 0x10d   : >> { %928 = vadd.xlane.f32.xlu0 %v927_v41  ;;  %v831_v41 = vmul.f32 %v703_v50, %v6114_v42  ;;  %v8358_v50 = vld [vmem:[#allocation58_spill] sm:$0xff]  ;;  %v933_v58 = vadd.f32 %v801_v51, %v800_v48  ;;  %v8360_v42 = vld [vmem:[#allocation32_spill] sm:$0xff] }
 0x10e   : >> { %1063 = vadd.xlane.f32.xlu1 %v1062_v25  ;;  %v735_v25 = vmul.f32 %v8356_v59, %v8356_v59  ;;  %v705_v17 = vmul.f32 %v8358_v50, %v8358_v50  ;;  %v8363_v48 = vld [vmem:[#allocation90_spill] sm:$0xff] }
 0x10f   : >> { %v978_v30 = vadd.f32 %v831_v41, %v830_v34  ;;  %v802_v41 = vmul.f32 %v674_v39, %v8359_v47  ;;  %v737_v51 = vmul.f32 %v8363_v48, %v8363_v48 }
 0x110   : >> { %v863_v2 = vmul.f32 %v735_v25, %v8356_v59  ;;  %v833_v52 = vmul.f32 %v705_v17, %v8358_v50  ;;  %v736_v59 = vmul.f32 %v8362_v61, %v8362_v61  ;;  %v706_v25 = vmul.f32 %v8364_v32, %v8364_v32 }
 0x111   : >> { %1021 = vadd.xlane.f32.xlu0 %v1020_v5  ;;  %v8357_v5 = vld [vmem:[#allocation57_spill] sm:$0xff]  ;;  %v865_v47 = vmul.f32 %v737_v51, %v8363_v48  ;;  %v8370_v48 = vld [vmem:[#allocation91_spill] sm:$0xff] }
 0x112   : >> { %v704_v62 = vmul.f32 %v8357_v5, %v8357_v5  ;;  %931 = vadd.xlane.f32.xlu1 %v930_v10  ;;  %v675_v10 = vmul.f32 %v8360_v42, %v8360_v42  ;;  %v1026_v54 = vadd.f32 %v863_v2, %v862_v7  ;;  %v864_v17 = vmul.f32 %v736_v59, %v8362_v61  ;;  %v8366_v2 = vld [vmem:[#allocation33_spill] sm:$0xff] }
 0x113   : >> { %v834_v7 = vmul.f32 %v706_v25, %v8364_v32  ;;  %v738_v51 = vmul.f32 %v8370_v48, %v8370_v48 }
 0x114   : >> { %v832_v44 = vmul.f32 %v704_v62, %v8357_v5  ;;  %v803_v60 = vmul.f32 %v675_v10, %v8360_v42  ;;  %v8365_v5 = vld [vmem:[#allocation60_spill] sm:$0xff]  ;;  %v676_v42 = vmul.f32 %v8366_v2, %v8366_v2  ;;  %v8367_v10 = vld [vmem:[#allocation34_spill] sm:$0xff]  ;;  %v1029_v61 = vadd.f32 %v865_v47, %v864_v17  ;;  %v8374_v47 = vld [vmem:[#allocation35_spill] sm:$0xff] }
 0x115   : >> { %1066 = vadd.xlane.f32.xlu0 %v1065_v46  ;;  %v8361_v46 = vld [vmem:[#allocation118_spill] sm:$0xff]  ;;  %v707_v62 = vmul.f32 %v8365_v5, %v8365_v5  ;;  %v866_v17 = vmul.f32 %v738_v51, %v8370_v48 }
 0x116   : >> { %1024 = vadd.xlane.f32.xlu1 %v1023_v1  ;;  %v765_v34 = vmul.f32 %v8361_v46, %v8361_v46  ;;  %v981_v1 = vadd.f32 %v833_v52, %v832_v44  ;;  %v936_v52 = vadd.f32 %v803_v60, %v802_v41  ;;  %v804_v59 = vmul.f32 %v676_v42, %v8366_v2  ;;  %v8372_v60 = vld [vmem:[#allocation61_spill] sm:$0xff]  ;;  %v8375_v42 = vld [vmem:[#allocation36_spill] sm:$0xff] }
 0x117   : >> { %v835_v39 = vmul.f32 %v707_v62, %v8365_v5  ;;  %v8371_v62 = vld [vmem:[#allocation92_spill] sm:$0xff]  ;;  %v678_v2 = vmul.f32 %v8374_v47, %v8374_v47 }
 0x118   : >> { %v893_v50 = vmul.f32 %v765_v34, %v8361_v46  ;;  %v8369_v46 = vld [vmem:[#allocation120_spill] sm:$0xff] }
 0x119   : >> { %979 = vadd.xlane.f32.xlu0 %v978_v30  ;;  %v892_v30 = vmul.f32 %v764_v11, %v6397_v20  ;;  %v767_v34 = vmul.f32 %v8369_v46, %v8369_v46  ;;  %v984_v32 = vadd.f32 %v835_v39, %v834_v7  ;;  %v679_v7 = vmul.f32 %v8375_v42, %v8375_v42 }
 0x11a   : >> { %934 = vadd.xlane.f32.xlu1 %v933_v58  ;;  %v677_v58 = vmul.f32 %v8367_v10, %v8367_v10 }
 0x11b   : >> { %v1071_v11 = vadd.f32 %v893_v50, %v892_v30  ;;  %v895_v41 = vmul.f32 %v767_v34, %v8369_v46  ;;  %v8373_v30 = vld [vmem:[#allocation62_spill] sm:$0xff]  ;;  %v806_v34 = vmul.f32 %v678_v2, %v8374_v47  ;;  %v807_v48 = vmul.f32 %v679_v7, %v8375_v42  ;;  %v8381_v2 = vld [vmem:[#allocation37_spill] sm:$0xff] }
 0x11c   : >> { %v805_v25 = vmul.f32 %v677_v58, %v8367_v10  ;;  %v709_v50 = vmul.f32 %v8373_v30, %v8373_v30  ;;  %v8376_v58 = vld [vmem:[#allocation121_spill] sm:$0xff]  ;;  %v680_v42 = vmul.f32 %v8381_v2, %v8381_v2 }
 0x11d   : >> { %1069 = vadd.xlane.f32.xlu0 %v1068_v38  ;;  %v8368_v38 = vld [vmem:[#allocation119_spill] sm:$0xff] }
 0x11e   : >> { %v766_v44 = vmul.f32 %v8368_v38, %v8368_v38  ;;  %1027 = vadd.xlane.f32.xlu1 %v1026_v54  ;;  %v739_v54 = vmul.f32 %v8371_v62, %v8371_v62  ;;  %v939_v39 = vadd.f32 %v805_v25, %v804_v59  ;;  %v837_v46 = vmul.f32 %v709_v50, %v8373_v30  ;;  %v8377_v59 = vld [vmem:[#allocation93_spill] sm:$0xff] }
 0x11f   : >> { %v740_v51 = vmul.f32 %v8377_v59, %v8377_v59  ;;  %v942_v50 = vadd.f32 %v807_v48, %v806_v34  ;;  %v8384_v34 = vld [vmem:[#allocation95_spill] sm:$0xff] }
 0x120   : >> { %v894_v5 = vmul.f32 %v766_v44, %v8368_v38  ;;  %v867_v10 = vmul.f32 %v739_v54, %v8371_v62  ;;  %v768_v38 = vmul.f32 %v8376_v58, %v8376_v58  ;;  %v769_v44 = vmul.f32 %v6417_v13, %v6417_v13  ;;  %v8378_v54 = vld [vmem:[#allocation94_spill] sm:$0xff] }
 0x121   : >> { %982 = vadd.xlane.f32.xlu0 %v981_v1  ;;  %v708_v1 = vmul.f32 %v8372_v60, %v8372_v60  ;;  %v868_v47 = vmul.f32 %v740_v51, %v8377_v59  ;;  %v742_v48 = vmul.f32 %v8384_v34, %v8384_v34  ;;  %v8385_v59 = vld [vmem:[#allocation96_spill] sm:$0xff] }
 0x122   : >> { %937 = vadd.xlane.f32.xlu1 %v936_v52  ;;  %v1074_v52 = vadd.f32 %v895_v41, %v894_v5  ;;  %v896_v25 = vmul.f32 %v768_v38, %v8376_v58  ;;  %v897_v62 = vmul.f32 %v769_v44, %v6417_v13  ;;  %v1032_v41 = vadd.f32 %v867_v10, %v866_v17  ;;  %v8382_v44 = vld [vmem:[#allocation38_spill] sm:$0xff]  ;;  %v8383_v10 = vld [vmem:[#allocation123_spill] sm:$0xff] }
 0x123   : >> { %v743_v51 = vmul.f32 %v8385_v59, %v8385_v59 }
 0x124   : >> { %v1077_v7 = vadd.f32 %v897_v62, %v896_v25 }
 0x125   : >> { %1072 = vadd.xlane.f32.xlu0 %v1071_v11  ;;  %v836_v11 = vmul.f32 %v708_v1, %v8372_v60  ;;  %v8380_v1 = vld [vmem:[#allocation64_spill] sm:$0xff] }
 0x126   : >> { %1030 = vadd.xlane.f32.xlu1 %v1029_v61  ;;  %v741_v61 = vmul.f32 %v8378_v54, %v8378_v54  ;;  %v711_v30 = vmul.f32 %v8380_v1, %v8380_v1 }
 0x127   : >> { %v987_v60 = vadd.f32 %v837_v46, %v836_v11  ;;  %v771_v11 = vmul.f32 %v6425_v63, %v6425_v63  ;;  %v808_v46 = vmul.f32 %v680_v42, %v8381_v2  ;;  %v871_v2 = vmul.f32 %v743_v51, %v8385_v59 }
 0x128   : >> { %v869_v58 = vmul.f32 %v741_v61, %v8378_v54  ;;  %v839_v17 = vmul.f32 %v711_v30, %v8380_v1  ;;  %v8386_v54 = vld [vmem:[#allocation65_spill] sm:$0xff]  ;;  %v870_v30 = vmul.f32 %v742_v48, %v8384_v34 }
 0x129   : >> { %985 = vadd.xlane.f32.xlu0 %v984_v32  ;;  %v8379_v32 = vld [vmem:[#allocation63_spill] sm:$0xff]  ;;  %v712_v61 = vmul.f32 %v8386_v54, %v8386_v54  ;;  %v899_v1 = vmul.f32 %v771_v11, %v6425_v63  ;;  %v8391_v48 = vld [vmem:[#allocation97_spill] sm:$0xff] }
 0x12a   : >> { %v710_v5 = vmul.f32 %v8379_v32, %v8379_v32  ;;  %940 = vadd.xlane.f32.xlu1 %v939_v39  ;;  %v681_v39 = vmul.f32 %v8382_v44, %v8382_v44  ;;  %v1035_v25 = vadd.f32 %v869_v58, %v868_v47  ;;  %v8388_v47 = vld [vmem:[#allocation39_spill] sm:$0xff]  ;;  %v1038_v11 = vadd.f32 %v871_v2, %v870_v30  ;;  %v8395_v30 = vld [vmem:[#allocation41_spill] sm:$0xff] }
 0x12b   : >> { %v682_v42 = vmul.f32 %v8388_v47, %v8388_v47  ;;  %v840_v58 = vmul.f32 %v712_v61, %v8386_v54  ;;  %v744_v59 = vmul.f32 %v8391_v48, %v8391_v48  ;;  %v684_v2 = vmul.f32 %v8395_v30, %v8395_v30 }
 0x12c   : >> { %v838_v38 = vmul.f32 %v710_v5, %v8379_v32  ;;  %v809_v62 = vmul.f32 %v681_v39, %v8382_v44  ;;  %v8387_v32 = vld [vmem:[#allocation66_spill] sm:$0xff]  ;;  %v8389_v39 = vld [vmem:[#allocation40_spill] sm:$0xff] }
 0x12d   : >> { %1075 = vadd.xlane.f32.xlu0 %v1074_v52  ;;  %v770_v52 = vmul.f32 %v8383_v10, %v8383_v10  ;;  %v713_v5 = vmul.f32 %v8387_v32, %v8387_v32  ;;  %v810_v34 = vmul.f32 %v682_v42, %v8388_v47  ;;  %v8396_v47 = vld [vmem:[#allocation42_spill] sm:$0xff] }
 0x12e   : >> { %1033 = vadd.xlane.f32.xlu1 %v1032_v41  ;;  %v990_v41 = vadd.f32 %v839_v17, %v838_v38  ;;  %v945_v17 = vadd.f32 %v809_v62, %v808_v46  ;;  %v8393_v62 = vld [vmem:[#allocation67_spill] sm:$0xff]  ;;  %v685_v42 = vmul.f32 %v8396_v47, %v8396_v47 }
 0x12f   : >> { %v841_v44 = vmul.f32 %v713_v5, %v8387_v32  ;;  %v8392_v32 = vld [vmem:[#allocation98_spill] sm:$0xff]  ;;  %v714_v5 = vmul.f32 %v8393_v62, %v8393_v62 }
 0x131   : >> { %988 = vadd.xlane.f32.xlu0 %v987_v60  ;;  %v898_v60 = vmul.f32 %v770_v52, %v8383_v10  ;;  %v773_v52 = vmul.f32 %v6433_v19, %v6433_v19  ;;  %v993_v51 = vadd.f32 %v841_v44, %v840_v58 }
 0x132   : >> { %943 = vadd.xlane.f32.xlu1 %v942_v50  ;;  %v683_v50 = vmul.f32 %v8389_v39, %v8389_v39 }
 0x133   : >> { %v1080_v10 = vadd.f32 %v899_v1, %v898_v60  ;;  %v901_v46 = vmul.f32 %v773_v52, %v6433_v19  ;;  %v872_v1 = vmul.f32 %v744_v59, %v8391_v48  ;;  %v813_v52 = vmul.f32 %v685_v42, %v8396_v47 }
 0x134   : >> { %v811_v54 = vmul.f32 %v683_v50, %v8389_v39  ;;  %v774_v39 = vmul.f32 %v6435_v29, %v6435_v29  ;;  %v775_v50 = vmul.f32 %v6437_v53, %v6437_v53 }
 0x135   : >> { %1078 = vadd.xlane.f32.xlu0 %v1077_v7  ;;  %v8390_v7 = vld [vmem:[#allocation125_spill] sm:$0xff] }
 0x136   : >> { %v772_v38 = vmul.f32 %v8390_v7, %v8390_v7  ;;  %1036 = vadd.xlane.f32.xlu1 %v1035_v25  ;;  %v745_v25 = vmul.f32 %v8392_v32, %v8392_v32  ;;  %v948_v58 = vadd.f32 %v811_v54, %v810_v34  ;;  %v8397_v34 = vld [vmem:[#allocation99_spill] sm:$0xff]  ;;  %v902_v59 = vmul.f32 %v774_v39, %v6435_v29 }
 0x137   : >> { %v746_v48 = vmul.f32 %v8397_v34, %v8397_v34  ;;  %v903_v54 = vmul.f32 %v775_v50, %v6437_v53  ;;  %v8402_v50 = vld [vmem:[#allocation44_spill] sm:$0xff] }
 0x138   : >> { %v900_v61 = vmul.f32 %v772_v38, %v8390_v7  ;;  %v873_v44 = vmul.f32 %v745_v25, %v8392_v32  ;;  %v842_v38 = vmul.f32 %v714_v5, %v8393_v62  ;;  %v8398_v32 = vld [vmem:[#allocation100_spill] sm:$0xff]  ;;  %v8400_v62 = vld [vmem:[#allocation70_spill] sm:$0xff] }
 0x139   : >> { %991 = vadd.xlane.f32.xlu0 %v990_v41  ;;  %v8394_v41 = vld [vmem:[#allocation68_spill] sm:$0xff]  ;;  %v717_v5 = vmul.f32 %v8400_v62, %v8400_v62  ;;  %v1086_v47 = vadd.f32 %v903_v54, %v902_v59  ;;  %v8405_v54 = vld [vmem:[#allocation71_spill] sm:$0xff] }
 0x13a   : >> { %946 = vadd.xlane.f32.xlu1 %v945_v17  ;;  %v715_v60 = vmul.f32 %v8394_v41, %v8394_v41  ;;  %v1083_v7 = vadd.f32 %v901_v46, %v900_v61  ;;  %v1041_v25 = vadd.f32 %v873_v44, %v872_v1  ;;  %v776_v44 = vmul.f32 %v6439_v45, %v6439_v45 }
 0x13b   : >> { %v845_v1 = vmul.f32 %v717_v5, %v8400_v62 }
 0x13c   : >> { %v843_v17 = vmul.f32 %v715_v60, %v8394_v41  ;;  %v874_v60 = vmul.f32 %v746_v48, %v8397_v34 }
 0x13d   : >> { %1081 = vadd.xlane.f32.xlu0 %v1080_v10  ;;  %v812_v10 = vmul.f32 %v684_v2, %v8395_v30  ;;  %v8401_v30 = vld [vmem:[#allocation43_spill] sm:$0xff] }
 0x13e   : >> { %1039 = vadd.xlane.f32.xlu1 %v1038_v11  ;;  %v747_v11 = vmul.f32 %v8398_v32, %v8398_v32  ;;  %v996_v46 = vadd.f32 %v843_v17, %v842_v38  ;;  %v686_v2 = vmul.f32 %v8401_v30, %v8401_v30  ;;  %v8403_v17 = vld [vmem:[#allocation101_spill] sm:$0xff] }
 0x13f   : >> { %v951_v41 = vadd.f32 %v813_v52, %v812_v10  ;;  %v748_v10 = vmul.f32 %v8403_v17, %v8403_v17  ;;  %v8404_v52 = vld [vmem:[#allocation102_spill] sm:$0xff] }
 0x140   : >> { %v875_v42 = vmul.f32 %v747_v11, %v8398_v32  ;;  %v814_v38 = vmul.f32 %v686_v2, %v8401_v30  ;;  %v749_v34 = vmul.f32 %v8404_v52, %v8404_v52  ;;  %v718_v32 = vmul.f32 %v8405_v54, %v8405_v54  ;;  %v8406_v11 = vld [vmem:[#allocation72_spill] sm:$0xff] }
 0x141   : >> { %994 = vadd.xlane.f32.xlu0 %v993_v51  ;;  %v8399_v51 = vld [vmem:[#allocation69_spill] sm:$0xff]  ;;  %v876_v62 = vmul.f32 %v748_v10, %v8403_v17  ;;  %v8409_v17 = vld [vmem:[#allocation103_spill] sm:$0xff] }
 0x142   : >> { %v716_v61 = vmul.f32 %v8399_v51, %v8399_v51  ;;  %949 = vadd.xlane.f32.xlu1 %v948_v58  ;;  %v687_v58 = vmul.f32 %v8402_v50, %v8402_v50  ;;  %v1044_v48 = vadd.f32 %v875_v42, %v874_v60  ;;  %v877_v5 = vmul.f32 %v749_v34, %v8404_v52  ;;  %v8407_v60 = vld [vmem:[#allocation45_spill] sm:$0xff] }
 0x143   : >> { %v688_v30 = vmul.f32 %v8407_v60, %v8407_v60  ;;  %v846_v2 = vmul.f32 %v718_v32, %v8405_v54  ;;  %v750_v10 = vmul.f32 %v8409_v17, %v8409_v17  ;;  %v8410_v32 = vld [vmem:[#allocation104_spill] sm:$0xff] }
 0x144   : >> { %v844_v39 = vmul.f32 %v716_v61, %v8399_v51  ;;  %v815_v59 = vmul.f32 %v687_v58, %v8402_v50  ;;  %v719_v51 = vmul.f32 %v8406_v11, %v8406_v11  ;;  %v8408_v50 = vld [vmem:[#allocation46_spill] sm:$0xff] }
 0x145   : >> { %1084 = vadd.xlane.f32.xlu0 %v1083_v7  ;;  %v777_v7 = vmul.f32 %v6441_v40, %v6441_v40 }
 0x146   : >> { %1042 = vadd.xlane.f32.xlu1 %v1041_v25  ;;  %v999_v61 = vadd.f32 %v845_v1, %v844_v39  ;;  %v904_v25 = vmul.f32 %v776_v44, %v6439_v45  ;;  %v847_v42 = vmul.f32 %v719_v51, %v8406_v11  ;;  %v954_v39 = vadd.f32 %v815_v59, %v814_v38  ;;  %v8411_v59 = vld [vmem:[#allocation73_spill] sm:$0xff]  ;;  %v8412_v51 = vld [vmem:[#allocation74_spill] sm:$0xff] }
 0x147   : >> { %v779_v1 = vmul.f32 %v6445_v4, %v6445_v4  ;;  %v1047_v44 = vadd.f32 %v877_v5, %v876_v62  ;;  %v720_v11 = vmul.f32 %v8411_v59, %v8411_v59  ;;  %v8414_v5 = vld [vmem:[#allocation48_spill] sm:$0xff] }
 0x148   : >> { %v1002_v52 = vadd.f32 %v847_v42, %v846_v2  ;;  %v780_v42 = vmul.f32 %v6447_v18, %v6447_v18 }
 0x149   : >> { %997 = vadd.xlane.f32.xlu0 %v996_v46  ;;  %v905_v46 = vmul.f32 %v777_v7, %v6441_v40  ;;  %v816_v7 = vmul.f32 %v688_v30, %v8407_v60  ;;  %v907_v38 = vmul.f32 %v779_v1, %v6445_v4  ;;  %v691_v60 = vmul.f32 %v8414_v5, %v8414_v5 }
 0x14a   : >> { %952 = vadd.xlane.f32.xlu1 %v951_v41  ;;  %v689_v41 = vmul.f32 %v8408_v50, %v8408_v50 }
 0x14b   : >> { %v1089_v58 = vadd.f32 %v905_v46, %v904_v25  ;;  %v878_v25 = vmul.f32 %v750_v10, %v8409_v17  ;;  %v8413_v46 = vld [vmem:[#allocation47_spill] sm:$0xff]  ;;  %v819_v1 = vmul.f32 %v691_v60, %v8414_v5  ;;  %v908_v10 = vmul.f32 %v780_v42, %v6447_v18 }
 0x14c   : >> { %v817_v34 = vmul.f32 %v689_v41, %v8408_v50  ;;  %v690_v62 = vmul.f32 %v8413_v46, %v8413_v46  ;;  %v781_v50 = vmul.f32 %v6449_v16, %v6449_v16 }
 0x14d   : >> { %1087 = vadd.xlane.f32.xlu0 %v1086_v47  ;;  %v778_v47 = vmul.f32 %v6443_v36, %v6443_v36 }
 0x14e   : >> { %1045 = vadd.xlane.f32.xlu1 %v1044_v48  ;;  %v751_v48 = vmul.f32 %v8410_v32, %v8410_v32  ;;  %v957_v30 = vadd.f32 %v817_v34, %v816_v7  ;;  %v8415_v7 = vld [vmem:[#allocation105_spill] sm:$0xff]  ;;  %v909_v34 = vmul.f32 %v781_v50, %v6449_v16  ;;  %v8420_v50 = vld [vmem:[#allocation50_spill] sm:$0xff] }
 0x14f   : >> { %v906_v54 = vmul.f32 %v778_v47, %v6443_v36  ;;  %v848_v47 = vmul.f32 %v720_v11, %v8411_v59  ;;  %v752_v17 = vmul.f32 %v8415_v7, %v8415_v7  ;;  %v8418_v59 = vld [vmem:[#allocation76_spill] sm:$0xff]  ;;  %v8428_v16 = vld [vmem:[#allocation110_spill] sm:$0xff] }
 0x150   : >> { %v879_v2 = vmul.f32 %v751_v48, %v8410_v32  ;;  %v8416_v32 = vld [vmem:[#allocation106_spill] sm:$0xff]  ;;  %v723_v11 = vmul.f32 %v8418_v59, %v8418_v59  ;;  %v1095_v5 = vadd.f32 %v909_v34, %v908_v10 }
 0x151   : >> { %1000 = vadd.xlane.f32.xlu0 %v999_v61  ;;  %v721_v61 = vmul.f32 %v8412_v51, %v8412_v51  ;;  %v1092_v41 = vadd.f32 %v907_v38, %v906_v54 }
 0x152   : >> { %955 = vadd.xlane.f32.xlu1 %v954_v39  ;;  %v1050_v48 = vadd.f32 %v879_v2, %v878_v25  ;;  %v851_v25 = vmul.f32 %v723_v11, %v8418_v59  ;;  %v8421_v2 = vld [vmem:[#allocation135_spill] sm:$0xff] }
 0x153   : >> { %v849_v39 = vmul.f32 %v721_v61, %v8412_v51  ;;  %v880_v61 = vmul.f32 %v752_v17, %v8415_v7  ;;  %v8424_v17 = vld [vmem:[#allocation108_spill] sm:$0xff] }
 0x154   : >> { %v755_v10 = vmul.f32 %v8424_v17, %v8424_v17 }
 0x155   : >> { %1090 = vadd.xlane.f32.xlu0 %v1089_v58  ;;  %v818_v58 = vmul.f32 %v690_v62, %v8413_v46  ;;  %v1005_v38 = vadd.f32 %v849_v39, %v848_v47  ;;  %v8419_v46 = vld [vmem:[#allocation49_spill] sm:$0xff]  ;;  %v8422_v47 = vld [vmem:[#allocation136_spill] sm:$0xff] }
 0x156   : >> { %1048 = vadd.xlane.f32.xlu1 %v1047_v44  ;;  %v753_v44 = vmul.f32 %v8416_v32, %v8416_v32  ;;  %v692_v62 = vmul.f32 %v8419_v46, %v8419_v46  ;;  %v783_v39 = vmul.f32 %v8422_v47, %v8422_v47 }
 0x157   : >> { %v960_v51 = vadd.f32 %v819_v1, %v818_v58  ;;  %v8423_v1 = vld [vmem:[#allocation107_spill] sm:$0xff] }
 0x158   : >> { %v881_v60 = vmul.f32 %v753_v44, %v8416_v32  ;;  %v820_v58 = vmul.f32 %v692_v62, %v8419_v46  ;;  %v754_v7 = vmul.f32 %v8423_v1, %v8423_v1  ;;  %v8425_v44 = vld [vmem:[#allocation77_spill] sm:$0xff]  ;;  %v911_v11 = vmul.f32 %v783_v39, %v8422_v47 }
 0x159   : >> { %1003 = vadd.xlane.f32.xlu0 %v1002_v52  ;;  %v8417_v52 = vld [vmem:[#allocation75_spill] sm:$0xff]  ;;  %v883_v62 = vmul.f32 %v755_v10, %v8424_v17 }
 0x15a   : >> { %v722_v54 = vmul.f32 %v8417_v52, %v8417_v52  ;;  %958 = vadd.xlane.f32.xlu1 %v957_v30  ;;  %v693_v30 = vmul.f32 %v8420_v50, %v8420_v50  ;;  %v1053_v34 = vadd.f32 %v881_v60, %v880_v61  ;;  %v882_v46 = vmul.f32 %v754_v7, %v8423_v1  ;;  %v8427_v61 = vld [vmem:[#allocation109_spill] sm:$0xff]  ;;  %v8431_v7 = vld [vmem:[#allocation139_spill] sm:$0xff] }
 0x15b   : >> { %v756_v60 = vmul.f32 %v8427_v61, %v8427_v61  ;;  %v786_v17 = vmul.f32 %v8431_v7, %v8431_v7 }
 0x15c   : >> { %v850_v42 = vmul.f32 %v722_v54, %v8417_v52  ;;  %v821_v32 = vmul.f32 %v693_v30, %v8420_v50  ;;  %v724_v52 = vmul.f32 %v8425_v44, %v8425_v44  ;;  %v8426_v54 = vld [vmem:[#allocation78_spill] sm:$0xff]  ;;  %v1056_v39 = vadd.f32 %v883_v62, %v882_v46 }
 0x15d   : >> { %1093 = vadd.xlane.f32.xlu0 %v1092_v41  ;;  %v782_v41 = vmul.f32 %v8421_v2, %v8421_v2  ;;  %v884_v1 = vmul.f32 %v756_v60, %v8427_v61  ;;  %v914_v46 = vmul.f32 %v786_v17, %v8431_v7 }
 0x15e   : >> { %1051 = vadd.xlane.f32.xlu1 %v1050_v48  ;;  %v725_v48 = vmul.f32 %v8426_v54, %v8426_v54  ;;  %v852_v50 = vmul.f32 %v724_v52, %v8425_v44 }
 0x15f   : >> { %v910_v59 = vmul.f32 %v782_v41, %v8421_v2  ;;  %v8430_v41 = vld [vmem:[#allocation138_spill] sm:$0xff] }
 0x160   : >> { %v853_v30 = vmul.f32 %v725_v48, %v8426_v54  ;;  %v785_v47 = vmul.f32 %v8430_v41, %v8430_v41  ;;  %v8432_v54 = vld [vmem:[#allocation140_spill] sm:$0xff] }
 0x161   : >> { %1006 = vadd.xlane.f32.xlu0 %v1005_v38  ;;  %v1008_v38 = vadd.f32 %v851_v25, %v850_v42  ;;  %v963_v25 = vadd.f32 %v821_v32, %v820_v58  ;;  %v1098_v2 = vadd.f32 %v911_v11, %v910_v59  ;;  %v8433_v32 = vld [vmem:[#allocation141_spill] sm:$0xff] }
 0x162   : >> { %961 = vadd.xlane.f32.xlu1 %v960_v51  ;;  %v757_v51 = vmul.f32 %v8428_v16, %v8428_v16  ;;  %v1011_v10 = vadd.f32 %v853_v30, %v852_v50  ;;  %v913_v58 = vmul.f32 %v785_v47, %v8430_v41  ;;  %v788_v48 = vmul.f32 %v8433_v32, %v8433_v32 }
 0x164   : >> { %v885_v44 = vmul.f32 %v757_v51, %v8428_v16  ;;  %v916_v61 = vmul.f32 %v788_v48, %v8433_v32  ;;  %v6854_v32 = vstv %s5643_s11 }
 0x165   : >> { %1096 = vadd.xlane.f32.xlu0 %v1095_v5  ;;  %v8429_v5 = vld [vmem:[#allocation137_spill] sm:$0xff] }
 0x166   : >> { %v784_v42 = vmul.f32 %v8429_v5, %v8429_v5  ;;  %1054 = vadd.xlane.f32.xlu1 %v1053_v34  ;;  %v787_v34 = vmul.f32 %v8432_v54, %v8432_v54  ;;  %v1059_v11 = vadd.f32 %v885_v44, %v884_v1 }
 0x168   : >> { %v912_v52 = vmul.f32 %v784_v42, %v8429_v5  ;;  %v915_v16 = vmul.f32 %v787_v34, %v8432_v54 }
 0x169   : >> { %1009 = vadd.xlane.f32.xlu0 %v1008_v38  ;;  %v8434_v38 = vld [vmem:[#allocation142_spill] sm:$0xff] }
 0x16a   : >> { %964 = vadd.xlane.f32.xlu1 %v963_v25  ;;  %v789_v59 = vmul.f32 %v8434_v38, %v8434_v38  ;;  %v1101_v62 = vadd.f32 %v913_v58, %v912_v52  ;;  %v1104_v50 = vadd.f32 %v915_v16, %v914_v46 }
 0x16c   : >> { %v917_v60 = vmul.f32 %v789_v59, %v8434_v38 }
 0x16d   : >> { %1099 = vadd.xlane.f32.xlu0 %v1098_v2 }
 0x16e   : >> { %1057 = vadd.xlane.f32.xlu1 %v1056_v39  ;;  %v1107_v30 = vadd.f32 %v917_v60, %v916_v61 }
 0x171   : >> { %1012 = vadd.xlane.f32.xlu0 %v1011_v10 }
 0x172   : >> { %1060 = vadd.xlane.f32.xlu1 %v1059_v11 }
 0x175   : >> { %1102 = vadd.xlane.f32.xlu0 %v1101_v62 }
 0x176   : >> { %1108 = vadd.xlane.f32.xlu1 %v1107_v30 }
 0x179   : >> { %1105 = vadd.xlane.f32.xlu0 %v1104_v50 }
 0x183   : >> { %v968_v51 = vpop.xlane.xlu1 %967 }
 0x184   : >> { %v1126_v42 = vmul.f32 0.00390625, %v968_v51 }
 0x186   : >> { %v920_v5 = vpop.xlane.xlu0 %919  ;;  %4210 = vlog2.f32 %v1126_v42 }
 0x187   : >> { %v1110_v25 = vmul.f32 0.00390625, %v920_v5  ;;  %v971_v2 = vpop.xlane.xlu1 %970 }
 0x188   : >> { %v1127_v47 = vmul.f32 0.00390625, %v971_v2 }
 0x189   : >> { %4212 = vlog2.f32 %v1110_v25 }
 0x18a   : >> { %v923_v41 = vpop.xlane.xlu0 %922  ;;  %4214 = vlog2.f32 %v1127_v47 }
 0x18b   : >> { %v1111_v39 = vmul.f32 0.00390625, %v923_v41  ;;  %v974_v1 = vpop.xlane.xlu1 %973 }
 0x18c   : >> { %v1128_v17 = vmul.f32 0.00390625, %v974_v1 }
 0x18d   : >> { %4216 = vlog2.f32 %v1111_v39 }
 0x18e   : >> { %v926_v7 = vpop.xlane.xlu0 %925  ;;  %4218 = vlog2.f32 %v1128_v17  ;;  %v1559_v17 = vlaneseq }
 0x18f   : >> { %v1112_v10 = vmul.f32 0.00390625, %v926_v7  ;;  %v1019_v44 = vpop.xlane.xlu1 %1018 }
 0x190   : >> { %v1143_v54 = vmul.f32 0.00390625, %v1019_v44 }
 0x191   : >> { %4220 = vlog2.f32 %v1112_v10 }
 0x192   : >> { %v1016_v52 = vpop.xlane.xlu0 %1015  ;;  %4222 = vlog2.f32 %v1143_v54 }
 0x193   : >> { %v1142_v34 = vmul.f32 0.00390625, %v1016_v52  ;;  %v4211_v58 = vpop.eup %4210  ;;  %v977_v48 = vpop.xlane.xlu1 %976 }
 0x194   : >> { %v1207_v11 = vmul.f32 0.6931472, %v4211_v58  ;;  %v1129_v46 = vmul.f32 0.00390625, %v977_v48 }
 0x195   : >> { %4224 = vlog2.f32 %v1142_v34 }
 0x196   : >> { %v929_v38 = vpop.xlane.xlu0 %928  ;;  %v4213_v59 = vpop.eup %4212  ;;  %v1319_v61 = vmul.f32 %v6854_v32, %v1207_v11  ;;  %4226 = vlog2.f32 %v1129_v46 }
 0x197   : >> { %v1113_v16 = vmul.f32 0.00390625, %v929_v38  ;;  %v1175_v62 = vmul.f32 0.6931472, %v4213_v59  ;;  %v4215_v60 = vpop.eup %4214  ;;  %v1064_v30 = vpop.xlane.xlu1 %1063 }
 0x198   : >> { %v1399_v42 = vmul.f32 1.442695, %v1319_v61  ;;  %v1209_v25 = vmul.f32 0.6931472, %v4215_v60  ;;  %v1158_v2 = vmul.f32 0.00390625, %v1064_v30 }
 0x199   : >> { %v1303_v50 = vmul.f32 %v6854_v32, %v1175_v62  ;;  %4228 = vlog2.f32 %v1113_v16  ;;  %v6861_v62 = vand.u32 127, %v1559_v17 }
 0x19a   : >> { %v1022_v51 = vpop.xlane.xlu0 %1021  ;;  %v4217_v5 = vpop.eup %4216  ;;  %4230 = vpow2.f32 %v1399_v42  ;;  %v1320_v1 = vmul.f32 %v6854_v32, %v1209_v25 }
 0x19b   : >> { %v1367_v41 = vmul.f32 1.442695, %v1303_v50  ;;  %v1177_v47 = vmul.f32 0.6931472, %v4217_v5  ;;  %v1144_v39 = vmul.f32 0.00390625, %v1022_v51  ;;  %v4219_v7 = vpop.eup %4218  ;;  %v932_v44 = vpop.xlane.xlu1 %931  ;;  %v1621_v49 = vadd.s32 4294967224, %v6861_v62 }
 0x19c   : >> { %v1401_v34 = vmul.f32 1.442695, %v1320_v1  ;;  %v1211_v58 = vmul.f32 0.6931472, %v4219_v7  ;;  %v1114_v48 = vmul.f32 0.00390625, %v932_v44 }
 0x19d   : >> { %4232 = vpow2.f32 %v1367_v41  ;;  %v1304_v10 = vmul.f32 %v6854_v32, %v1177_v47  ;;  %v6864_v47 = vshrl.u32 %v1559_v17, 7 }
 0x19e   : >> { %v1067_v52 = vpop.xlane.xlu0 %1066  ;;  %v4221_v54 = vpop.eup %4220  ;;  %4234 = vlog2.f32 %v1158_v2  ;;  %v1321_v46 = vmul.f32 %v6854_v32, %v1211_v58 }
 0x19f   : >> { %v1369_v38 = vmul.f32 1.442695, %v1304_v10  ;;  %v1179_v59 = vmul.f32 0.6931472, %v4221_v54  ;;  %4236 = vlog2.f32 %v1144_v39  ;;  %v1159_v11 = vmul.f32 0.00390625, %v1067_v52  ;;  %v4223_v16 = vpop.eup %4222  ;;  %v1025_v60 = vpop.xlane.xlu1 %1024 }
 0x1a0   : >> { %4238 = vpow2.f32 %v1401_v34  ;;  %v1403_v51 = vmul.f32 1.442695, %v1321_v46  ;;  %v1241_v5 = vmul.f32 0.6931472, %v4223_v16  ;;  %v1145_v42 = vmul.f32 0.00390625, %v1025_v60 }
 0x1a1   : >> { %4240 = vpow2.f32 %v1369_v38  ;;  %v1305_v61 = vmul.f32 %v6854_v32, %v1179_v59  ;;  %v1565_v39 = vadd.s32 4294967288, %v6861_v62  ;;  %v1572_v10 = vadd.s32 4294967280, %v6861_v62 }
 0x1a2   : >> { %v980_v50 = vpop.xlane.xlu0 %979  ;;  %v4225_v30 = vpop.eup %4224  ;;  %4242 = vlog2.f32 %v1114_v48  ;;  %v1336_v1 = vmul.f32 %v6854_v32, %v1241_v5  ;;  %v1579_v52 = vadd.s32 4294967272, %v6861_v62  ;;  %v7034_v6 = vsub.s32 %v1621_v49, %v6864_v47 }
 0x1a3   : >> { %v1371_v25 = vmul.f32 1.442695, %v1305_v61  ;;  %v1239_v2 = vmul.f32 0.6931472, %v4225_v30  ;;  %4244 = vlog2.f32 %v1159_v11  ;;  %v1130_v41 = vmul.f32 0.00390625, %v980_v50  ;;  %v4227_v7 = vpop.eup %4226  ;;  %v935_v54 = vpop.xlane.xlu1 %934 }
 0x1a4   : >> { %4246 = vpow2.f32 %v1403_v51  ;;  %v1433_v48 = vmul.f32 1.442695, %v1336_v1  ;;  %v1213_v38 = vmul.f32 0.6931472, %v4227_v7  ;;  %v1115_v17 = vmul.f32 0.00390625, %v935_v54 }
 0x1a5   : >> { %4248 = vpow2.f32 %v1371_v25  ;;  %v1335_v44 = vmul.f32 %v6854_v32, %v1239_v2  ;;  %v1586_v61 = vadd.s32 4294967264, %v6861_v62  ;;  %v6875_v50 = vsub.s32 %v6861_v62, %v6864_v47 }
 0x1a6   : >> { %v1070_v34 = vpop.xlane.xlu0 %1069  ;;  %v4229_v58 = vpop.eup %4228  ;;  %4250 = vlog2.f32 %v1145_v42  ;;  %v1322_v16 = vmul.f32 %v6854_v32, %v1213_v38  ;;  %v6878_v30 = vsub.s32 %v1565_v39, %v6864_v47  ;;  %v6882_v2 = vsub.s32 %v1572_v10, %v6864_v47 }
 0x1a7   : >> { %v1431_v59 = vmul.f32 1.442695, %v1335_v44  ;;  %v1181_v11 = vmul.f32 0.6931472, %v4229_v58  ;;  %4252 = vlog2.f32 %v1130_v41  ;;  %v1160_v46 = vmul.f32 0.00390625, %v1070_v34  ;;  %v4231_v60 = vpop.eup %4230  ;;  %v1028_v5 = vpop.xlane.xlu1 %1027 }
 0x1a8   : >> { %4254 = vpow2.f32 %v1433_v48  ;;  %v1405_v41 = vmul.f32 1.442695, %v1322_v16  ;;  %v1146_v1 = vmul.f32 0.00390625, %v1028_v5  ;;  %v6885_v44 = vsub.s32 %v1579_v52, %v6864_v47 }
 0x1a9   : >> { %4256 = vpow2.f32 %v1431_v59  ;;  %v1306_v51 = vmul.f32 %v6854_v32, %v1181_v11  ;;  %v6888_v48 = vsub.s32 %v1586_v61, %v6864_v47  ;;  %v6891_v38 = vadd.s32 4294967256, %v6861_v62 }
 0x1aa   : >> { %v983_v42 = vpop.xlane.xlu0 %982  ;;  %v4233_v25 = vpop.eup %4232  ;;  %4258 = vlog2.f32 %v1115_v17  ;;  %v1673_v17 = vrot.slane %v4231_v60, %v6875_v50 }
 0x1ab   : >> { %v4235_v7 = vpop.eup %4234  ;;  %v1373_v54 = vmul.f32 1.442695, %v1306_v51  ;;  %4260 = vlog2.f32 %v1160_v46  ;;  %v1131_v39 = vmul.f32 0.00390625, %v983_v42  ;;  %v1564_v59 = vrot.slane %v4233_v25, %v6875_v50  ;;  %v938_v11 = vpop.xlane.xlu1 %937 }
 0x1ac   : >> { %v4237_v34 = vpop.eup %4236  ;;  %4262 = vpow2.f32 %v1405_v41  ;;  %v1271_v58 = vmul.f32 0.6931472, %v4235_v7  ;;  %v1116_v61 = vmul.f32 0.00390625, %v938_v11 }
 0x1ad   : >> { %v4239_v10 = vpop.eup %4238  ;;  %4264 = vpow2.f32 %v1373_v54  ;;  %v1243_v52 = vmul.f32 0.6931472, %v4237_v34 }
 0x1ae   : >> { %v1073_v16 = vpop.xlane.xlu0 %1072  ;;  %v4241_v46 = vpop.eup %4240  ;;  %v1677_v51 = vrot.slane %v4239_v10, %v6878_v30  ;;  %v1351_v5 = vmul.f32 %v6854_v32, %v1271_v58  ;;  %4266 = vlog2.f32 %v1146_v1 }
 0x1af   : >> { %v4243_v42 = vpop.eup %4242  ;;  %v1569_v41 = vrot.slane %v4241_v46, %v6878_v30  ;;  %v1337_v7 = vmul.f32 %v6854_v32, %v1243_v52  ;;  %4268 = vlog2.f32 %v1131_v39  ;;  %v1161_v60 = vmul.f32 0.00390625, %v1073_v16  ;;  %v1031_v11 = vpop.xlane.xlu1 %1030 }
 0x1b0   : >> { %v4245_v18 = vpop.eup %4244  ;;  %v1678_v25 = vsel %vm1570_vm0, %v1677_v51, %v1673_v17  ;;  %v1463_v54 = vmul.f32 1.442695, %v1351_v5  ;;  %v1183_v34 = vmul.f32 0.6931472, %v4243_v42  ;;  %4270 = vlog2.f32 %v1116_v61 }
 0x1b1   : >> { %v4247_v4 = vpop.eup %4246  ;;  %v1571_v10 = vsel %vm1570_vm0, %v1569_v41, %v1564_v59  ;;  %v1435_v58 = vmul.f32 1.442695, %v1337_v7  ;;  %v1273_v1 = vmul.f32 0.6931472, %v4245_v18  ;;  %4272 = vlog2.f32 %v1161_v60 }
 0x1b2   : >> { %v986_v36 = vpop.xlane.xlu0 %985  ;;  %v4249_v46 = vpop.eup %4248  ;;  %v1682_v52 = vrot.slane %v4247_v4, %v6882_v2  ;;  %4274 = vpow2.f32 %v1463_v54  ;;  %v1307_v39 = vmul.f32 %v6854_v32, %v1183_v34  ;;  %v1147_v16 = vmul.f32 0.00390625, %v1031_v11 }
 0x1b3   : >> { %v4251_v17 = vpop.eup %4250  ;;  %v1576_v51 = vrot.slane %v4249_v46, %v6882_v2  ;;  %4276 = vpow2.f32 %v1435_v58  ;;  %v1352_v5 = vmul.f32 %v6854_v32, %v1273_v1  ;;  %v1132_v59 = vmul.f32 0.00390625, %v986_v36  ;;  %v941_v34 = vpop.xlane.xlu1 %940 }
 0x1b4   : >> { %v4253_v61 = vpop.eup %4252  ;;  %v1683_v18 = vsel %vm1577_vm1, %v1682_v52, %v1678_v25  ;;  %v1375_v42 = vmul.f32 1.442695, %v1307_v39  ;;  %v1245_v41 = vmul.f32 0.6931472, %v4251_v17  ;;  %4278 = vlog2.f32 %v1147_v16 }
 0x1b5   : >> { %v4255_v7 = vpop.eup %4254  ;;  %v1578_v4 = vsel %vm1577_vm1, %v1576_v51, %v1571_v10  ;;  %v1465_v60 = vmul.f32 1.442695, %v1352_v5  ;;  %v1215_v54 = vmul.f32 0.6931472, %v4253_v61  ;;  %4280 = vlog2.f32 %v1132_v59 }
 0x1b6   : >> { %v1076_v11 = vpop.xlane.xlu0 %1075  ;;  %v4257_v40 = vpop.eup %4256  ;;  %v1756_v58 = vrot.slane %v4255_v7, %v6878_v30  ;;  %4282 = vpow2.f32 %v1375_v42  ;;  %v1338_v36 = vmul.f32 %v6854_v32, %v1245_v41  ;;  %v1117_v1 = vmul.f32 0.00390625, %v941_v34 }
 0x1b7   : >> { %v4259_v46 = vpop.eup %4258  ;;  %v1752_v25 = vrot.slane %v4257_v40, %v6875_v50  ;;  %4284 = vpow2.f32 %v1465_v60  ;;  %v1323_v52 = vmul.f32 %v6854_v32, %v1215_v54  ;;  %v1162_v39 = vmul.f32 0.00390625, %v1076_v11  ;;  %v1034_v41 = vpop.xlane.xlu1 %1033 }
 0x1b8   : >> { %v4261_v10 = vpop.eup %4260  ;;  %v1437_v16 = vmul.f32 1.442695, %v1338_v36  ;;  %v6913_v17 = vsub.s32 %v6891_v38, %v6864_v47  ;;  %v1185_v51 = vmul.f32 0.6931472, %v4259_v46  ;;  %4286 = vlog2.f32 %v1117_v1 }
 0x1b9   : >> { %v4263_v5 = vpop.eup %4262  ;;  %v1757_v59 = vsel %vm1570_vm0, %v1756_v58, %v1752_v25  ;;  %v1407_v61 = vmul.f32 1.442695, %v1323_v52  ;;  %v1275_v42 = vmul.f32 0.6931472, %v4261_v10  ;;  %4288 = vlog2.f32 %v1162_v39 }
 0x1ba   : >> { %v989_v40 = vpop.xlane.xlu0 %988  ;;  %v4265_v7 = vpop.eup %4264  ;;  %v1687_v60 = vrot.slane %v4263_v5, %v6885_v44  ;;  %4290 = vpow2.f32 %v1437_v16  ;;  %v1308_v54 = vmul.f32 %v6854_v32, %v1185_v51  ;;  %v1148_v34 = vmul.f32 0.00390625, %v1034_v41 }
 0x1bb   : >> { %v4267_v11 = vpop.eup %4266  ;;  %v1583_v38 = vrot.slane %v4265_v7, %v6885_v44  ;;  %4292 = vpow2.f32 %v1407_v61  ;;  %v1353_v36 = vmul.f32 %v6854_v32, %v1275_v42  ;;  %v1133_v58 = vmul.f32 0.00390625, %v989_v40  ;;  %v944_v5 = vpop.xlane.xlu1 %943 }
 0x1bc   : >> { %v4269_v1 = vpop.eup %4268  ;;  %v6921_v46 = vsel %vm1584_vm2, %v1687_v60, %v1683_v18  ;;  %v1377_v25 = vmul.f32 1.442695, %v1308_v54  ;;  %v1247_v52 = vmul.f32 0.6931472, %v4267_v11  ;;  %4294 = vlog2.f32 %v1148_v34 }
 0x1bd   : >> { %v4271_v39 = vpop.eup %4270  ;;  %v1585_v10 = vsel %vm1584_vm2, %v1583_v38, %v1578_v4  ;;  %v1467_v16 = vmul.f32 1.442695, %v1353_v36  ;;  %v1217_v51 = vmul.f32 0.6931472, %v4269_v1  ;;  %4296 = vlog2.f32 %v1133_v58 }
 0x1be   : >> { %v1079_v41 = vpop.xlane.xlu0 %1078  ;;  %v4273_v7 = vpop.eup %4272  ;;  %4298 = vpow2.f32 %v1377_v25  ;;  %v1339_v61 = vmul.f32 %v6854_v32, %v1247_v52  ;;  %v1187_v42 = vmul.f32 0.6931472, %v4271_v39  ;;  %v1118_v40 = vmul.f32 0.00390625, %v944_v5 }
 0x1bf   : >> { %v4275_v45 = vpop.eup %4274  ;;  %4300 = vpow2.f32 %v1467_v16  ;;  %v1324_v18 = vmul.f32 %v6854_v32, %v1217_v51  ;;  %v1277_v60 = vmul.f32 0.6931472, %v4273_v7  ;;  %v1163_v54 = vmul.f32 0.00390625, %v1079_v41  ;;  %v1037_v52 = vpop.xlane.xlu1 %1036 }
 0x1c0   : >> { %v4277_v34 = vpop.eup %4276  ;;  %v1439_v11 = vmul.f32 1.442695, %v1339_v61  ;;  %v6927_v4 = vadd.s32 4294967248, %v6861_v62  ;;  %v1309_v38 = vmul.f32 %v6854_v32, %v1187_v42  ;;  %4302 = vlog2.f32 %v1118_v40 }
 0x1c1   : >> { %v4279_v36 = vpop.eup %4278  ;;  %v1761_v58 = vrot.slane %v4277_v34, %v6882_v2  ;;  %v1409_v1 = vmul.f32 1.442695, %v1324_v18  ;;  %v1354_v25 = vmul.f32 %v6854_v32, %v1277_v60  ;;  %4304 = vlog2.f32 %v1163_v54 }
 0x1c2   : >> { %v992_v39 = vpop.xlane.xlu0 %991  ;;  %v4281_v16 = vpop.eup %4280  ;;  %4306 = vpow2.f32 %v1439_v11  ;;  %v1379_v51 = vmul.f32 1.442695, %v1309_v38  ;;  %v1249_v5 = vmul.f32 0.6931472, %v4279_v36  ;;  %v1149_v41 = vmul.f32 0.00390625, %v1037_v52 }
 0x1c3   : >> { %v4283_v7 = vpop.eup %4282  ;;  %v1762_v61 = vsel %vm1577_vm1, %v1761_v58, %v1757_v59  ;;  %4308 = vpow2.f32 %v1409_v1  ;;  %v1469_v42 = vmul.f32 1.442695, %v1354_v25  ;;  %v1219_v40 = vmul.f32 0.6931472, %v4281_v16  ;;  %v947_v59 = vpop.xlane.xlu1 %946 }
 0x1c4   : >> { %v4285_v53 = vpop.eup %4284  ;;  %v1590_v18 = vrot.slane %v4283_v7, %v6888_v48  ;;  %4310 = vpow2.f32 %v1379_v51  ;;  %v1340_v60 = vmul.f32 %v6854_v32, %v1249_v5  ;;  %v1134_v54 = vmul.f32 0.00390625, %v992_v39 }
 0x1c5   : >> { %v4287_v34 = vpop.eup %4286  ;;  %v1831_v11 = vrot.slane %v4275_v45, %v6875_v50  ;;  %v1835_v38 = vrot.slane %v4285_v53, %v6878_v30  ;;  %4312 = vpow2.f32 %v1469_v42  ;;  %v1325_v36 = vmul.f32 %v6854_v32, %v1219_v40 }
 0x1c6   : >> { %v1082_v58 = vpop.xlane.xlu0 %1081  ;;  %v4289_v1 = vpop.eup %4288  ;;  %v1592_v25 = vsel %vm1591_vm3, %v1590_v18, %v1585_v10  ;;  %v1441_v52 = vmul.f32 1.442695, %v1340_v60  ;;  %v1189_v16 = vmul.f32 0.6931472, %v4287_v34  ;;  %4314 = vlog2.f32 %v1149_v41 }
 0x1c7   : >> { %v4291_v51 = vpop.eup %4290  ;;  %v1836_v5 = vsel %vm1570_vm0, %v1835_v38, %v1831_v11  ;;  %v1411_v39 = vmul.f32 1.442695, %v1325_v36  ;;  %v1279_v7 = vmul.f32 0.6931472, %v4289_v1  ;;  %4316 = vlog2.f32 %v1134_v54  ;;  %v1040_v18 = vpop.xlane.xlu1 %1039 }
 0x1c8   : >> { %v4293_v45 = vpop.eup %4292  ;;  %v1766_v53 = vrot.slane %v4291_v51, %v6885_v44  ;;  %4318 = vpow2.f32 %v1441_v52  ;;  %v1310_v50 = vmul.f32 %v6854_v32, %v1189_v16  ;;  %v1119_v30 = vmul.f32 0.00390625, %v947_v59 }
 0x1c9   : >> { %v4295_v42 = vpop.eup %4294  ;;  %v1692_v40 = vrot.slane %v4293_v45, %v6888_v48  ;;  %4320 = vpow2.f32 %v1411_v39  ;;  %v1355_v10 = vmul.f32 %v6854_v32, %v1279_v7  ;;  %v1164_v41 = vmul.f32 0.00390625, %v1082_v58 }
 0x1ca   : >> { %v995_v60 = vpop.xlane.xlu0 %994  ;;  %v4297_v34 = vpop.eup %4296  ;;  %v1767_v11 = vsel %vm1584_vm2, %v1766_v53, %v1762_v61  ;;  %v1381_v54 = vmul.f32 1.442695, %v1310_v50  ;;  %v1251_v38 = vmul.f32 0.6931472, %v4295_v42  ;;  %4322 = vlog2.f32 %v1119_v30 }
 0x1cb   : >> { %v4299_v36 = vpop.eup %4298  ;;  %v1693_v1 = vsel %vm1591_vm3, %v1692_v40, %v6921_v46  ;;  %v1471_v59 = vmul.f32 1.442695, %v1355_v10  ;;  %v1221_v52 = vmul.f32 0.6931472, %v4297_v34  ;;  %4324 = vlog2.f32 %v1164_v41  ;;  %v950_v53 = vpop.xlane.xlu1 %949 }
 0x1cc   : >> { %v4301_v16 = vpop.eup %4300  ;;  %v1597_v51 = vrot.slane %v4299_v36, %v6913_v17  ;;  %4326 = vpow2.f32 %v1381_v54  ;;  %v1150_v58 = vmul.f32 0.00390625, %v1040_v18  ;;  %v1341_v61 = vmul.f32 %v6854_v32, %v1251_v38 }
 0x1cd   : >> { %v4303_v39 = vpop.eup %4302  ;;  %v1840_v7 = vrot.slane %v4301_v16, %v6882_v2  ;;  %4328 = vpow2.f32 %v1471_v59  ;;  %v1135_v45 = vmul.f32 0.00390625, %v995_v60  ;;  %v6953_v42 = vsub.s32 %v6927_v4, %v6864_v47 }
 0x1ce   : >> { %v1085_v50 = vpop.xlane.xlu0 %1084  ;;  %v4305_v30 = vpop.eup %4304  ;;  %v1599_v46 = vsel %vm1598_vm4, %v1597_v51, %v1592_v25  ;;  %v1607_v40 = vadd.s32 4294967240, %v6861_v62  ;;  %4330 = vlog2.f32 %v1150_v58  ;;  %v1326_v2 = vmul.f32 %v6854_v32, %v1221_v52 }
 0x1cf   : >> { %v4307_v10 = vpop.eup %4306  ;;  %v1841_v41 = vsel %vm1577_vm1, %v1840_v7, %v1836_v5  ;;  %4332 = vlog2.f32 %v1135_v45  ;;  %v1191_v34 = vmul.f32 0.6931472, %v4303_v39  ;;  %v1120_v54 = vmul.f32 0.00390625, %v950_v53  ;;  %v1043_v16 = vpop.xlane.xlu1 %1042 }
 0x1d0   : >> { %v4309_v18 = vpop.eup %4308  ;;  %v1771_v60 = vrot.slane %v4307_v10, %v6888_v48  ;;  %v1443_v4 = vmul.f32 1.442695, %v1341_v61  ;;  %v1281_v36 = vmul.f32 0.6931472, %v4305_v30  ;;  %v1165_v59 = vmul.f32 0.00390625, %v1085_v50 }
 0x1d1   : >> { %v4311_v25 = vpop.eup %4310  ;;  %v1697_v38 = vrot.slane %v4309_v18, %v6913_v17  ;;  %v6963_v7 = vsub.s32 %v1607_v40, %v6864_v47  ;;  %4334 = vlog2.f32 %v1120_v54  ;;  %v1413_v10 = vmul.f32 1.442695, %v1326_v2 }
 0x1d2   : >> { %v998_v51 = vpop.xlane.xlu0 %997  ;;  %v4313_v58 = vpop.eup %4312  ;;  %v1772_v5 = vsel %vm1591_vm3, %v1771_v60, %v1767_v11  ;;  %v1604_v52 = vrot.slane %v4311_v25, %v6953_v42  ;;  %4336 = vlog2.f32 %v1165_v59  ;;  %v1311_v30 = vmul.f32 %v6854_v32, %v1191_v34 }
 0x1d3   : >> { %v4315_v45 = vpop.eup %4314  ;;  %v1698_v39 = vsel %vm1598_vm4, %v1697_v38, %v1693_v1  ;;  %v1845_v53 = vrot.slane %v4313_v58, %v6885_v44  ;;  %v1151_v11 = vmul.f32 0.00390625, %v1043_v16  ;;  %4338 = vpow2.f32 %v1443_v4  ;;  %v953_v29 = vpop.xlane.xlu1 %952 }
 0x1d4   : >> { %v4317_v61 = vpop.eup %4316  ;;  %v1606_v50 = vsel %vm1605_vm5, %v1604_v52, %v1599_v46  ;;  %v1253_v18 = vmul.f32 0.6931472, %v4315_v45  ;;  %v1356_v40 = vmul.f32 %v6854_v32, %v1281_v36  ;;  %v1136_v54 = vmul.f32 0.00390625, %v998_v51 }
 0x1d5   : >> { %v4319_v60 = vpop.eup %4318  ;;  %v1846_v25 = vsel %vm1584_vm2, %v1845_v53, %v1841_v41  ;;  %v1223_v2 = vmul.f32 0.6931472, %v4317_v61  ;;  %4340 = vlog2.f32 %v1151_v11  ;;  %v1121_v59 = vmul.f32 0.00390625, %v953_v29 }
 0x1d6   : >> { %v1088_v1 = vpop.xlane.xlu0 %1087  ;;  %v4321_v38 = vpop.eup %4320  ;;  %v1776_v44 = vrot.slane %v4319_v60, %v6913_v17  ;;  %v1342_v16 = vmul.f32 %v6854_v32, %v1253_v18  ;;  %4342 = vlog2.f32 %v1136_v54  ;;  %v1383_v36 = vmul.f32 1.442695, %v1311_v30 }
 0x1d7   : >> { %v4323_v46 = vpop.eup %4322  ;;  %v1702_v34 = vrot.slane %v4321_v38, %v6953_v42  ;;  %v1166_v58 = vmul.f32 0.00390625, %v1088_v1  ;;  %4344 = vpow2.f32 %v1413_v10  ;;  %v1046_v53 = vpop.xlane.xlu1 %1045  ;;  %v1473_v60 = vmul.f32 1.442695, %v1356_v40 }
 0x1d8   : >> { %v4325_v41 = vpop.eup %4324  ;;  %v6975_v4 = vsel %vm1598_vm4, %v1776_v44, %v1772_v5  ;;  %v1193_v51 = vmul.f32 0.6931472, %v4323_v46  ;;  %4346 = vlog2.f32 %v1121_v59  ;;  %v1327_v54 = vmul.f32 %v6854_v32, %v1223_v2 }
 0x1d9   : >> { %v4327_v52 = vpop.eup %4326  ;;  %v6978_v45 = vsel %vm1605_vm5, %v1702_v34, %v1698_v39  ;;  %v1283_v29 = vmul.f32 0.6931472, %v4325_v41  ;;  %v1152_v5 = vmul.f32 0.00390625, %v1046_v53  ;;  %v1445_v30 = vmul.f32 1.442695, %v1342_v16 }
 0x1da   : >> { %v1001_v61 = vpop.xlane.xlu0 %1000  ;;  %v4329_v11 = vpop.eup %4328  ;;  %v1611_v18 = vrot.slane %v4327_v52, %v6963_v7  ;;  %v1312_v38 = vmul.f32 %v6854_v32, %v1193_v51  ;;  %4348 = vlog2.f32 %v1166_v58  ;;  %v1415_v16 = vmul.f32 1.442695, %v1327_v54 }
 0x1db   : >> { %v4331_v1 = vpop.eup %4330  ;;  %v1850_v10 = vrot.slane %v4329_v11, %v6888_v48  ;;  %4350 = vpow2.f32 %v1383_v36  ;;  %v1137_v46 = vmul.f32 0.00390625, %v1001_v61  ;;  %v1357_v40 = vmul.f32 %v6854_v32, %v1283_v29  ;;  %v956_v41 = vpop.xlane.xlu1 %955 }
 0x1dc   : >> { %v4333_v39 = vpop.eup %4332  ;;  %v6985_v44 = vsel %vm1612_vm6, %v1611_v18, %v1606_v50  ;;  %v1255_v59 = vmul.f32 0.6931472, %v4331_v1  ;;  %4352 = vlog2.f32 %v1152_v5  ;;  %v1122_v51 = vmul.f32 0.00390625, %v956_v41 }
 0x1dd   : >> { %v6988_v34 = vsel %vm1591_vm3, %v1850_v10, %v1846_v25  ;;  %v1225_v2 = vmul.f32 0.6931472, %v4333_v39  ;;  %4354 = vpow2.f32 %v1473_v60  ;;  %v1385_v50 = vmul.f32 1.442695, %v1312_v38 }
 0x1de   : >> { %v1091_v48 = vpop.xlane.xlu0 %1090  ;;  %v1343_v58 = vmul.f32 %v6854_v32, %v1255_v59  ;;  %v4335_v52 = vpop.eup %4334  ;;  %4356 = vpow2.f32 %v1445_v30  ;;  %v1475_v11 = vmul.f32 1.442695, %v1357_v40  ;;  %vm1909_vm0 = vcmask 1042434  }
 0x1df   : >> { %v1328_v36 = vmul.f32 %v6854_v32, %v1225_v2  ;;  %v4337_v53 = vpop.eup %4336  ;;  %v1195_v61 = vmul.f32 0.6931472, %v4335_v52  ;;  %4358 = vlog2.f32 %v1137_v46  ;;  %v1167_v25 = vmul.f32 0.00390625, %v1091_v48  ;;  %v1049_v18 = vpop.xlane.xlu1 %1048 }
 0x1e0   : >> { %v1285_v29 = vmul.f32 0.6931472, %v4337_v53  ;;  %4360 = vlog2.f32 %v1122_v51  ;;  %v6993_v1 = vpop.eup %4338  ;;  %v1447_v60 = vmul.f32 1.442695, %v1343_v58  ;;  %v1153_v46 = vmul.f32 0.00390625, %v1049_v18 }
 0x1e1   : >> { %4362 = vpow2.f32 %v1415_v16  ;;  %v1313_v54 = vmul.f32 %v6854_v32, %v1195_v61  ;;  %v1417_v30 = vmul.f32 1.442695, %v1328_v36  ;;  %vm1911_vm1 = vcmask 1043459  }
 0x1e2   : >> { %v1004_v5 = vpop.xlane.xlu0 %1003  ;;  %v4341_v10 = vpop.eup %4340  ;;  %4364 = vpow2.f32 %v1385_v50  ;;  %v1358_v39 = vmul.f32 %v6854_v32, %v1285_v29 }
 0x1e3   : >> { %v4343_v38 = vpop.eup %4342  ;;  %v1257_v59 = vmul.f32 0.6931472, %v4341_v10  ;;  %4366 = vlog2.f32 %v1167_v25  ;;  %v1138_v2 = vmul.f32 0.00390625, %v1004_v5  ;;  %v959_v41 = vpop.xlane.xlu1 %958  ;;  %v1387_v16 = vmul.f32 1.442695, %v1313_v54 }
 0x1e4   : >> { %v6997_v40 = vpop.eup %4344  ;;  %4368 = vpow2.f32 %v1475_v11  ;;  %v1227_v58 = vmul.f32 0.6931472, %v4343_v38  ;;  %v1123_v52 = vmul.f32 0.00390625, %v959_v41  ;;  %v1477_v36 = vmul.f32 1.442695, %v1358_v39 }
 0x1e5   : >> { %v4347_v51 = vpop.eup %4346  ;;  %4370 = vpow2.f32 %v1447_v60  ;;  %v1344_v53 = vmul.f32 %v6854_v32, %v1257_v59 }
 0x1e6   : >> { %v1094_v48 = vpop.xlane.xlu0 %1093  ;;  %4372 = vpow2.f32 %v1417_v30  ;;  %v1197_v25 = vmul.f32 0.6931472, %v4347_v51  ;;  %v1329_v60 = vmul.f32 %v6854_v32, %v1227_v58 }
 0x1e7   : >> { %v4349_v50 = vpop.eup %4348  ;;  %4374 = vlog2.f32 %v1153_v46  ;;  %v1168_v29 = vmul.f32 0.00390625, %v1094_v48  ;;  %v1052_v11 = vpop.xlane.xlu1 %1051  ;;  %v1449_v38 = vmul.f32 1.442695, %v1344_v53 }
 0x1e8   : >> { %v7000_v61 = vpop.eup %4350  ;;  %4376 = vlog2.f32 %v1138_v2  ;;  %v1287_v54 = vmul.f32 0.6931472, %v4349_v50  ;;  %v1154_v39 = vmul.f32 0.00390625, %v1052_v11  ;;  %v1314_v46 = vmul.f32 %v6854_v32, %v1197_v25 }
 0x1e9   : >> { %v4353_v5 = vpop.eup %4352  ;;  %4378 = vpow2.f32 %v1387_v16  ;;  %v1419_v58 = vmul.f32 1.442695, %v1329_v60 }
 0x1ea   : >> { %v1007_v18 = vpop.xlane.xlu0 %1006  ;;  %v7002_v10 = vpop.eup %4354  ;;  %4380 = vlog2.f32 %v1123_v52  ;;  %v1259_v2 = vmul.f32 0.6931472, %v4353_v5  ;;  %v1359_v52 = vmul.f32 %v6854_v32, %v1287_v54  ;;  %v1389_v25 = vmul.f32 1.442695, %v1314_v46 }
 0x1eb   : >> { %v7005_v30 = vpop.eup %4356  ;;  %4382 = vpow2.f32 %v1477_v36  ;;  %v1139_v41 = vmul.f32 0.00390625, %v1007_v18  ;;  %v962_v48 = vpop.xlane.xlu1 %961  ;;  %v1614_v54 = vadd.s32 4294967232, %v6861_v62 }
 0x1ec   : >> { %v4359_v59 = vpop.eup %4358  ;;  %4384 = vlog2.f32 %v1168_v29  ;;  %v1124_v53 = vmul.f32 0.00390625, %v962_v48  ;;  %v1345_v29 = vmul.f32 %v6854_v32, %v1259_v2 }
 0x1ed   : >> { %v4361_v16 = vpop.eup %4360  ;;  %4386 = vlog2.f32 %v1154_v39  ;;  %v1229_v36 = vmul.f32 0.6931472, %v4359_v59 }
 0x1ee   : >> { %v1097_v51 = vpop.xlane.xlu0 %1096  ;;  %v7008_v19 = vpop.eup %4362  ;;  %4388 = vlog2.f32 %v1139_v41  ;;  %v1199_v18 = vmul.f32 0.6931472, %v4361_v16  ;;  %v1479_v41 = vmul.f32 1.442695, %v1359_v52 }
 0x1ef   : >> { %v7011_v50 = vpop.eup %4364  ;;  %4390 = vpow2.f32 %v1449_v38  ;;  %v1169_v5 = vmul.f32 0.00390625, %v1097_v51  ;;  %v1055_v63 = vpop.xlane.xlu1 %1054  ;;  %v1330_v59 = vmul.f32 %v6854_v32, %v1229_v36  ;;  %v1451_v51 = vmul.f32 1.442695, %v1345_v29 }
 0x1f0   : >> { %v4367_v11 = vpop.eup %4366  ;;  %4392 = vlog2.f32 %v1124_v53  ;;  %v1155_v2 = vmul.f32 0.00390625, %v1055_v63  ;;  %v1315_v16 = vmul.f32 %v6854_v32, %v1199_v18  ;;  %v7028_v36 = vsub.s32 %v1614_v54, %v6864_v47 }
 0x1f1   : >> { %v7014_v39 = vpop.eup %4368  ;;  %4394 = vpow2.f32 %v1419_v58  ;;  %v1289_v46 = vmul.f32 0.6931472, %v4367_v11  ;;  %v1628_v58 = vadd.s32 4294967216, %v6861_v62  ;;  %v1421_v11 = vmul.f32 1.442695, %v1330_v59 }
 0x1f2   : >> { %v1010_v13 = vpop.xlane.xlu0 %1009  ;;  %v7016_v60 = vpop.eup %4370  ;;  %4396 = vlog2.f32 %v1169_v5  ;;  %v1391_v18 = vmul.f32 1.442695, %v1315_v16  ;;  %v1635_v59 = vadd.s32 4294967208, %v6861_v62  ;;  %v1649_v16 = vadd.s32 4294967192, %v6861_v62 }
 0x1f3   : >> { %v7019_v38 = vpop.eup %4372  ;;  %4398 = vpow2.f32 %v1389_v25  ;;  %v1140_v20 = vmul.f32 0.00390625, %v1010_v13  ;;  %v965_v53 = vpop.xlane.xlu1 %964  ;;  %v1360_v25 = vmul.f32 %v6854_v32, %v1289_v46  ;;  %v1642_v46 = vadd.s32 4294967200, %v6861_v62 }
 0x1f4   : >> { %v4375_v48 = vpop.eup %4374  ;;  %4400 = vlog2.f32 %v1155_v2  ;;  %v1125_v13 = vmul.f32 0.00390625, %v965_v53 }
 0x1f5   : >> { %v4377_v21 = vpop.eup %4376  ;;  %4402 = vlog2.f32 %v1140_v20  ;;  %v1261_v5 = vmul.f32 0.6931472, %v4375_v48  ;;  %v7037_v20 = vsub.s32 %v1628_v58, %v6864_v47 }
 0x1f6   : >> { %v1100_v8 = vpop.xlane.xlu0 %1099  ;;  %v7025_v52 = vpop.eup %4378  ;;  %4404 = vpow2.f32 %v1479_v41  ;;  %v1231_v54 = vmul.f32 0.6931472, %v4377_v21 }
 0x1f7   : >> { %v4381_v63 = vpop.eup %4380  ;;  %4406 = vpow2.f32 %v1451_v51  ;;  %v1170_v37 = vmul.f32 0.00390625, %v1100_v8  ;;  %v1058_v57 = vpop.xlane.xlu1 %1057  ;;  %v1481_v8 = vmul.f32 1.442695, %v1360_v25  ;;  %v1346_v58 = vmul.f32 %v6854_v32, %v1261_v5 }
 0x1f8   : >> { %v7031_v29 = vpop.eup %4382  ;;  %4408 = vlog2.f32 %v1125_v13  ;;  %v1201_v51 = vmul.f32 0.6931472, %v4381_v63  ;;  %v1156_v53 = vmul.f32 0.00390625, %v1058_v57  ;;  %v1331_v28 = vmul.f32 %v6854_v32, %v1231_v54 }
 0x1f9   : >> { %v4385_v55 = vpop.eup %4384  ;;  %4410 = vlog2.f32 %v1170_v37  ;;  %v7056_v54 = vsub.s32 %v1649_v16, %v6864_v47 }
 0x1fa   : >> { %v1013_v2 = vpop.xlane.xlu0 %1012  ;;  %v4387_v41 = vpop.eup %4386  ;;  %4412 = vpow2.f32 %v1421_v11  ;;  %v1291_v21 = vmul.f32 0.6931472, %v4385_v55  ;;  %v1316_v11 = vmul.f32 %v6854_v32, %v1201_v51  ;;  %v7053_v55 = vsub.s32 %v1642_v46, %v6864_v47 }
 0x1fb   : >> { %v4389_v48 = vpop.eup %4388  ;;  %4414 = vpow2.f32 %v1391_v18  ;;  %v1141_v13 = vmul.f32 0.00390625, %v1013_v2  ;;  %v1061_v15 = vpop.xlane.xlu1 %1060  ;;  %v1263_v9 = vmul.f32 0.6931472, %v4387_v41  ;;  %v7050_v18 = vsub.s32 %v1635_v59, %v6864_v47 }
 0x1fc   : >> { %v7042_v49 = vpop.eup %4390  ;;  %4416 = vlog2.f32 %v1156_v53  ;;  %v1157_v37 = vmul.f32 0.00390625, %v1061_v15  ;;  %v1233_v25 = vmul.f32 0.6931472, %v4389_v48  ;;  %v1361_v15 = vmul.f32 %v6854_v32, %v1291_v21 }
 0x1fd   : >> { %v4393_v63 = vpop.eup %4392  ;;  %4418 = vlog2.f32 %v1141_v13  ;;  %v1656_v41 = vadd.s32 4294967184, %v6861_v62  ;;  %v1453_v59 = vmul.f32 1.442695, %v1346_v58  ;;  %v1347_v46 = vmul.f32 %v6854_v32, %v1263_v9 }
 0x1fe   : >> { %v1103_v14 = vpop.xlane.xlu0 %1102  ;;  %v7047_v56 = vpop.eup %4394  ;;  %v1203_v5 = vmul.f32 0.6931472, %v4393_v63  ;;  %4420 = vlog2.f32 %v1157_v37  ;;  %v1423_v37 = vmul.f32 1.442695, %v1331_v28  ;;  %v1393_v63 = vmul.f32 1.442695, %v1316_v11 }
 0x1ff   : >> { %v1171_v57 = vmul.f32 0.00390625, %v1103_v14  ;;  %v4397_v2 = vpop.eup %4396  ;;  %v1109_v51 = vpop.xlane.xlu1 %1108  ;;  %v1332_v16 = vmul.f32 %v6854_v32, %v1233_v25  ;;  %v7068_v58 = vsub.s32 %v1656_v41, %v6864_v47  ;;  %v1455_v11 = vmul.f32 1.442695, %v1347_v46 }
 0x200   : >> { %v7060_v48 = vpop.eup %4398  ;;  %v1173_v3 = vmul.f32 0.00390625, %v1109_v51  ;;  %v1317_v21 = vmul.f32 %v6854_v32, %v1203_v5 }
 0x201   : >> { %4422 = vlog2.f32 %v1171_v57  ;;  %v4401_v13 = vpop.eup %4400  ;;  %v1293_v57 = vmul.f32 0.6931472, %v4397_v2  ;;  %v1781_v2 = vrot.slane %v6993_v1, %v6953_v42  ;;  %v1425_v51 = vmul.f32 1.442695, %v1332_v16 }
 0x202   : >> { %v1106_v14 = vpop.xlane.xlu0 %1105  ;;  %4424 = vpow2.f32 %v1481_v8  ;;  %v4403_v22 = vpop.eup %4402  ;;  %v1265_v0 = vmul.f32 0.6931472, %v4401_v13  ;;  %v1483_v8 = vmul.f32 1.442695, %v1361_v15 }
 0x203   : >> { %v1172_v53 = vmul.f32 0.00390625, %v1106_v14  ;;  %v7065_v12 = vpop.eup %4404  ;;  %v1235_v9 = vmul.f32 0.6931472, %v4403_v22  ;;  %v1663_v14 = vadd.s32 4294967176, %v6861_v62  ;;  %v1395_v22 = vmul.f32 1.442695, %v1317_v21 }
 0x204   : >> { %v7070_v28 = vpop.eup %4406  ;;  %v1348_v25 = vmul.f32 %v6854_v32, %v1265_v0  ;;  %v1707_v0 = vrot.slane %v6997_v40, %v6963_v7  ;;  %v1782_v21 = vsel %vm1605_vm5, %v1781_v2, %v6975_v4 }
 0x205   : >> { %4426 = vlog2.f32 %v1172_v53  ;;  %v4409_v5 = vpop.eup %4408  ;;  %v1333_v15 = vmul.f32 %v6854_v32, %v1235_v9 }
 0x206   : >> { %4428 = vlog2.f32 %v1173_v3  ;;  %v4411_v41 = vpop.eup %4410  ;;  %v1362_v3 = vmul.f32 %v6854_v32, %v1293_v57  ;;  %v1205_v53 = vmul.f32 0.6931472, %v4409_v5  ;;  %v1457_v62 = vmul.f32 1.442695, %v1348_v25 }
 0x207   : >> { %4430 = vpow2.f32 %v1453_v59  ;;  %v7078_v59 = vpop.eup %4412  ;;  %v1295_v46 = vmul.f32 0.6931472, %v4411_v41  ;;  %v1427_v1 = vmul.f32 1.442695, %v1333_v15  ;;  %v1618_v57 = vrot.slane %v7000_v61, %v7028_v36 }
 0x208   : >> { %4432 = vpow2.f32 %v1423_v37  ;;  %v7082_v13 = vpop.eup %4414  ;;  %v7085_v37 = vsub.s32 %v1663_v14, %v6864_v47  ;;  %v1485_v9 = vmul.f32 1.442695, %v1362_v3  ;;  %v1708_v14 = vsel %vm1612_vm6, %v1707_v0, %v6978_v45 }
 0x209   : >> { %4434 = vpow2.f32 %v1393_v63  ;;  %v1318_v63 = vmul.f32 %v6854_v32, %v1205_v53  ;;  %v4417_v16 = vpop.eup %4416  ;;  %v1363_v40 = vmul.f32 %v6854_v32, %v1295_v46  ;;  %v1855_v61 = vrot.slane %v7002_v10, %v6913_v17 }
 0x20a   : >> { %4436 = vpow2.f32 %v1483_v8  ;;  %v4419_v8 = vpop.eup %4418  ;;  %v1267_v25 = vmul.f32 0.6931472, %v4417_v16  ;;  %v1786_v53 = vrot.slane %v7005_v30, %v6963_v7 }
 0x20b   : >> { %4438 = vpow2.f32 %v1455_v11  ;;  %v1397_v11 = vmul.f32 1.442695, %v1318_v63  ;;  %v4421_v47 = vpop.eup %4420  ;;  %v1487_v5 = vmul.f32 1.442695, %v1363_v40  ;;  %v1237_v15 = vmul.f32 0.6931472, %v4419_v8 }
 0x20c   : >> { %4440 = vpow2.f32 %v1425_v51  ;;  %v1349_v2 = vmul.f32 %v6854_v32, %v1267_v25  ;;  %v1269_v51 = vmul.f32 0.6931472, %v4421_v47  ;;  %v1625_v63 = vrot.slane %v7011_v50, %v7034_v6 }
 0x20d   : >> { %4442 = vpow2.f32 %v1395_v22  ;;  %v1620_v22 = vsel %vm1619_vm7, %v1618_v57, %v6985_v44  ;;  %v1334_v45 = vmul.f32 %v6854_v32, %v1237_v15  ;;  %v1860_v40 = vrot.slane %v7014_v39, %v6953_v42 }
 0x20e   : >> { %4444 = vpow2.f32 %v1457_v62  ;;  %v4423_v4 = vpop.eup %4422  ;;  %v1459_v0 = vmul.f32 1.442695, %v1349_v2  ;;  %v1350_v17 = vmul.f32 %v6854_v32, %v1269_v51  ;;  %v1712_v62 = vrot.slane %v7008_v19, %v7028_v36 }
 0x20f   : >> { %4446 = vpow2.f32 %v1427_v1  ;;  %v7098_v41 = vpop.eup %4424  ;;  %v1297_v3 = vmul.f32 0.6931472, %v4423_v4  ;;  %v1429_v46 = vmul.f32 1.442695, %v1334_v45  ;;  %v1791_v50 = vrot.slane %v7016_v60, %v7028_v36 }
 0x210   : >> { %4448 = vpow2.f32 %v1397_v11  ;;  %v1461_v16 = vmul.f32 1.442695, %v1350_v17  ;;  %v1856_v11 = vsel %vm1598_vm4, %v1855_v61, %v6988_v34  ;;  %v1717_v42 = vrot.slane %v7019_v38, %v7034_v6 }
 0x211   : >> { %4450 = vpow2.f32 %v1485_v9  ;;  %v1364_v44 = vmul.f32 %v6854_v32, %v1297_v3  ;;  %v1713_v34 = vsel %vm1619_vm7, %v1712_v62, %v1708_v14  ;;  %v1632_v60 = vrot.slane %v7025_v52, %v7037_v20 }
 0x212   : >> { %v4427_v10 = vpop.eup %4426  ;;  %4452 = vpow2.f32 %v1487_v5  ;;  %v1787_v5 = vsel %vm1612_vm6, %v1786_v53, %v1782_v21  ;;  %v1865_v4 = vrot.slane %v7031_v29, %v6963_v7  ;;  %v1627_v2 = vsel %vm1626_vm8, %v1625_v63, %v1620_v22 }
 0x213   : >> { %v4429_v1 = vpop.eup %4428  ;;  %4454 = vpow2.f32 %v1459_v0  ;;  %v1299_v30 = vmul.f32 0.6931472, %v4427_v10  ;;  %v1489_v19 = vmul.f32 1.442695, %v1364_v44  ;;  %v1861_v38 = vsel %vm1605_vm5, %v1860_v40, %v1856_v11 }
 0x214   : >> { %v7111_v57 = vpop.eup %4430  ;;  %4456 = vpow2.f32 %v1429_v46  ;;  %v1301_v8 = vmul.f32 0.6931472, %v4429_v1  ;;  %v1792_v14 = vsel %vm1619_vm7, %v1791_v50, %v1787_v5  ;;  %v1722_v52 = vrot.slane %v7047_v56, %v7037_v20 }
 0x215   : >> { %v7115_v9 = vpop.eup %4432  ;;  %4458 = vpow2.f32 %v1461_v16  ;;  %v1365_v25 = vmul.f32 %v6854_v32, %v1299_v30  ;;  %v1639_v7 = vrot.slane %v7060_v48, %v7050_v18  ;;  %v1718_v22 = vsel %vm1626_vm8, %v1717_v42, %v1713_v34 }
 0x216   : >> { %v7122_v47 = vpop.eup %4434  ;;  %4460 = vpow2.f32 %v1489_v19  ;;  %v1366_v39 = vmul.f32 %v6854_v32, %v1301_v8  ;;  %v1796_v32 = vrot.slane %v7042_v49, %v7034_v6  ;;  %v1870_v3 = vrot.slane %v7065_v12, %v7028_v36 }
 0x217   : >> { %v7128_v15 = vpop.eup %4436  ;;  %v1491_v61 = vmul.f32 1.442695, %v1365_v25  ;;  %v1801_v49 = vrot.slane %v7070_v28, %v7037_v20  ;;  %v1634_v0 = vsel %vm1633_vm9, %v1632_v60, %v1627_v2  ;;  %v1866_v56 = vsel %vm1612_vm6, %v1865_v4, %v1861_v38 }
 0x218   : >> { %v4439_v21 = vpop.eup %4438  ;;  %v1493_v51 = vmul.f32 1.442695, %v1366_v39  ;;  %v1727_v48 = vrot.slane %v7078_v59, %v7050_v18  ;;  %v1646_v17 = vrot.slane %v7082_v13, %v7053_v55  ;;  %v1797_v12 = vsel %vm1626_vm8, %v1796_v32, %v1792_v14 }
 0x219   : >> { %v4441_v45 = vpop.eup %4440  ;;  %4462 = vpow2.f32 %v1491_v61  ;;  %v1875_v36 = vrot.slane %v7098_v41, %v7034_v6  ;;  %v1806_v28 = vrot.slane %v7111_v57, %v7050_v18  ;;  %v1732_v62 = vrot.slane %v7115_v9, %v7053_v55 }
 0x21a   : >> { %v4443_v29 = vpop.eup %4442  ;;  %4464 = vpow2.f32 %v1493_v51  ;;  %v1723_v44 = vsel %vm1633_vm9, %v1722_v52, %v1718_v22  ;;  %v1641_v59 = vsel %vm1640_vm10, %v1639_v7, %v1634_v0  ;;  %v1653_v13 = vrot.slane %v7122_v47, %v7056_v54 }
 0x21b   : >> { %v4445_v53 = vpop.eup %4444  ;;  %v1811_v1 = vrot.slane %v4439_v21, %v7053_v55  ;;  %v1871_v16 = vsel %vm1619_vm7, %v1870_v3, %v1866_v56  ;;  %v1802_v6 = vsel %vm1633_vm9, %v1801_v49, %v1797_v12  ;;  %v1737_v41 = vrot.slane %v4441_v45, %v7056_v54 }
 0x21c   : >> { %v4447_v10 = vpop.eup %4446  ;;  %v1660_v30 = vrot.slane %v4443_v29, %v7068_v58  ;;  %v1728_v40 = vsel %vm1640_vm10, %v1727_v48, %v1723_v44  ;;  %v1648_v19 = vsel %vm1647_vm11, %v1646_v17, %v1641_v59  ;;  %v1816_v8 = vrot.slane %v4445_v53, %v7056_v54 }
 0x21d   : >> { %v4449_v46 = vpop.eup %4448  ;;  %v1742_v9 = vrot.slane %v4447_v10, %v7068_v58  ;;  %v1876_v50 = vsel %vm1626_vm8, %v1875_v36, %v1871_v16  ;;  %v1807_v25 = vsel %vm1640_vm10, %v1806_v28, %v1802_v6  ;;  %v1733_v47 = vsel %vm1647_vm11, %v1732_v62, %v1728_v40 }
 0x21e   : >> { %v4451_v63 = vpop.eup %4450  ;;  %v1667_v5 = vrot.slane %v4449_v46, %v7085_v37  ;;  %v1655_v39 = vsel %vm1654_vm12, %v1653_v13, %v1648_v19  ;;  %v1880_v34 = vrot.slane %v7128_v15, %v7037_v20  ;;  %v1812_v60 = vsel %vm1647_vm11, %v1811_v1, %v1807_v25 }
 0x21f   : >> { %v4453_v57 = vpop.eup %4452  ;;  %v1738_v21 = vsel %vm1654_vm12, %v1737_v41, %v1733_v47  ;;  %v1662_v2 = vsel %vm1661_vm13, %v1660_v30, %v1655_v39  ;;  %v1885_v38 = vrot.slane %v4451_v63, %v7050_v18  ;;  %v1817_v45 = vsel %vm1654_vm12, %v1816_v8, %v1812_v60 }
 0x220   : >> { %v4455_v11 = vpop.eup %4454  ;;  %v1743_v14 = vsel %vm1661_vm13, %v1742_v9, %v1738_v21  ;;  %v1890_v20 = vrot.slane %v4453_v57, %v7053_v55  ;;  %v1669_v52 = vsel %vm1668_vm14, %v1667_v5, %v1662_v2  ;;  %v1881_v22 = vsel %vm1633_vm9, %v1880_v34, %v1876_v50 }
 0x221   : >> { %v4457_v42 = vpop.eup %4456  ;;  %v1821_v4 = vrot.slane %v4455_v11, %v7068_v58  ;;  %v1886_v0 = vsel %vm1640_vm10, %v1885_v38, %v1881_v22 }
 0x222   : >> { %v4459_v61 = vpop.eup %4458  ;;  %v1747_v32 = vrot.slane %v4457_v42, %v7085_v37  ;;  %v1891_v48 = vsel %vm1647_vm11, %v1890_v20, %v1886_v0 }
 0x223   : >> { %v4461_v51 = vpop.eup %4460  ;;  %v1826_v15 = vrot.slane %v4459_v61, %v7085_v37  ;;  %v1822_v7 = vsel %vm1661_vm13, %v1821_v4, %v1817_v45 }
 0x224   : >> { %v1748_v29 = vsel %vm1668_vm14, %v1747_v32, %v1743_v14  ;;  %v1895_v18 = vrot.slane %v4461_v51, %v7056_v54 }
 0x225   : >> { %v1908_v3 = vsel %vm1907_vm15, %v1748_v29, %v1669_v52  ;;  %v1827_v49 = vsel %vm1668_vm14, %v1826_v15, %v1822_v7 }
 0x226   : >> { %v4463_v53 = vpop.eup %4462  ;;  %v1910_v55 = vsel %vm1909_vm0, %v1827_v49, %v1908_v3  ;;  %v1896_v10 = vsel %vm1654_vm12, %v1895_v18, %v1891_v48 }
 0x227   : >> { %v4465_v56 = vpop.eup %4464  ;;  %v1900_v17 = vrot.slane %v4463_v53, %v7068_v58 }
 0x228   : >> { %v1905_v54 = vrot.slane %v4465_v56, %v7085_v37 }
 0x229   : >> { %v1901_v12 = vsel %vm1661_vm13, %v1900_v17, %v1896_v10 }
 0x22a   : >> { %v1906_v36 = vsel %vm1668_vm14, %v1905_v54, %v1901_v12 }
 0x22b   : >> { %v1912_v28 = vsel %vm1911_vm1, %v1906_v36, %v1910_v55 }
 0x22c   : >> { %1916 = vst [vmem:[%s1915_s14] sm:$0xf] %v1912_v28 }
 0x22d PF: >> { %1919 = sbr.rel (%p293_p7) target bundleno = 1025 (0x401), region = 63  ;;  %s4024_s18 = sshll.u32 (!%p293_p7), %s5455_s28, 2 }
 0x22e   : >> { %s3558_s30 = scalar_lea.vmem (!%p293_p7), [#allocation4], %s4024_s18 }
 0x232   : >> { %4466 = vlog2.f32 %v6072_v23  ;;  %v8435_v58 = vld [vmem:[#allocation51_spill] sm:$0xff]  ;;  %v8436_v37 = vld [vmem:[#allocation52_spill] sm:$0xff]  ;;  %v8443_v13 = vld [vmem:[#allocation22_spill] sm:$0xff]  ;;  %vm3213_vm2 = vcmask 130112   ;;  %vm3220_vm3 = vcmask 195712   ;;  %vm3227_vm4 = vcmask 261312  }
 0x233   : >> { %4468 = vlog2.f32 %v6077_v24  ;;  %v8437_v62 = vld [vmem:[#allocation23_spill] sm:$0xff]  ;;  %v8438_v23 = vld [vmem:[#allocation24_spill] sm:$0xff]  ;;  %v8439_v24 = vld [vmem:[#allocation81_spill] sm:$0xff]  ;;  %vm3234_vm5 = vcmask 326912   ;;  %vm3241_vm6 = vcmask 392512   ;;  %vm3248_vm7 = vcmask 458112  }
 0x234   : >> { %4470 = vlog2.f32 %v5919_v33  ;;  %v8444_v16 = vld [vmem:[#allocation53_spill] sm:$0xff]  ;;  %v8445_v57 = vld [vmem:[#allocation54_spill] sm:$0xff]  ;;  %vm3255_vm8 = vcmask 523712   ;;  %vm3262_vm9 = vcmask 589312   ;;  %vm3269_vm10 = vcmask 654912  }
 0x235   : >> { %4472 = vlog2.f32 %v5923_v27  ;;  %v8440_v27 = vld [vmem:[#allocation82_spill] sm:$0xff]  ;;  %v8446_v11 = vld [vmem:[#allocation25_spill] sm:$0xff]  ;;  %vm3276_vm11 = vcmask 720512   ;;  %vm3283_vm12 = vcmask 786112   ;;  %vm3290_vm13 = vcmask 851712  }
 0x236   : >> { %4474 = vlog2.f32 %v6081_v43  ;;  %v8447_v42 = vld [vmem:[#allocation26_spill] sm:$0xff]  ;;  %vm3297_vm14 = vcmask 917312   ;;  %vm3304_vm15 = vcmask 982912   ;;  %vm3311_vm0 = vcmask 1048512  }
 0x237   : >> { %4476 = vlog2.f32 %v6085_v35  ;;  %v8441_v35 = vld [vmem:[#allocation79_spill] sm:$0xff]  ;;  %vm3550_vm1 = vcmask 1041409  }
 0x238   : >> { %4478 = vlog2.f32 %v5927_v31 }
 0x239   : >> { %4480 = vlog2.f32 %v5932_v26  ;;  %v8442_v26 = vld [vmem:[#allocation80_spill] sm:$0xff] }
 0x23a   : >> { %4482 = vlog2.f32 %v8435_v58 }
 0x23b   : >> { %4484 = vlog2.f32 %v8436_v37 }
 0x23c   : >> { %4486 = vlog2.f32 %v8437_v62 }
 0x23d   : >> { %4488 = vlog2.f32 %v8438_v23 }
 0x23e   : >> { %4490 = vlog2.f32 %v8439_v24 }
 0x23f   : >> { %v4467_v33 = vpop.eup %4466  ;;  %4492 = vlog2.f32 %v8440_v27 }
 0x240   : >> { %v4469_v43 = vpop.eup %4468  ;;  %v1985_v46 = vmul.f32 0.6931472, %v4467_v33  ;;  %4494 = vlog2.f32 %v8441_v35 }
 0x241   : >> { %v4471_v31 = vpop.eup %4470  ;;  %v1987_v44 = vmul.f32 0.6931472, %v4469_v43  ;;  %4496 = vlog2.f32 %v8442_v26 }
 0x242   : >> { %v4473_v59 = vpop.eup %4472  ;;  %v2209_v1 = vmul.f32 %v1985_v46, %v8443_v13  ;;  %v1921_v63 = vmul.f32 0.6931472, %v4471_v31  ;;  %4498 = vlog2.f32 %v8444_v16 }
 0x243   : >> { %v4475_v6 = vpop.eup %4474  ;;  %v2210_v41 = vmul.f32 %v1987_v44, %v8443_v13  ;;  %v1923_v30 = vmul.f32 0.6931472, %v4473_v59  ;;  %4500 = vlog2.f32 %v8445_v57 }
 0x244   : >> { %v4477_v40 = vpop.eup %4476  ;;  %v2369_v19 = vmul.f32 1.442695, %v2209_v1  ;;  %v2177_v8 = vmul.f32 %v1921_v63, %v8443_v13  ;;  %v1989_v9 = vmul.f32 0.6931472, %v4475_v6  ;;  %4502 = vlog2.f32 %v8446_v11 }
 0x245   : >> { %v4479_v50 = vpop.eup %4478  ;;  %v2371_v25 = vmul.f32 1.442695, %v2210_v41  ;;  %v2178_v47 = vmul.f32 %v1923_v30, %v8443_v13  ;;  %v1991_v5 = vmul.f32 0.6931472, %v4477_v40  ;;  %4504 = vlog2.f32 %v8447_v42 }
 0x246   : >> { %v4481_v39 = vpop.eup %4480  ;;  %4506 = vpow2.f32 %v2369_v19  ;;  %v2305_v34 = vmul.f32 1.442695, %v2177_v8  ;;  %v2211_v60 = vmul.f32 %v1989_v9, %v8443_v13  ;;  %v1925_v4 = vmul.f32 0.6931472, %v4479_v50 }
 0x247   : >> { %v4483_v61 = vpop.eup %4482  ;;  %4508 = vpow2.f32 %v2371_v25  ;;  %v2307_v21 = vmul.f32 1.442695, %v2178_v47  ;;  %v2212_v2 = vmul.f32 %v1991_v5, %v8443_v13  ;;  %v1927_v38 = vmul.f32 0.6931472, %v4481_v39 }
 0x248   : >> { %v4485_v32 = vpop.eup %4484  ;;  %4510 = vpow2.f32 %v2305_v34  ;;  %v2373_v51 = vmul.f32 1.442695, %v2211_v60  ;;  %v2179_v45 = vmul.f32 %v1925_v4, %v8443_v13  ;;  %v1993_v14 = vmul.f32 0.6931472, %v4483_v61 }
 0x249   : >> { %v4487_v20 = vpop.eup %4486  ;;  %4512 = vpow2.f32 %v2307_v21  ;;  %v2375_v15 = vmul.f32 1.442695, %v2212_v2  ;;  %v2180_v52 = vmul.f32 %v1927_v38, %v8443_v13  ;;  %v1995_v7 = vmul.f32 0.6931472, %v4485_v32 }
 0x24a   : >> { %v4489_v29 = vpop.eup %4488  ;;  %4514 = vpow2.f32 %v2373_v51  ;;  %v2309_v18 = vmul.f32 1.442695, %v2179_v45  ;;  %v2213_v22 = vmul.f32 %v1993_v14, %v8443_v13  ;;  %v1929_v3 = vmul.f32 0.6931472, %v4487_v20  ;;  %v8448_v51 = vld [vmem:[#allocation111_spill] sm:$0xff]  ;;  %v8449_v20 = vld [vmem:[#allocation112_spill] sm:$0xff] }
 0x24b   : >> { %v4491_v49 = vpop.eup %4490  ;;  %4516 = vpow2.f32 %v2375_v15  ;;  %v2311_v53 = vmul.f32 1.442695, %v2180_v52  ;;  %v2214_v0 = vmul.f32 %v1995_v7, %v8443_v13  ;;  %v1931_v55 = vmul.f32 0.6931472, %v4489_v29  ;;  %v8450_v52 = vld [vmem:[#allocation83_spill] sm:$0xff] }
 0x24c   : >> { %v4493_v56 = vpop.eup %4492  ;;  %4518 = vpow2.f32 %v2309_v18  ;;  %v2377_v48 = vmul.f32 1.442695, %v2213_v22  ;;  %v2181_v17 = vmul.f32 %v1929_v3, %v8443_v13  ;;  %v2053_v10 = vmul.f32 0.6931472, %v4491_v49  ;;  %v8451_v18 = vld [vmem:[#allocation84_spill] sm:$0xff]  ;;  %v8452_v3 = vld [vmem:[#allocation27_spill] sm:$0xff] }
 0x24d   : >> { %v4495_v54 = vpop.eup %4494  ;;  %4520 = vpow2.f32 %v2311_v53  ;;  %v2379_v12 = vmul.f32 1.442695, %v2214_v0  ;;  %v2182_v36 = vmul.f32 %v1931_v55, %v8443_v13  ;;  %v2055_v28 = vmul.f32 0.6931472, %v4493_v56  ;;  %v8453_v0 = vld [vmem:[#allocation28_spill] sm:$0xff]  ;;  %v8454_v56 = vld [vmem:[#allocation113_spill] sm:$0xff] }
 0x24e   : >> { %v4497_v58 = vpop.eup %4496  ;;  %4522 = vpow2.f32 %v2377_v48  ;;  %v2313_v37 = vmul.f32 1.442695, %v2181_v17  ;;  %v2243_v62 = vmul.f32 %v2053_v10, %v8443_v13  ;;  %v2049_v23 = vmul.f32 0.6931472, %v4495_v54  ;;  %v8455_v10 = vld [vmem:[#allocation114_spill] sm:$0xff] }
 0x24f   : >> { %v4499_v24 = vpop.eup %4498  ;;  %4524 = vpow2.f32 %v2379_v12  ;;  %v2315_v33 = vmul.f32 1.442695, %v2182_v36  ;;  %v2244_v27 = vmul.f32 %v2055_v28, %v8443_v13  ;;  %v2051_v43 = vmul.f32 0.6931472, %v4497_v58  ;;  %v8456_v12 = vld [vmem:[#allocation85_spill] sm:$0xff]  ;;  %v8457_v58 = vld [vmem:[#allocation86_spill] sm:$0xff] }
 0x250   : >> { %v4501_v46 = vpop.eup %4500  ;;  %4526 = vpow2.f32 %v2313_v37  ;;  %v2437_v35 = vmul.f32 1.442695, %v2243_v62  ;;  %v2241_v31 = vmul.f32 %v2049_v23, %v8443_v13  ;;  %v1997_v44 = vmul.f32 0.6931472, %v4499_v24  ;;  %v8458_v62 = vld [vmem:[#allocation55_spill] sm:$0xff] }
 0x251   : >> { %v4503_v26 = vpop.eup %4502  ;;  %4528 = vpow2.f32 %v2315_v33  ;;  %v2439_v59 = vmul.f32 1.442695, %v2244_v27  ;;  %v2242_v1 = vmul.f32 %v2051_v43, %v8443_v13  ;;  %v1999_v63 = vmul.f32 0.6931472, %v4501_v46  ;;  %v8459_v33 = vld [vmem:[#allocation56_spill] sm:$0xff]  ;;  %v8460_v43 = vld [vmem:[#allocation29_spill] sm:$0xff] }
 0x252   : >> { %v4505_v16 = vpop.eup %4504  ;;  %4530 = vpow2.f32 %v2437_v35  ;;  %v2433_v6 = vmul.f32 1.442695, %v2241_v31  ;;  %v2215_v41 = vmul.f32 %v1997_v44, %v8443_v13  ;;  %v1933_v30 = vmul.f32 0.6931472, %v4503_v26  ;;  %v8461_v31 = vld [vmem:[#allocation30_spill] sm:$0xff] }
 0x253   : >> { %v4507_v57 = vpop.eup %4506  ;;  %4532 = vpow2.f32 %v2439_v59  ;;  %v2435_v40 = vmul.f32 1.442695, %v2242_v1  ;;  %v2216_v19 = vmul.f32 %v1999_v63, %v8443_v13  ;;  %v1935_v8 = vmul.f32 0.6931472, %v4505_v16  ;;  %v8462_v59 = vld [vmem:[#allocation115_spill] sm:$0xff]  ;;  %v8463_v16 = vld [vmem:[#allocation116_spill] sm:$0xff] }
 0x254   : >> { %v4509_v9 = vpop.eup %4508  ;;  %4534 = vpow2.f32 %v2433_v6  ;;  %v2381_v11 = vmul.f32 1.442695, %v2215_v41  ;;  %v2183_v50 = vmul.f32 %v1933_v30, %v8443_v13 }
 0x255   : >> { %v4511_v25 = vpop.eup %4510  ;;  %v2609_v47 = vadd.f32 %v4509_v9, %v4507_v57  ;;  %4536 = vpow2.f32 %v2435_v40  ;;  %v2383_v5 = vmul.f32 1.442695, %v2216_v19  ;;  %v2184_v42 = vmul.f32 %v1935_v8, %v8443_v13  ;;  %v8464_v57 = vld [vmem:[#allocation87_spill] sm:$0xff]  ;;  %v8465_v9 = vld [vmem:[#allocation88_spill] sm:$0xff] }
 0x256   : >> { %v4513_v39 = vpop.eup %4512  ;;  %4538 = vpow2.f32 %v2381_v11  ;;  %v2317_v34 = vmul.f32 1.442695, %v2183_v50 }
 0x257   : >> { %v4515_v60 = vpop.eup %4514  ;;  %2610 = vadd.xlane.f32.xlu1 %v2609_v47  ;;  %v2561_v4 = vadd.f32 %v4513_v39, %v4511_v25  ;;  %4540 = vpow2.f32 %v2383_v5  ;;  %v2319_v61 = vmul.f32 1.442695, %v2184_v42  ;;  %v8466_v5 = vld [vmem:[#allocation57_spill] sm:$0xff] }
 0x258   : >> { %v4517_v21 = vpop.eup %4516  ;;  %4542 = vpow2.f32 %v2317_v34 }
 0x259   : >> { %v4519_v2 = vpop.eup %4518  ;;  %2562 = vadd.xlane.f32.xlu0 %v2561_v4  ;;  %v2612_v38 = vadd.f32 %v4517_v21, %v4515_v60  ;;  %4544 = vpow2.f32 %v2319_v61  ;;  %v8467_v4 = vld [vmem:[#allocation58_spill] sm:$0xff] }
 0x25a   : >> { %v4521_v32 = vpop.eup %4520  ;;  %4546 = vlog2.f32 %v8448_v51 }
 0x25b   : >> { %v4523_v45 = vpop.eup %4522  ;;  %2613 = vadd.xlane.f32.xlu1 %v2612_v38  ;;  %v2564_v14 = vadd.f32 %v4521_v32, %v4519_v2  ;;  %4548 = vlog2.f32 %v8449_v20 }
 0x25c   : >> { %v4525_v15 = vpop.eup %4524  ;;  %4550 = vlog2.f32 %v8450_v52 }
 0x25d   : >> { %v4527_v7 = vpop.eup %4526  ;;  %2565 = vadd.xlane.f32.xlu0 %v2564_v14  ;;  %v2615_v29 = vadd.f32 %v4525_v15, %v4523_v45  ;;  %4552 = vlog2.f32 %v8451_v18 }
 0x25e   : >> { %v4529_v22 = vpop.eup %4528  ;;  %4554 = vlog2.f32 %v8452_v3 }
 0x25f   : >> { %v4531_v49 = vpop.eup %4530  ;;  %2616 = vadd.xlane.f32.xlu1 %v2615_v29  ;;  %v2567_v53 = vadd.f32 %v4529_v22, %v4527_v7  ;;  %4556 = vlog2.f32 %v8453_v0 }
 0x260   : >> { %v4533_v55 = vpop.eup %4532  ;;  %4558 = vlog2.f32 %v8454_v56 }
 0x261   : >> { %v4535_v48 = vpop.eup %4534  ;;  %2568 = vadd.xlane.f32.xlu0 %v2567_v53  ;;  %v2660_v17 = vadd.f32 %v4533_v55, %v4531_v49  ;;  %4560 = vlog2.f32 %v8455_v10 }
 0x262   : >> { %v4537_v54 = vpop.eup %4536  ;;  %4562 = vlog2.f32 %v8456_v12 }
 0x263   : >> { %v4539_v36 = vpop.eup %4538  ;;  %2661 = vadd.xlane.f32.xlu1 %v2660_v17  ;;  %v2657_v28 = vadd.f32 %v4537_v54, %v4535_v48  ;;  %4564 = vlog2.f32 %v8457_v58 }
 0x264   : >> { %v4541_v37 = vpop.eup %4540  ;;  %4566 = vlog2.f32 %v8458_v62 }
 0x265   : >> { %v4543_v23 = vpop.eup %4542  ;;  %2658 = vadd.xlane.f32.xlu0 %v2657_v28  ;;  %v2618_v24 = vadd.f32 %v4541_v37, %v4539_v36  ;;  %4568 = vlog2.f32 %v8459_v33 }
 0x266   : >> { %v4545_v27 = vpop.eup %4544  ;;  %4570 = vlog2.f32 %v8460_v43 }
 0x267   : >> { %v4547_v46 = vpop.eup %4546  ;;  %2619 = vadd.xlane.f32.xlu1 %v2618_v24  ;;  %v2570_v35 = vadd.f32 %v4545_v27, %v4543_v23  ;;  %4572 = vlog2.f32 %v8461_v31 }
 0x268   : >> { %v4549_v44 = vpop.eup %4548  ;;  %v2113_v26 = vmul.f32 0.6931472, %v4547_v46  ;;  %4574 = vlog2.f32 %v8462_v59 }
 0x269   : >> { %v4551_v1 = vpop.eup %4550  ;;  %2571 = vadd.xlane.f32.xlu0 %v2570_v35  ;;  %v2115_v63 = vmul.f32 0.6931472, %v4549_v44  ;;  %4576 = vlog2.f32 %v8463_v16 }
 0x26a   : >> { %v4553_v6 = vpop.eup %4552  ;;  %v2273_v41 = vmul.f32 %v2113_v26, %v8443_v13  ;;  %v2057_v30 = vmul.f32 0.6931472, %v4551_v1  ;;  %4578 = vlog2.f32 %v8464_v57 }
 0x26b   : >> { %v4555_v40 = vpop.eup %4554  ;;  %v2274_v19 = vmul.f32 %v2115_v63, %v8443_v13  ;;  %v2059_v8 = vmul.f32 0.6931472, %v4553_v6  ;;  %4580 = vlog2.f32 %v8465_v9 }
 0x26c   : >> { %v4557_v11 = vpop.eup %4556  ;;  %v2497_v50 = vmul.f32 1.442695, %v2273_v41  ;;  %v2245_v25 = vmul.f32 %v2057_v30, %v8443_v13  ;;  %v1937_v47 = vmul.f32 0.6931472, %v4555_v40  ;;  %4582 = vlog2.f32 %v8466_v5 }
 0x26d   : >> { %v4559_v42 = vpop.eup %4558  ;;  %v2499_v39 = vmul.f32 1.442695, %v2274_v19  ;;  %v2246_v34 = vmul.f32 %v2059_v8, %v8443_v13  ;;  %v1939_v60 = vmul.f32 0.6931472, %v4557_v11  ;;  %4584 = vlog2.f32 %v8467_v4 }
 0x26e   : >> { %v4561_v61 = vpop.eup %4560  ;;  %4586 = vpow2.f32 %v2497_v50  ;;  %v2441_v21 = vmul.f32 1.442695, %v2245_v25  ;;  %v2185_v2 = vmul.f32 %v1937_v47, %v8443_v13  ;;  %v2117_v38 = vmul.f32 0.6931472, %v4559_v42 }
 0x26f   : >> { %v4563_v32 = vpop.eup %4562  ;;  %4588 = vpow2.f32 %v2499_v39  ;;  %v2443_v51 = vmul.f32 1.442695, %v2246_v34  ;;  %v2186_v45 = vmul.f32 %v1939_v60, %v8443_v13  ;;  %v2119_v14 = vmul.f32 0.6931472, %v4561_v61 }
 0x270   : >> { %v4565_v20 = vpop.eup %4564  ;;  %4590 = vpow2.f32 %v2441_v21  ;;  %v2321_v15 = vmul.f32 1.442695, %v2185_v2  ;;  %v2275_v52 = vmul.f32 %v2117_v38, %v8443_v13  ;;  %v2061_v7 = vmul.f32 0.6931472, %v4563_v32 }
 0x271   : >> { %v4567_v29 = vpop.eup %4566  ;;  %4592 = vpow2.f32 %v2443_v51  ;;  %v2323_v18 = vmul.f32 1.442695, %v2186_v45  ;;  %v2276_v22 = vmul.f32 %v2119_v14, %v8443_v13  ;;  %v2063_v3 = vmul.f32 0.6931472, %v4565_v20 }
 0x272   : >> { %v4569_v49 = vpop.eup %4568  ;;  %4594 = vpow2.f32 %v2321_v15  ;;  %v2501_v53 = vmul.f32 1.442695, %v2275_v52  ;;  %v2247_v0 = vmul.f32 %v2061_v7, %v8443_v13  ;;  %v2001_v55 = vmul.f32 0.6931472, %v4567_v29  ;;  %v8468_v15 = vld [vmem:[#allocation31_spill] sm:$0xff]  ;;  %v8469_v29 = vld [vmem:[#allocation32_spill] sm:$0xff] }
 0x273   : >> { %v4571_v56 = vpop.eup %4570  ;;  %4596 = vpow2.f32 %v2323_v18  ;;  %v2503_v48 = vmul.f32 1.442695, %v2276_v22  ;;  %v2248_v17 = vmul.f32 %v2063_v3, %v8443_v13  ;;  %v2003_v10 = vmul.f32 0.6931472, %v4569_v49  ;;  %v8470_v22 = vld [vmem:[#allocation117_spill] sm:$0xff] }
 0x274   : >> { %v4573_v54 = vpop.eup %4572  ;;  %4598 = vpow2.f32 %v2501_v53  ;;  %v2445_v12 = vmul.f32 1.442695, %v2247_v0  ;;  %v2217_v36 = vmul.f32 %v2001_v55, %v8443_v13  ;;  %v1941_v28 = vmul.f32 0.6931472, %v4571_v56  ;;  %v8471_v53 = vld [vmem:[#allocation118_spill] sm:$0xff]  ;;  %v8472_v55 = vld [vmem:[#allocation89_spill] sm:$0xff] }
 0x275   : >> { %v4575_v58 = vpop.eup %4574  ;;  %4600 = vpow2.f32 %v2503_v48  ;;  %v2447_v37 = vmul.f32 1.442695, %v2248_v17  ;;  %v2218_v62 = vmul.f32 %v2003_v10, %v8443_v13  ;;  %v1943_v23 = vmul.f32 0.6931472, %v4573_v54  ;;  %v8473_v17 = vld [vmem:[#allocation90_spill] sm:$0xff]  ;;  %v8474_v54 = vld [vmem:[#allocation59_spill] sm:$0xff] }
 0x276   : >> { %v4577_v24 = vpop.eup %4576  ;;  %4602 = vpow2.f32 %v2445_v12  ;;  %v2385_v33 = vmul.f32 1.442695, %v2217_v36  ;;  %v2187_v27 = vmul.f32 %v1941_v28, %v8443_v13  ;;  %v2121_v43 = vmul.f32 0.6931472, %v4575_v58  ;;  %v8475_v28 = vld [vmem:[#allocation60_spill] sm:$0xff] }
 0x277   : >> { %v4579_v46 = vpop.eup %4578  ;;  %4604 = vpow2.f32 %v2447_v37  ;;  %v2387_v35 = vmul.f32 1.442695, %v2218_v62  ;;  %v2188_v31 = vmul.f32 %v1943_v23, %v8443_v13  ;;  %v2123_v44 = vmul.f32 0.6931472, %v4577_v24  ;;  %v8476_v37 = vld [vmem:[#allocation33_spill] sm:$0xff]  ;;  %v8477_v24 = vld [vmem:[#allocation34_spill] sm:$0xff] }
 0x278   : >> { %v4581_v26 = vpop.eup %4580  ;;  %4606 = vpow2.f32 %v2385_v33  ;;  %v2325_v59 = vmul.f32 1.442695, %v2187_v27  ;;  %v2277_v1 = vmul.f32 %v2121_v43, %v8443_v13  ;;  %v2065_v63 = vmul.f32 0.6931472, %v4579_v46  ;;  %v8478_v27 = vld [vmem:[#allocation119_spill] sm:$0xff] }
 0x279   : >> { %v4583_v16 = vpop.eup %4582  ;;  %4608 = vpow2.f32 %v2387_v35  ;;  %v2327_v6 = vmul.f32 1.442695, %v2188_v31  ;;  %v2278_v41 = vmul.f32 %v2123_v44, %v8443_v13  ;;  %v2067_v30 = vmul.f32 0.6931472, %v4581_v26  ;;  %v8479_v35 = vld [vmem:[#allocation120_spill] sm:$0xff]  ;;  %v8480_v44 = vld [vmem:[#allocation91_spill] sm:$0xff] }
 0x27a   : >> { %v4585_v57 = vpop.eup %4584  ;;  %4610 = vpow2.f32 %v2325_v59  ;;  %v2505_v40 = vmul.f32 1.442695, %v2277_v1  ;;  %v2249_v19 = vmul.f32 %v2065_v63, %v8443_v13  ;;  %v2005_v8 = vmul.f32 0.6931472, %v4583_v16  ;;  %v8481_v1 = vld [vmem:[#allocation92_spill] sm:$0xff] }
 0x27b   : >> { %v4587_v9 = vpop.eup %4586  ;;  %4612 = vpow2.f32 %v2327_v6  ;;  %v2507_v11 = vmul.f32 1.442695, %v2278_v41  ;;  %v2250_v50 = vmul.f32 %v2067_v30, %v8443_v13  ;;  %v2007_v25 = vmul.f32 0.6931472, %v4585_v57  ;;  %v8482_v6 = vld [vmem:[#allocation61_spill] sm:$0xff]  ;;  %v8483_v57 = vld [vmem:[#allocation62_spill] sm:$0xff] }
 0x27c   : >> { %v4589_v47 = vpop.eup %4588  ;;  %4614 = vpow2.f32 %v2505_v40  ;;  %v2449_v5 = vmul.f32 1.442695, %v2249_v19  ;;  %v2219_v42 = vmul.f32 %v2005_v8, %v8443_v13 }
 0x27d   : >> { %v4591_v39 = vpop.eup %4590  ;;  %v2705_v34 = vadd.f32 %v4589_v47, %v4587_v9  ;;  %4616 = vpow2.f32 %v2507_v11  ;;  %v2451_v60 = vmul.f32 1.442695, %v2250_v50  ;;  %v2220_v4 = vmul.f32 %v2007_v25, %v8443_v13  ;;  %v8484_v9 = vld [vmem:[#allocation35_spill] sm:$0xff]  ;;  %v8485_v47 = vld [vmem:[#allocation36_spill] sm:$0xff] }
 0x27e   : >> { %v4593_v61 = vpop.eup %4592  ;;  %4618 = vpow2.f32 %v2449_v5  ;;  %v2389_v21 = vmul.f32 1.442695, %v2219_v42 }
 0x27f   : >> { %v4595_v2 = vpop.eup %4594  ;;  %2706 = vadd.xlane.f32.xlu1 %v2705_v34  ;;  %v2663_v38 = vadd.f32 %v4593_v61, %v4591_v39  ;;  %4620 = vpow2.f32 %v2451_v60  ;;  %v2391_v32 = vmul.f32 1.442695, %v2220_v4  ;;  %v8486_v60 = vld [vmem:[#allocation121_spill] sm:$0xff] }
 0x280   : >> { %v4597_v51 = vpop.eup %4596  ;;  %4622 = vpow2.f32 %v2389_v21 }
 0x281   : >> { %v4599_v45 = vpop.eup %4598  ;;  %2664 = vadd.xlane.f32.xlu0 %v2663_v38  ;;  %v2573_v14 = vadd.f32 %v4597_v51, %v4595_v2  ;;  %4624 = vpow2.f32 %v2391_v32  ;;  %v8487_v38 = vld [vmem:[#allocation122_spill] sm:$0xff] }
 0x282   : >> { %v4601_v20 = vpop.eup %4600  ;;  %4626 = vlog2.f32 %v8468_v15 }
 0x283   : >> { %v4603_v52 = vpop.eup %4602  ;;  %2574 = vadd.xlane.f32.xlu1 %v2573_v14  ;;  %v2708_v7 = vadd.f32 %v4601_v20, %v4599_v45  ;;  %4628 = vlog2.f32 %v8469_v29 }
 0x284   : >> { %v4605_v18 = vpop.eup %4604  ;;  %4630 = vlog2.f32 %v8470_v22 }
 0x285   : >> { %v4607_v3 = vpop.eup %4606  ;;  %2709 = vadd.xlane.f32.xlu0 %v2708_v7  ;;  %v2666_v49 = vadd.f32 %v4605_v18, %v4603_v52  ;;  %4632 = vlog2.f32 %v8471_v53 }
 0x286   : >> { %v4609_v0 = vpop.eup %4608  ;;  %4634 = vlog2.f32 %v8472_v55 }
 0x287   : >> { %v4611_v56 = vpop.eup %4610  ;;  %2667 = vadd.xlane.f32.xlu1 %v2666_v49  ;;  %v2621_v48 = vadd.f32 %v4609_v0, %v4607_v3  ;;  %4636 = vlog2.f32 %v8473_v17 }
 0x288   : >> { %v4613_v10 = vpop.eup %4612  ;;  %4638 = vlog2.f32 %v8474_v54 }
 0x289   : >> { %v4615_v12 = vpop.eup %4614  ;;  %2622 = vadd.xlane.f32.xlu0 %v2621_v48  ;;  %v2576_v36 = vadd.f32 %v4613_v10, %v4611_v56  ;;  %4640 = vlog2.f32 %v8475_v28 }
 0x28a   : >> { %v4617_v58 = vpop.eup %4616  ;;  %4642 = vlog2.f32 %v8476_v37 }
 0x28b   : >> { %v4619_v62 = vpop.eup %4618  ;;  %2577 = vadd.xlane.f32.xlu1 %v2576_v36  ;;  %v2711_v23 = vadd.f32 %v4617_v58, %v4615_v12  ;;  %4644 = vlog2.f32 %v8477_v24 }
 0x28c   : >> { %v4621_v33 = vpop.eup %4620  ;;  %4646 = vlog2.f32 %v8478_v27 }
 0x28d   : >> { %v4623_v43 = vpop.eup %4622  ;;  %2712 = vadd.xlane.f32.xlu0 %v2711_v23  ;;  %v2669_v46 = vadd.f32 %v4621_v33, %v4619_v62  ;;  %4648 = vlog2.f32 %v8479_v35 }
 0x28e   : >> { %v4625_v31 = vpop.eup %4624  ;;  %4650 = vlog2.f32 %v8480_v44 }
 0x28f   : >> { %v4627_v26 = vpop.eup %4626  ;;  %2670 = vadd.xlane.f32.xlu1 %v2669_v46  ;;  %v2624_v59 = vadd.f32 %v4625_v31, %v4623_v43  ;;  %4652 = vlog2.f32 %v8481_v1 }
 0x290   : >> { %v4629_v63 = vpop.eup %4628  ;;  %v1945_v16 = vmul.f32 0.6931472, %v4627_v26  ;;  %4654 = vlog2.f32 %v8482_v6 }
 0x291   : >> { %v4631_v41 = vpop.eup %4630  ;;  %2625 = vadd.xlane.f32.xlu0 %v2624_v59  ;;  %v1947_v30 = vmul.f32 0.6931472, %v4629_v63  ;;  %4656 = vlog2.f32 %v8483_v57 }
 0x292   : >> { %v4633_v40 = vpop.eup %4632  ;;  %v2189_v19 = vmul.f32 %v1945_v16, %v8443_v13  ;;  %v2125_v8 = vmul.f32 0.6931472, %v4631_v41  ;;  %4658 = vlog2.f32 %v8484_v9 }
 0x293   : >> { %v4635_v11 = vpop.eup %4634  ;;  %v2190_v50 = vmul.f32 %v1947_v30, %v8443_v13  ;;  %v2127_v25 = vmul.f32 0.6931472, %v4633_v40  ;;  %4660 = vlog2.f32 %v8485_v47 }
 0x294   : >> { %v4637_v5 = vpop.eup %4636  ;;  %v2329_v42 = vmul.f32 1.442695, %v2189_v19  ;;  %v2279_v39 = vmul.f32 %v2125_v8, %v8443_v13  ;;  %v2069_v34 = vmul.f32 0.6931472, %v4635_v11  ;;  %4662 = vlog2.f32 %v8486_v60 }
 0x295   : >> { %v4639_v4 = vpop.eup %4638  ;;  %v2331_v61 = vmul.f32 1.442695, %v2190_v50  ;;  %v2280_v21 = vmul.f32 %v2127_v25, %v8443_v13  ;;  %v2071_v2 = vmul.f32 0.6931472, %v4637_v5  ;;  %4664 = vlog2.f32 %v8487_v38 }
 0x296   : >> { %v4641_v32 = vpop.eup %4640  ;;  %4666 = vpow2.f32 %v2329_v42  ;;  %v2509_v51 = vmul.f32 1.442695, %v2279_v39  ;;  %v2251_v45 = vmul.f32 %v2069_v34, %v8443_v13  ;;  %v2009_v14 = vmul.f32 0.6931472, %v4639_v4 }
 0x297   : >> { %v4643_v20 = vpop.eup %4642  ;;  %4668 = vpow2.f32 %v2331_v61  ;;  %v2511_v15 = vmul.f32 1.442695, %v2280_v21  ;;  %v2252_v52 = vmul.f32 %v2071_v2, %v8443_v13  ;;  %v2011_v7 = vmul.f32 0.6931472, %v4641_v32 }
 0x298   : >> { %v4645_v29 = vpop.eup %4644  ;;  %4670 = vpow2.f32 %v2509_v51  ;;  %v2453_v18 = vmul.f32 1.442695, %v2251_v45  ;;  %v2221_v22 = vmul.f32 %v2009_v14, %v8443_v13  ;;  %v1949_v3 = vmul.f32 0.6931472, %v4643_v20 }
 0x299   : >> { %v4647_v49 = vpop.eup %4646  ;;  %4672 = vpow2.f32 %v2511_v15  ;;  %v2455_v53 = vmul.f32 1.442695, %v2252_v52  ;;  %v2222_v0 = vmul.f32 %v2011_v7, %v8443_v13  ;;  %v1951_v55 = vmul.f32 0.6931472, %v4645_v29 }
 0x29a   : >> { %v4649_v56 = vpop.eup %4648  ;;  %4674 = vpow2.f32 %v2453_v18  ;;  %v2393_v48 = vmul.f32 1.442695, %v2221_v22  ;;  %v2191_v17 = vmul.f32 %v1949_v3, %v8443_v13  ;;  %v2129_v10 = vmul.f32 0.6931472, %v4647_v49  ;;  %v8488_v18 = vld [vmem:[#allocation93_spill] sm:$0xff]  ;;  %v8489_v49 = vld [vmem:[#allocation94_spill] sm:$0xff] }
 0x29b   : >> { %v4651_v54 = vpop.eup %4650  ;;  %4676 = vpow2.f32 %v2455_v53  ;;  %v2395_v12 = vmul.f32 1.442695, %v2222_v0  ;;  %v2192_v36 = vmul.f32 %v1951_v55, %v8443_v13  ;;  %v2131_v28 = vmul.f32 0.6931472, %v4649_v56  ;;  %v8490_v0 = vld [vmem:[#allocation63_spill] sm:$0xff] }
 0x29c   : >> { %v4653_v58 = vpop.eup %4652  ;;  %4678 = vpow2.f32 %v2393_v48  ;;  %v2333_v37 = vmul.f32 1.442695, %v2191_v17  ;;  %v2281_v62 = vmul.f32 %v2129_v10, %v8443_v13  ;;  %v2073_v23 = vmul.f32 0.6931472, %v4651_v54  ;;  %v8491_v48 = vld [vmem:[#allocation64_spill] sm:$0xff]  ;;  %v8492_v10 = vld [vmem:[#allocation37_spill] sm:$0xff] }
 0x29d   : >> { %v4655_v24 = vpop.eup %4654  ;;  %4680 = vpow2.f32 %v2395_v12  ;;  %v2335_v33 = vmul.f32 1.442695, %v2192_v36  ;;  %v2282_v27 = vmul.f32 %v2131_v28, %v8443_v13  ;;  %v2075_v43 = vmul.f32 0.6931472, %v4653_v58  ;;  %v8493_v36 = vld [vmem:[#allocation38_spill] sm:$0xff]  ;;  %v8494_v58 = vld [vmem:[#allocation123_spill] sm:$0xff] }
 0x29e   : >> { %v4657_v46 = vpop.eup %4656  ;;  %4682 = vpow2.f32 %v2333_v37  ;;  %v2513_v35 = vmul.f32 1.442695, %v2281_v62  ;;  %v2253_v31 = vmul.f32 %v2073_v23, %v8443_v13  ;;  %v2013_v44 = vmul.f32 0.6931472, %v4655_v24  ;;  %v8495_v23 = vld [vmem:[#allocation124_spill] sm:$0xff] }
 0x29f   : >> { %v4659_v26 = vpop.eup %4658  ;;  %4684 = vpow2.f32 %v2335_v33  ;;  %v2515_v59 = vmul.f32 1.442695, %v2282_v27  ;;  %v2254_v1 = vmul.f32 %v2075_v43, %v8443_v13  ;;  %v2015_v63 = vmul.f32 0.6931472, %v4657_v46  ;;  %v8496_v33 = vld [vmem:[#allocation95_spill] sm:$0xff]  ;;  %v8497_v46 = vld [vmem:[#allocation96_spill] sm:$0xff] }
 0x2a0   : >> { %v4661_v16 = vpop.eup %4660  ;;  %4686 = vpow2.f32 %v2513_v35  ;;  %v2457_v6 = vmul.f32 1.442695, %v2253_v31  ;;  %v2223_v41 = vmul.f32 %v2013_v44, %v8443_v13  ;;  %v1953_v30 = vmul.f32 0.6931472, %v4659_v26  ;;  %v8498_v31 = vld [vmem:[#allocation65_spill] sm:$0xff] }
 0x2a1   : >> { %v4663_v57 = vpop.eup %4662  ;;  %4688 = vpow2.f32 %v2515_v59  ;;  %v2459_v40 = vmul.f32 1.442695, %v2254_v1  ;;  %v2224_v19 = vmul.f32 %v2015_v63, %v8443_v13  ;;  %v1955_v8 = vmul.f32 0.6931472, %v4661_v16  ;;  %v8499_v59 = vld [vmem:[#allocation66_spill] sm:$0xff]  ;;  %v8500_v63 = vld [vmem:[#allocation39_spill] sm:$0xff] }
 0x2a2   : >> { %v4665_v9 = vpop.eup %4664  ;;  %4690 = vpow2.f32 %v2457_v6  ;;  %v2397_v11 = vmul.f32 1.442695, %v2223_v41  ;;  %v2193_v50 = vmul.f32 %v1953_v30, %v8443_v13  ;;  %v2133_v25 = vmul.f32 0.6931472, %v4663_v57  ;;  %v8501_v41 = vld [vmem:[#allocation40_spill] sm:$0xff] }
 0x2a3   : >> { %v4667_v47 = vpop.eup %4666  ;;  %4692 = vpow2.f32 %v2459_v40  ;;  %v2399_v5 = vmul.f32 1.442695, %v2224_v19  ;;  %v2194_v42 = vmul.f32 %v1955_v8, %v8443_v13  ;;  %v2135_v39 = vmul.f32 0.6931472, %v4665_v9  ;;  %v8502_v40 = vld [vmem:[#allocation125_spill] sm:$0xff]  ;;  %v8503_v9 = vld [vmem:[#allocation126_spill] sm:$0xff] }
 0x2a4   : >> { %v4669_v34 = vpop.eup %4668  ;;  %4694 = vpow2.f32 %v2397_v11  ;;  %v2337_v60 = vmul.f32 1.442695, %v2193_v50  ;;  %v2283_v4 = vmul.f32 %v2133_v25, %v8443_v13 }
 0x2a5   : >> { %v4671_v61 = vpop.eup %4670  ;;  %v2579_v21 = vadd.f32 %v4669_v34, %v4667_v47  ;;  %4696 = vpow2.f32 %v2399_v5  ;;  %v2339_v2 = vmul.f32 1.442695, %v2194_v42  ;;  %v2284_v38 = vmul.f32 %v2135_v39, %v8443_v13  ;;  %v8504_v47 = vld [vmem:[#allocation97_spill] sm:$0xff]  ;;  %v8505_v34 = vld [vmem:[#allocation98_spill] sm:$0xff] }
 0x2a6   : >> { %v4673_v32 = vpop.eup %4672  ;;  %4698 = vpow2.f32 %v2337_v60  ;;  %v2517_v51 = vmul.f32 1.442695, %v2283_v4 }
 0x2a7   : >> { %v4675_v45 = vpop.eup %4674  ;;  %2580 = vadd.xlane.f32.xlu1 %v2579_v21  ;;  %v2714_v14 = vadd.f32 %v4673_v32, %v4671_v61  ;;  %4700 = vpow2.f32 %v2339_v2  ;;  %v2519_v20 = vmul.f32 1.442695, %v2284_v38  ;;  %v8506_v2 = vld [vmem:[#allocation67_spill] sm:$0xff] }
 0x2a8   : >> { %v4677_v15 = vpop.eup %4676  ;;  %4702 = vpow2.f32 %v2517_v51 }
 0x2a9   : >> { %v4679_v52 = vpop.eup %4678  ;;  %2715 = vadd.xlane.f32.xlu0 %v2714_v14  ;;  %v2672_v7 = vadd.f32 %v4677_v15, %v4675_v45  ;;  %4704 = vpow2.f32 %v2519_v20  ;;  %v8507_v14 = vld [vmem:[#allocation68_spill] sm:$0xff] }
 0x2aa   : >> { %v4681_v29 = vpop.eup %4680  ;;  %4706 = vlog2.f32 %v8488_v18 }
 0x2ab   : >> { %v4683_v22 = vpop.eup %4682  ;;  %2673 = vadd.xlane.f32.xlu1 %v2672_v7  ;;  %v2627_v3 = vadd.f32 %v4681_v29, %v4679_v52  ;;  %4708 = vlog2.f32 %v8489_v49 }
 0x2ac   : >> { %v4685_v53 = vpop.eup %4684  ;;  %4710 = vlog2.f32 %v8490_v0 }
 0x2ad   : >> { %v4687_v55 = vpop.eup %4686  ;;  %2628 = vadd.xlane.f32.xlu0 %v2627_v3  ;;  %v2582_v56 = vadd.f32 %v4685_v53, %v4683_v22  ;;  %4712 = vlog2.f32 %v8491_v48 }
 0x2ae   : >> { %v4689_v17 = vpop.eup %4688  ;;  %4714 = vlog2.f32 %v8492_v10 }
 0x2af   : >> { %v4691_v54 = vpop.eup %4690  ;;  %2583 = vadd.xlane.f32.xlu1 %v2582_v56  ;;  %v2717_v12 = vadd.f32 %v4689_v17, %v4687_v55  ;;  %4716 = vlog2.f32 %v8493_v36 }
 0x2b0   : >> { %v4693_v28 = vpop.eup %4692  ;;  %4718 = vlog2.f32 %v8494_v58 }
 0x2b1   : >> { %v4695_v37 = vpop.eup %4694  ;;  %2718 = vadd.xlane.f32.xlu0 %v2717_v12  ;;  %v2675_v62 = vadd.f32 %v4693_v28, %v4691_v54  ;;  %4720 = vlog2.f32 %v8495_v23 }
 0x2b2   : >> { %v4697_v24 = vpop.eup %4696  ;;  %4722 = vlog2.f32 %v8496_v33 }
 0x2b3   : >> { %v4699_v27 = vpop.eup %4698  ;;  %2676 = vadd.xlane.f32.xlu1 %v2675_v62  ;;  %v2630_v43 = vadd.f32 %v4697_v24, %v4695_v37  ;;  %4724 = vlog2.f32 %v8497_v46 }
 0x2b4   : >> { %v4701_v35 = vpop.eup %4700  ;;  %4726 = vlog2.f32 %v8498_v31 }
 0x2b5   : >> { %v4703_v44 = vpop.eup %4702  ;;  %2631 = vadd.xlane.f32.xlu0 %v2630_v43  ;;  %v2585_v26 = vadd.f32 %v4701_v35, %v4699_v27  ;;  %4728 = vlog2.f32 %v8499_v59 }
 0x2b6   : >> { %v4705_v1 = vpop.eup %4704  ;;  %4730 = vlog2.f32 %v8500_v63 }
 0x2b7   : >> { %v4707_v16 = vpop.eup %4706  ;;  %2586 = vadd.xlane.f32.xlu1 %v2585_v26  ;;  %v2720_v6 = vadd.f32 %v4705_v1, %v4703_v44  ;;  %4732 = vlog2.f32 %v8501_v41 }
 0x2b8   : >> { %v4709_v30 = vpop.eup %4708  ;;  %v2077_v57 = vmul.f32 0.6931472, %v4707_v16  ;;  %4734 = vlog2.f32 %v8502_v40 }
 0x2b9   : >> { %v4711_v19 = vpop.eup %4710  ;;  %2721 = vadd.xlane.f32.xlu0 %v2720_v6  ;;  %v2079_v8 = vmul.f32 0.6931472, %v4709_v30  ;;  %4736 = vlog2.f32 %v8503_v9 }
 0x2ba   : >> { %v4713_v11 = vpop.eup %4712  ;;  %v2255_v50 = vmul.f32 %v2077_v57, %v8443_v13  ;;  %v2017_v25 = vmul.f32 0.6931472, %v4711_v19  ;;  %4738 = vlog2.f32 %v8504_v47 }
 0x2bb   : >> { %v4715_v5 = vpop.eup %4714  ;;  %v2256_v42 = vmul.f32 %v2079_v8, %v8443_v13  ;;  %v2019_v39 = vmul.f32 0.6931472, %v4713_v11  ;;  %4740 = vlog2.f32 %v8505_v34 }
 0x2bc   : >> { %v4717_v60 = vpop.eup %4716  ;;  %v2461_v4 = vmul.f32 1.442695, %v2255_v50  ;;  %v2225_v61 = vmul.f32 %v2017_v25, %v8443_v13  ;;  %v1957_v21 = vmul.f32 0.6931472, %v4715_v5  ;;  %4742 = vlog2.f32 %v8506_v2 }
 0x2bd   : >> { %v4719_v38 = vpop.eup %4718  ;;  %v2463_v32 = vmul.f32 1.442695, %v2256_v42  ;;  %v2226_v51 = vmul.f32 %v2019_v39, %v8443_v13  ;;  %v1959_v45 = vmul.f32 0.6931472, %v4717_v60  ;;  %4744 = vlog2.f32 %v8507_v14 }
 0x2be   : >> { %v4721_v20 = vpop.eup %4720  ;;  %4746 = vpow2.f32 %v2461_v4  ;;  %v2401_v15 = vmul.f32 1.442695, %v2225_v61  ;;  %v2195_v52 = vmul.f32 %v1957_v21, %v8443_v13  ;;  %v2137_v7 = vmul.f32 0.6931472, %v4719_v38 }
 0x2bf   : >> { %v4723_v29 = vpop.eup %4722  ;;  %4748 = vpow2.f32 %v2463_v32  ;;  %v2403_v18 = vmul.f32 1.442695, %v2226_v51  ;;  %v2196_v22 = vmul.f32 %v1959_v45, %v8443_v13  ;;  %v2139_v3 = vmul.f32 0.6931472, %v4721_v20 }
 0x2c0   : >> { %v4725_v49 = vpop.eup %4724  ;;  %4750 = vpow2.f32 %v2401_v15  ;;  %v2341_v53 = vmul.f32 1.442695, %v2195_v52  ;;  %v2285_v0 = vmul.f32 %v2137_v7, %v8443_v13  ;;  %v2081_v55 = vmul.f32 0.6931472, %v4723_v29 }
 0x2c1   : >> { %v4727_v56 = vpop.eup %4726  ;;  %4752 = vpow2.f32 %v2403_v18  ;;  %v2343_v48 = vmul.f32 1.442695, %v2196_v22  ;;  %v2286_v17 = vmul.f32 %v2139_v3, %v8443_v13  ;;  %v2083_v10 = vmul.f32 0.6931472, %v4725_v49 }
 0x2c2   : >> { %v4729_v54 = vpop.eup %4728  ;;  %4754 = vpow2.f32 %v2341_v53  ;;  %v2521_v12 = vmul.f32 1.442695, %v2285_v0  ;;  %v2257_v36 = vmul.f32 %v2081_v55, %v8443_v13  ;;  %v2021_v28 = vmul.f32 0.6931472, %v4727_v56  ;;  %v8508_v53 = vld [vmem:[#allocation41_spill] sm:$0xff]  ;;  %v8509_v56 = vld [vmem:[#allocation42_spill] sm:$0xff] }
 0x2c3   : >> { %v4731_v58 = vpop.eup %4730  ;;  %4756 = vpow2.f32 %v2343_v48  ;;  %v2523_v37 = vmul.f32 1.442695, %v2286_v17  ;;  %v2258_v62 = vmul.f32 %v2083_v10, %v8443_v13  ;;  %v2023_v23 = vmul.f32 0.6931472, %v4729_v54  ;;  %v8510_v17 = vld [vmem:[#allocation127_spill] sm:$0xff] }
 0x2c4   : >> { %v4733_v24 = vpop.eup %4732  ;;  %4758 = vpow2.f32 %v2521_v12  ;;  %v2465_v33 = vmul.f32 1.442695, %v2257_v36  ;;  %v2227_v27 = vmul.f32 %v2021_v28, %v8443_v13  ;;  %v1961_v43 = vmul.f32 0.6931472, %v4731_v58  ;;  %v8511_v12 = vld [vmem:[#allocation128_spill] sm:$0xff]  ;;  %v8512_v28 = vld [vmem:[#allocation99_spill] sm:$0xff] }
 0x2c5   : >> { %v4735_v46 = vpop.eup %4734  ;;  %4760 = vpow2.f32 %v2523_v37  ;;  %v2467_v35 = vmul.f32 1.442695, %v2258_v62  ;;  %v2228_v31 = vmul.f32 %v2023_v23, %v8443_v13  ;;  %v1963_v44 = vmul.f32 0.6931472, %v4733_v24  ;;  %v8513_v62 = vld [vmem:[#allocation100_spill] sm:$0xff]  ;;  %v8514_v24 = vld [vmem:[#allocation69_spill] sm:$0xff] }
 0x2c6   : >> { %v4737_v26 = vpop.eup %4736  ;;  %4762 = vpow2.f32 %v2465_v33  ;;  %v2405_v59 = vmul.f32 1.442695, %v2227_v27  ;;  %v2197_v1 = vmul.f32 %v1961_v43, %v8443_v13  ;;  %v2141_v63 = vmul.f32 0.6931472, %v4735_v46  ;;  %v8515_v43 = vld [vmem:[#allocation70_spill] sm:$0xff] }
 0x2c7   : >> { %v4739_v16 = vpop.eup %4738  ;;  %4764 = vpow2.f32 %v2467_v35  ;;  %v2407_v6 = vmul.f32 1.442695, %v2228_v31  ;;  %v2198_v41 = vmul.f32 %v1963_v44, %v8443_v13  ;;  %v2143_v30 = vmul.f32 0.6931472, %v4737_v26  ;;  %v8516_v35 = vld [vmem:[#allocation43_spill] sm:$0xff]  ;;  %v8517_v26 = vld [vmem:[#allocation44_spill] sm:$0xff] }
 0x2c8   : >> { %v4741_v57 = vpop.eup %4740  ;;  %4766 = vpow2.f32 %v2405_v59  ;;  %v2345_v40 = vmul.f32 1.442695, %v2197_v1  ;;  %v2287_v19 = vmul.f32 %v2141_v63, %v8443_v13  ;;  %v2085_v8 = vmul.f32 0.6931472, %v4739_v16  ;;  %v8518_v1 = vld [vmem:[#allocation129_spill] sm:$0xff] }
 0x2c9   : >> { %v4743_v9 = vpop.eup %4742  ;;  %4768 = vpow2.f32 %v2407_v6  ;;  %v2347_v11 = vmul.f32 1.442695, %v2198_v41  ;;  %v2288_v50 = vmul.f32 %v2143_v30, %v8443_v13  ;;  %v2087_v25 = vmul.f32 0.6931472, %v4741_v57  ;;  %v8519_v6 = vld [vmem:[#allocation130_spill] sm:$0xff]  ;;  %v8520_v30 = vld [vmem:[#allocation101_spill] sm:$0xff] }
 0x2ca   : >> { %v4745_v47 = vpop.eup %4744  ;;  %4770 = vpow2.f32 %v2345_v40  ;;  %v2525_v5 = vmul.f32 1.442695, %v2287_v19  ;;  %v2259_v42 = vmul.f32 %v2085_v8, %v8443_v13  ;;  %v2025_v39 = vmul.f32 0.6931472, %v4743_v9  ;;  %v8521_v19 = vld [vmem:[#allocation102_spill] sm:$0xff] }
 0x2cb   : >> { %v4747_v34 = vpop.eup %4746  ;;  %4772 = vpow2.f32 %v2347_v11  ;;  %v2527_v60 = vmul.f32 1.442695, %v2288_v50  ;;  %v2260_v4 = vmul.f32 %v2087_v25, %v8443_v13  ;;  %v2027_v61 = vmul.f32 0.6931472, %v4745_v47  ;;  %v8522_v11 = vld [vmem:[#allocation71_spill] sm:$0xff]  ;;  %v8523_v47 = vld [vmem:[#allocation72_spill] sm:$0xff] }
 0x2cc   : >> { %v4749_v21 = vpop.eup %4748  ;;  %4774 = vpow2.f32 %v2525_v5  ;;  %v2469_v2 = vmul.f32 1.442695, %v2259_v42  ;;  %v2229_v38 = vmul.f32 %v2025_v39, %v8443_v13 }
 0x2cd   : >> { %v4751_v32 = vpop.eup %4750  ;;  %v2678_v51 = vadd.f32 %v4749_v21, %v4747_v34  ;;  %4776 = vpow2.f32 %v2527_v60  ;;  %v2471_v45 = vmul.f32 1.442695, %v2260_v4  ;;  %v2230_v14 = vmul.f32 %v2027_v61, %v8443_v13  ;;  %v8524_v34 = vld [vmem:[#allocation45_spill] sm:$0xff]  ;;  %v8525_v21 = vld [vmem:[#allocation46_spill] sm:$0xff] }
 0x2ce   : >> { %v4753_v20 = vpop.eup %4752  ;;  %4778 = vpow2.f32 %v2469_v2  ;;  %v2409_v15 = vmul.f32 1.442695, %v2229_v38 }
 0x2cf   : >> { %v4755_v52 = vpop.eup %4754  ;;  %2679 = vadd.xlane.f32.xlu1 %v2678_v51  ;;  %v2633_v7 = vadd.f32 %v4753_v20, %v4751_v32  ;;  %4780 = vpow2.f32 %v2471_v45  ;;  %v2411_v29 = vmul.f32 1.442695, %v2230_v14  ;;  %v8526_v45 = vld [vmem:[#allocation131_spill] sm:$0xff] }
 0x2d0   : >> { %v4757_v18 = vpop.eup %4756  ;;  %4782 = vpow2.f32 %v2409_v15 }
 0x2d1   : >> { %v4759_v22 = vpop.eup %4758  ;;  %2634 = vadd.xlane.f32.xlu0 %v2633_v7  ;;  %v2588_v3 = vadd.f32 %v4757_v18, %v4755_v52  ;;  %4784 = vpow2.f32 %v2411_v29  ;;  %v8527_v7 = vld [vmem:[#allocation132_spill] sm:$0xff] }
 0x2d2   : >> { %v4761_v49 = vpop.eup %4760  ;;  %4786 = vlog2.f32 %v8508_v53 }
 0x2d3   : >> { %v4763_v0 = vpop.eup %4762  ;;  %2589 = vadd.xlane.f32.xlu1 %v2588_v3  ;;  %v2723_v55 = vadd.f32 %v4761_v49, %v4759_v22  ;;  %4788 = vlog2.f32 %v8509_v56 }
 0x2d4   : >> { %v4765_v48 = vpop.eup %4764  ;;  %4790 = vlog2.f32 %v8510_v17 }
 0x2d5   : >> { %v4767_v10 = vpop.eup %4766  ;;  %2724 = vadd.xlane.f32.xlu0 %v2723_v55  ;;  %v2681_v54 = vadd.f32 %v4765_v48, %v4763_v0  ;;  %4792 = vlog2.f32 %v8511_v12 }
 0x2d6   : >> { %v4769_v36 = vpop.eup %4768  ;;  %4794 = vlog2.f32 %v8512_v28 }
 0x2d7   : >> { %v4771_v58 = vpop.eup %4770  ;;  %2682 = vadd.xlane.f32.xlu1 %v2681_v54  ;;  %v2636_v37 = vadd.f32 %v4769_v36, %v4767_v10  ;;  %4796 = vlog2.f32 %v8513_v62 }
 0x2d8   : >> { %v4773_v23 = vpop.eup %4772  ;;  %4798 = vlog2.f32 %v8514_v24 }
 0x2d9   : >> { %v4775_v33 = vpop.eup %4774  ;;  %2637 = vadd.xlane.f32.xlu0 %v2636_v37  ;;  %v2591_v27 = vadd.f32 %v4773_v23, %v4771_v58  ;;  %4800 = vlog2.f32 %v8515_v43 }
 0x2da   : >> { %v4777_v46 = vpop.eup %4776  ;;  %4802 = vlog2.f32 %v8516_v35 }
 0x2db   : >> { %v4779_v31 = vpop.eup %4778  ;;  %2592 = vadd.xlane.f32.xlu1 %v2591_v27  ;;  %v2726_v44 = vadd.f32 %v4777_v46, %v4775_v33  ;;  %4804 = vlog2.f32 %v8517_v26 }
 0x2dc   : >> { %v4781_v59 = vpop.eup %4780  ;;  %4806 = vlog2.f32 %v8518_v1 }
 0x2dd   : >> { %v4783_v63 = vpop.eup %4782  ;;  %2727 = vadd.xlane.f32.xlu0 %v2726_v44  ;;  %v2684_v16 = vadd.f32 %v4781_v59, %v4779_v31  ;;  %4808 = vlog2.f32 %v8519_v6 }
 0x2de   : >> { %v4785_v41 = vpop.eup %4784  ;;  %4810 = vlog2.f32 %v8520_v30 }
 0x2df   : >> { %v4787_v57 = vpop.eup %4786  ;;  %2685 = vadd.xlane.f32.xlu1 %v2684_v16  ;;  %v2639_v40 = vadd.f32 %v4785_v41, %v4783_v63  ;;  %4812 = vlog2.f32 %v8521_v19 }
 0x2e0   : >> { %v4789_v8 = vpop.eup %4788  ;;  %v1965_v9 = vmul.f32 0.6931472, %v4787_v57  ;;  %4814 = vlog2.f32 %v8522_v11 }
 0x2e1   : >> { %v4791_v50 = vpop.eup %4790  ;;  %2640 = vadd.xlane.f32.xlu0 %v2639_v40  ;;  %v1967_v25 = vmul.f32 0.6931472, %v4789_v8  ;;  %4816 = vlog2.f32 %v8523_v47 }
 0x2e2   : >> { %v4793_v5 = vpop.eup %4792  ;;  %v2199_v42 = vmul.f32 %v1965_v9, %v8443_v13  ;;  %v2145_v39 = vmul.f32 0.6931472, %v4791_v50  ;;  %4818 = vlog2.f32 %v8524_v34 }
 0x2e3   : >> { %v4795_v60 = vpop.eup %4794  ;;  %v2200_v4 = vmul.f32 %v1967_v25, %v8443_v13  ;;  %v2147_v61 = vmul.f32 0.6931472, %v4793_v5  ;;  %4820 = vlog2.f32 %v8525_v21 }
 0x2e4   : >> { %v4797_v2 = vpop.eup %4796  ;;  %v2349_v38 = vmul.f32 1.442695, %v2199_v42  ;;  %v2289_v32 = vmul.f32 %v2145_v39, %v8443_v13  ;;  %v2089_v51 = vmul.f32 0.6931472, %v4795_v60  ;;  %4822 = vlog2.f32 %v8526_v45 }
 0x2e5   : >> { %v4799_v14 = vpop.eup %4798  ;;  %v2351_v20 = vmul.f32 1.442695, %v2200_v4  ;;  %v2290_v15 = vmul.f32 %v2147_v61, %v8443_v13  ;;  %v2091_v52 = vmul.f32 0.6931472, %v4797_v2  ;;  %4824 = vlog2.f32 %v8527_v7 }
 0x2e6   : >> { %v4801_v29 = vpop.eup %4800  ;;  %4826 = vpow2.f32 %v2349_v38  ;;  %v2529_v18 = vmul.f32 1.442695, %v2289_v32  ;;  %v2261_v22 = vmul.f32 %v2089_v51, %v8443_v13  ;;  %v2029_v3 = vmul.f32 0.6931472, %v4799_v14 }
 0x2e7   : >> { %v4803_v49 = vpop.eup %4802  ;;  %4828 = vpow2.f32 %v2351_v20  ;;  %v2531_v53 = vmul.f32 1.442695, %v2290_v15  ;;  %v2262_v0 = vmul.f32 %v2091_v52, %v8443_v13  ;;  %v2031_v55 = vmul.f32 0.6931472, %v4801_v29 }
 0x2e8   : >> { %v4805_v56 = vpop.eup %4804  ;;  %4830 = vpow2.f32 %v2529_v18  ;;  %v2473_v48 = vmul.f32 1.442695, %v2261_v22  ;;  %v2231_v17 = vmul.f32 %v2029_v3, %v8443_v13  ;;  %v1969_v10 = vmul.f32 0.6931472, %v4803_v49 }
 0x2e9   : >> { %v4807_v54 = vpop.eup %4806  ;;  %4832 = vpow2.f32 %v2531_v53  ;;  %v2475_v12 = vmul.f32 1.442695, %v2262_v0  ;;  %v2232_v36 = vmul.f32 %v2031_v55, %v8443_v13  ;;  %v1971_v28 = vmul.f32 0.6931472, %v4805_v56 }
 0x2ea   : >> { %v4809_v58 = vpop.eup %4808  ;;  %4834 = vpow2.f32 %v2473_v48  ;;  %v2413_v37 = vmul.f32 1.442695, %v2231_v17  ;;  %v2201_v62 = vmul.f32 %v1969_v10, %v8443_v13  ;;  %v2149_v23 = vmul.f32 0.6931472, %v4807_v54  ;;  %v8528_v48 = vld [vmem:[#allocation103_spill] sm:$0xff]  ;;  %v8529_v54 = vld [vmem:[#allocation104_spill] sm:$0xff] }
 0x2eb   : >> { %v4811_v24 = vpop.eup %4810  ;;  %4836 = vpow2.f32 %v2475_v12  ;;  %v2415_v33 = vmul.f32 1.442695, %v2232_v36  ;;  %v2202_v27 = vmul.f32 %v1971_v28, %v8443_v13  ;;  %v2151_v43 = vmul.f32 0.6931472, %v4809_v58  ;;  %v8530_v36 = vld [vmem:[#allocation73_spill] sm:$0xff] }
 0x2ec   : >> { %v4813_v46 = vpop.eup %4812  ;;  %4838 = vpow2.f32 %v2413_v37  ;;  %v2353_v35 = vmul.f32 1.442695, %v2201_v62  ;;  %v2291_v31 = vmul.f32 %v2149_v23, %v8443_v13  ;;  %v2093_v44 = vmul.f32 0.6931472, %v4811_v24  ;;  %v8531_v37 = vld [vmem:[#allocation74_spill] sm:$0xff]  ;;  %v8532_v23 = vld [vmem:[#allocation47_spill] sm:$0xff] }
 0x2ed   : >> { %v4815_v26 = vpop.eup %4814  ;;  %4840 = vpow2.f32 %v2415_v33  ;;  %v2355_v59 = vmul.f32 1.442695, %v2202_v27  ;;  %v2292_v1 = vmul.f32 %v2151_v43, %v8443_v13  ;;  %v2095_v63 = vmul.f32 0.6931472, %v4813_v46  ;;  %v8533_v27 = vld [vmem:[#allocation48_spill] sm:$0xff]  ;;  %v8534_v46 = vld [vmem:[#allocation133_spill] sm:$0xff] }
 0x2ee   : >> { %v4817_v16 = vpop.eup %4816  ;;  %4842 = vpow2.f32 %v2353_v35  ;;  %v2533_v6 = vmul.f32 1.442695, %v2291_v31  ;;  %v2263_v41 = vmul.f32 %v2093_v44, %v8443_v13  ;;  %v2033_v30 = vmul.f32 0.6931472, %v4815_v26  ;;  %v8535_v44 = vld [vmem:[#allocation134_spill] sm:$0xff] }
 0x2ef   : >> { %v4819_v57 = vpop.eup %4818  ;;  %4844 = vpow2.f32 %v2355_v59  ;;  %v2535_v40 = vmul.f32 1.442695, %v2292_v1  ;;  %v2264_v19 = vmul.f32 %v2095_v63, %v8443_v13  ;;  %v2035_v8 = vmul.f32 0.6931472, %v4817_v16  ;;  %v8536_v59 = vld [vmem:[#allocation105_spill] sm:$0xff]  ;;  %v8537_v16 = vld [vmem:[#allocation106_spill] sm:$0xff] }
 0x2f0   : >> { %v4821_v9 = vpop.eup %4820  ;;  %4846 = vpow2.f32 %v2533_v6  ;;  %v2477_v11 = vmul.f32 1.442695, %v2263_v41  ;;  %v2233_v50 = vmul.f32 %v2033_v30, %v8443_v13  ;;  %v1973_v25 = vmul.f32 0.6931472, %v4819_v57  ;;  %v8538_v41 = vld [vmem:[#allocation75_spill] sm:$0xff] }
 0x2f1   : >> { %v4823_v47 = vpop.eup %4822  ;;  %4848 = vpow2.f32 %v2535_v40  ;;  %v2479_v5 = vmul.f32 1.442695, %v2264_v19  ;;  %v2234_v42 = vmul.f32 %v2035_v8, %v8443_v13  ;;  %v1975_v39 = vmul.f32 0.6931472, %v4821_v9  ;;  %v8539_v40 = vld [vmem:[#allocation76_spill] sm:$0xff]  ;;  %v8540_v8 = vld [vmem:[#allocation49_spill] sm:$0xff] }
 0x2f2   : >> { %v4825_v34 = vpop.eup %4824  ;;  %4850 = vpow2.f32 %v2477_v11  ;;  %v2417_v60 = vmul.f32 1.442695, %v2233_v50  ;;  %v2203_v4 = vmul.f32 %v1973_v25, %v8443_v13  ;;  %v2153_v61 = vmul.f32 0.6931472, %v4823_v47  ;;  %v8541_v50 = vld [vmem:[#allocation50_spill] sm:$0xff]  ;;  %v7424_v25 = vpop.xlane.xlu1 %2610 }
 0x2f3   : >> { %v4827_v21 = vpop.eup %4826  ;;  %4852 = vpow2.f32 %v2479_v5  ;;  %v2419_v2 = vmul.f32 1.442695, %v2234_v42  ;;  %v2204_v38 = vmul.f32 %v1975_v39, %v8443_v13  ;;  %v2155_v32 = vmul.f32 0.6931472, %v4825_v34  ;;  %v8542_v42 = vld [vmem:[#allocation135_spill] sm:$0xff]  ;;  %v7427_v39 = vpop.xlane.xlu0 %2562 }
 0x2f4   : >> { %v4829_v51 = vpop.eup %4828  ;;  %4854 = vpow2.f32 %v2417_v60  ;;  %v2357_v45 = vmul.f32 1.442695, %v2203_v4  ;;  %v2293_v14 = vmul.f32 %v2153_v61, %v8443_v13  ;;  %v8543_v4 = vld [vmem:[#allocation136_spill] sm:$0xff] }
 0x2f5   : >> { %v4831_v20 = vpop.eup %4830  ;;  %v2594_v15 = vadd.f32 %v4829_v51, %v4827_v21  ;;  %4856 = vpow2.f32 %v2419_v2  ;;  %v2359_v52 = vmul.f32 1.442695, %v2204_v38  ;;  %v2294_v7 = vmul.f32 %v2155_v32, %v8443_v13  ;;  %v8544_v38 = vld [vmem:[#allocation107_spill] sm:$0xff] }
 0x2f6   : >> { %v4833_v29 = vpop.eup %4832  ;;  %4858 = vpow2.f32 %v2357_v45  ;;  %v2537_v18 = vmul.f32 1.442695, %v2293_v14  ;;  %v8545_v14 = vld [vmem:[#allocation108_spill] sm:$0xff] }
 0x2f7   : >> { %v4835_v22 = vpop.eup %4834  ;;  %2595 = vadd.xlane.f32.xlu1 %v2594_v15  ;;  %v2729_v3 = vadd.f32 %v4833_v29, %v4831_v20  ;;  %4860 = vpow2.f32 %v2359_v52  ;;  %v2539_v49 = vmul.f32 1.442695, %v2294_v7  ;;  %v8546_v29 = vld [vmem:[#allocation77_spill] sm:$0xff] }
 0x2f8   : >> { %v4837_v53 = vpop.eup %4836  ;;  %4862 = vpow2.f32 %v2537_v18 }
 0x2f9   : >> { %v4839_v0 = vpop.eup %4838  ;;  %2730 = vadd.xlane.f32.xlu0 %v2729_v3  ;;  %v2687_v55 = vadd.f32 %v4837_v53, %v4835_v22  ;;  %4864 = vpow2.f32 %v2539_v49  ;;  %v8547_v53 = vld [vmem:[#allocation78_spill] sm:$0xff] }
 0x2fa   : >> { %v4841_v56 = vpop.eup %4840  ;;  %4866 = vlog2.f32 %v8528_v48 }
 0x2fb   : >> { %v4843_v17 = vpop.eup %4842  ;;  %2688 = vadd.xlane.f32.xlu1 %v2687_v55  ;;  %v2642_v10 = vadd.f32 %v4841_v56, %v4839_v0  ;;  %4868 = vlog2.f32 %v8529_v54  ;;  %v7438_v0 = vpop.xlane.xlu1 %2613 }
 0x2fc   : >> { %v4845_v12 = vpop.eup %4844  ;;  %4870 = vlog2.f32 %v8530_v36 }
 0x2fd   : >> { %v4847_v28 = vpop.eup %4846  ;;  %2643 = vadd.xlane.f32.xlu0 %v2642_v10  ;;  %v2597_v58 = vadd.f32 %v4845_v12, %v4843_v17  ;;  %4872 = vlog2.f32 %v8531_v37  ;;  %v7441_v10 = vpop.xlane.xlu0 %2565 }
 0x2fe   : >> { %v4849_v62 = vpop.eup %4848  ;;  %4874 = vlog2.f32 %v8532_v23 }
 0x2ff   : >> { %v4851_v24 = vpop.eup %4850  ;;  %2598 = vadd.xlane.f32.xlu1 %v2597_v58  ;;  %v2732_v33 = vadd.f32 %v4849_v62, %v4847_v28  ;;  %4876 = vlog2.f32 %v8533_v27 }
 0x300   : >> { %v4853_v43 = vpop.eup %4852  ;;  %4878 = vlog2.f32 %v8534_v46 }
 0x301   : >> { %v4855_v35 = vpop.eup %4854  ;;  %2733 = vadd.xlane.f32.xlu0 %v2732_v33  ;;  %v2690_v31 = vadd.f32 %v4853_v43, %v4851_v24  ;;  %4880 = vlog2.f32 %v8535_v44 }
 0x302   : >> { %v4857_v26 = vpop.eup %4856  ;;  %4882 = vlog2.f32 %v8536_v59 }
 0x303   : >> { %v4859_v1 = vpop.eup %4858  ;;  %2691 = vadd.xlane.f32.xlu1 %v2690_v31  ;;  %v2645_v63 = vadd.f32 %v4857_v26, %v4855_v35  ;;  %4884 = vlog2.f32 %v8537_v16  ;;  %v7448_v16 = vpop.xlane.xlu1 %2616 }
 0x304   : >> { %v4861_v6 = vpop.eup %4860  ;;  %4886 = vlog2.f32 %v8538_v41 }
 0x305   : >> { %v4863_v30 = vpop.eup %4862  ;;  %2646 = vadd.xlane.f32.xlu0 %v2645_v63  ;;  %v2600_v57 = vadd.f32 %v4861_v6, %v4859_v1  ;;  %4888 = vlog2.f32 %v8539_v40  ;;  %v7451_v40 = vpop.xlane.xlu0 %2568 }
 0x306   : >> { %v4865_v19 = vpop.eup %4864  ;;  %4890 = vlog2.f32 %v8540_v8 }
 0x307   : >> { %v4867_v9 = vpop.eup %4866  ;;  %2601 = vadd.xlane.f32.xlu1 %v2600_v57  ;;  %v2735_v11 = vadd.f32 %v4865_v19, %v4863_v30  ;;  %4892 = vlog2.f32 %v8541_v50 }
 0x308   : >> { %v4869_v47 = vpop.eup %4868  ;;  %v2097_v5 = vmul.f32 0.6931472, %v4867_v9  ;;  %4894 = vlog2.f32 %v8542_v42 }
 0x309   : >> { %v4871_v34 = vpop.eup %4870  ;;  %2736 = vadd.xlane.f32.xlu0 %v2735_v11  ;;  %v2099_v60 = vmul.f32 0.6931472, %v4869_v47  ;;  %4896 = vlog2.f32 %v8543_v4 }
 0x30a   : >> { %v4873_v61 = vpop.eup %4872  ;;  %v2265_v21 = vmul.f32 %v2097_v5, %v8443_v13  ;;  %v2037_v2 = vmul.f32 0.6931472, %v4871_v34  ;;  %4898 = vlog2.f32 %v8544_v38 }
 0x30b   : >> { %v4875_v32 = vpop.eup %4874  ;;  %v2266_v51 = vmul.f32 %v2099_v60, %v8443_v13  ;;  %v2039_v45 = vmul.f32 0.6931472, %v4873_v61  ;;  %4900 = vlog2.f32 %v8545_v14 }
 0x30c   : >> { %v4877_v20 = vpop.eup %4876  ;;  %v2481_v15 = vmul.f32 1.442695, %v2265_v21  ;;  %v2235_v52 = vmul.f32 %v2037_v2, %v8443_v13  ;;  %v1977_v7 = vmul.f32 0.6931472, %v4875_v32  ;;  %4902 = vlog2.f32 %v8546_v29 }
 0x30d   : >> { %v4879_v18 = vpop.eup %4878  ;;  %v2483_v22 = vmul.f32 1.442695, %v2266_v51  ;;  %v2236_v3 = vmul.f32 %v2039_v45, %v8443_v13  ;;  %v1979_v49 = vmul.f32 0.6931472, %v4877_v20  ;;  %4904 = vlog2.f32 %v8547_v53 }
 0x30e   : >> { %v4881_v55 = vpop.eup %4880  ;;  %4906 = vpow2.f32 %v2481_v15  ;;  %v2421_v56 = vmul.f32 1.442695, %v2235_v52  ;;  %v2205_v48 = vmul.f32 %v1977_v7, %v8443_v13  ;;  %v2157_v17 = vmul.f32 0.6931472, %v4879_v18  ;;  %v7458_v15 = vpop.xlane.xlu1 %2661 }
 0x30f   : >> { %v4883_v54 = vpop.eup %4882  ;;  %4908 = vpow2.f32 %v2483_v22  ;;  %v2423_v12 = vmul.f32 1.442695, %v2236_v3  ;;  %v2206_v36 = vmul.f32 %v1979_v49, %v8443_v13  ;;  %v2159_v28 = vmul.f32 0.6931472, %v4881_v55  ;;  %v7461_v22 = vpop.xlane.xlu0 %2658 }
 0x310   : >> { %v4885_v58 = vpop.eup %4884  ;;  %4910 = vpow2.f32 %v2421_v56  ;;  %v2361_v37 = vmul.f32 1.442695, %v2205_v48  ;;  %v2295_v62 = vmul.f32 %v2157_v17, %v8443_v13  ;;  %v2101_v23 = vmul.f32 0.6931472, %v4883_v54 }
 0x311   : >> { %v4887_v24 = vpop.eup %4886  ;;  %4912 = vpow2.f32 %v2423_v12  ;;  %v2363_v33 = vmul.f32 1.442695, %v2206_v36  ;;  %v2296_v27 = vmul.f32 %v2159_v28, %v8443_v13  ;;  %v2103_v43 = vmul.f32 0.6931472, %v4885_v58 }
 0x312   : >> { %v4889_v46 = vpop.eup %4888  ;;  %4914 = vpow2.f32 %v2361_v37  ;;  %v2541_v35 = vmul.f32 1.442695, %v2295_v62  ;;  %v2267_v31 = vmul.f32 %v2101_v23, %v8443_v13  ;;  %v2041_v44 = vmul.f32 0.6931472, %v4887_v24 }
 0x313   : >> { %v4891_v26 = vpop.eup %4890  ;;  %4916 = vpow2.f32 %v2363_v33  ;;  %v2543_v59 = vmul.f32 1.442695, %v2296_v27  ;;  %v2268_v1 = vmul.f32 %v2103_v43, %v8443_v13  ;;  %v2043_v63 = vmul.f32 0.6931472, %v4889_v46  ;;  %v2620_v33 = vpop.xlane.xlu1 %2619 }
 0x314   : >> { %v4893_v6 = vpop.eup %4892  ;;  %4918 = vpow2.f32 %v2541_v35  ;;  %v2485_v41 = vmul.f32 1.442695, %v2267_v31  ;;  %v2237_v30 = vmul.f32 %v2041_v44, %v8443_v13  ;;  %v1981_v57 = vmul.f32 0.6931472, %v4891_v26  ;;  %v2572_v43 = vpop.xlane.xlu0 %2571  ;;  %v8548_v44 = vld [vmem:[#allocation109_spill] sm:$0xff] }
 0x315   : >> { %v4895_v19 = vpop.eup %4894  ;;  %4920 = vpow2.f32 %v2543_v59  ;;  %v2487_v8 = vmul.f32 1.442695, %v2268_v1  ;;  %v2238_v9 = vmul.f32 %v2043_v63, %v8443_v13  ;;  %v1983_v11 = vmul.f32 0.6931472, %v4893_v6  ;;  %v8549_v1 = vld [vmem:[#allocation110_spill] sm:$0xff]  ;;  %v8550_v6 = vld [vmem:[#allocation137_spill] sm:$0xff] }
 0x316   : >> { %v4897_v50 = vpop.eup %4896  ;;  %4922 = vpow2.f32 %v2485_v41  ;;  %v2425_v47 = vmul.f32 1.442695, %v2237_v30  ;;  %v2207_v5 = vmul.f32 %v1981_v57, %v8443_v13  ;;  %v2161_v42 = vmul.f32 0.6931472, %v4895_v19  ;;  %v8551_v57 = vld [vmem:[#allocation138_spill] sm:$0xff] }
 0x317   : >> { %v4899_v34 = vpop.eup %4898  ;;  %4924 = vpow2.f32 %v2487_v8  ;;  %v2427_v60 = vmul.f32 1.442695, %v2238_v9  ;;  %v2208_v4 = vmul.f32 %v1983_v11, %v8443_v13  ;;  %v2163_v61 = vmul.f32 0.6931472, %v4897_v50  ;;  %v2707_v19 = vpop.xlane.xlu1 %2706  ;;  %v8552_v9 = vld [vmem:[#allocation139_spill] sm:$0xff] }
 0x318   : >> { %v4901_v21 = vpop.eup %4900  ;;  %4926 = vpow2.f32 %v2425_v47  ;;  %v2365_v2 = vmul.f32 1.442695, %v2207_v5  ;;  %v2297_v38 = vmul.f32 %v2161_v42, %v8443_v13  ;;  %v2105_v32 = vmul.f32 0.6931472, %v4899_v34  ;;  %v2665_v50 = vpop.xlane.xlu0 %2664  ;;  %v8553_v42 = vld [vmem:[#allocation140_spill] sm:$0xff] }
 0x319   : >> { %v4903_v51 = vpop.eup %4902  ;;  %4928 = vpow2.f32 %v2427_v60  ;;  %v2367_v45 = vmul.f32 1.442695, %v2208_v4  ;;  %v2298_v14 = vmul.f32 %v2163_v61, %v8443_v13  ;;  %v2107_v20 = vmul.f32 0.6931472, %v4901_v21  ;;  %v8554_v4 = vld [vmem:[#allocation141_spill] sm:$0xff] }
 0x31a   : >> { %v4905_v52 = vpop.eup %4904  ;;  %4930 = vpow2.f32 %v2365_v2  ;;  %v2545_v7 = vmul.f32 1.442695, %v2297_v38  ;;  %v2269_v29 = vmul.f32 %v2105_v32, %v8443_v13  ;;  %v2045_v18 = vmul.f32 0.6931472, %v4903_v51  ;;  %v8555_v38 = vld [vmem:[#allocation142_spill] sm:$0xff] }
 0x31b   : >> { %v4907_v3 = vpop.eup %4906  ;;  %4932 = vpow2.f32 %v2367_v45  ;;  %v2547_v49 = vmul.f32 1.442695, %v2298_v14  ;;  %v2270_v53 = vmul.f32 %v2107_v20, %v8443_v13  ;;  %v2047_v55 = vmul.f32 0.6931472, %v4905_v52  ;;  %v7480_v20 = vpop.xlane.xlu1 %2574 }
 0x31c   : >> { %v4909_v56 = vpop.eup %4908  ;;  %4934 = vpow2.f32 %v2545_v7  ;;  %v2489_v48 = vmul.f32 1.442695, %v2269_v29  ;;  %v2239_v17 = vmul.f32 %v2045_v18, %v8443_v13  ;;  %v2769_v11 = vmul.f32 0.00390625, %v7424_v25  ;;  %v7483_v7 = vpop.xlane.xlu0 %2709 }
 0x31d   : >> { %v4911_v54 = vpop.eup %4910  ;;  %v2693_v12 = vadd.f32 %v4909_v56, %v4907_v3  ;;  %4936 = vpow2.f32 %v2547_v49  ;;  %v2491_v36 = vmul.f32 1.442695, %v2270_v53  ;;  %v2240_v28 = vmul.f32 %v2047_v55, %v8443_v13 }
 0x31e   : >> { %v4913_v58 = vpop.eup %4912  ;;  %4938 = vpow2.f32 %v2489_v48  ;;  %v2429_v37 = vmul.f32 1.442695, %v2239_v17  ;;  %v2753_v34 = vmul.f32 0.00390625, %v7427_v39  ;;  %v2770_v61 = vmul.f32 0.00390625, %v7438_v0 }
 0x31f   : >> { %v4915_v62 = vpop.eup %4914  ;;  %2694 = vadd.xlane.f32.xlu1 %v2693_v12  ;;  %v2648_v23 = vadd.f32 %v4913_v58, %v4911_v54  ;;  %4940 = vpow2.f32 %v2491_v36  ;;  %v2431_v24 = vmul.f32 1.442695, %v2240_v28  ;;  %v2754_v25 = vmul.f32 0.00390625, %v7441_v10  ;;  %v7486_v12 = vpop.xlane.xlu1 %2667 }
 0x320   : >> { %v4917_v27 = vpop.eup %4916  ;;  %4942 = vpow2.f32 %v2429_v37  ;;  %v2771_v51 = vmul.f32 0.00390625, %v7448_v16  ;;  %v2755_v39 = vmul.f32 0.00390625, %v7451_v40  ;;  %v2786_v52 = vmul.f32 0.00390625, %v7458_v15  ;;  %v7492_v37 = vpop.xlane.xlu0 %2622 }
 0x321   : >> { %v4919_v46 = vpop.eup %4918  ;;  %2649 = vadd.xlane.f32.xlu0 %v2648_v23  ;;  %v2603_v35 = vadd.f32 %v4917_v27, %v4915_v62  ;;  %4944 = vpow2.f32 %v2431_v24  ;;  %v2785_v16 = vmul.f32 0.00390625, %v7461_v22  ;;  %v2772_v3 = vmul.f32 0.00390625, %v2620_v33 }
 0x322   : >> { %v4921_v31 = vpop.eup %4920  ;;  %4946 = vlog2.f32 %v8548_v44  ;;  %v2756_v53 = vmul.f32 0.00390625, %v2572_v43  ;;  %v2801_v15 = vmul.f32 0.00390625, %v2707_v19  ;;  %v2787_v54 = vmul.f32 0.00390625, %v2665_v50 }
 0x323   : >> { %v4923_v26 = vpop.eup %4922  ;;  %2604 = vadd.xlane.f32.xlu1 %v2603_v35  ;;  %v2738_v59 = vadd.f32 %v4921_v31, %v4919_v46  ;;  %4948 = vlog2.f32 %v8549_v1  ;;  %v7490_v58 = vstv %s5643_s11  ;;  %v3202_v33 = vlaneseq }
 0x324   : >> { %v4925_v63 = vpop.eup %4924  ;;  %4950 = vlog2.f32 %v8550_v6 }
 0x325   : >> { %v4927_v41 = vpop.eup %4926  ;;  %2739 = vadd.xlane.f32.xlu0 %v2738_v59  ;;  %v2696_v30 = vadd.f32 %v4925_v63, %v4923_v26  ;;  %4952 = vlog2.f32 %v8551_v57 }
 0x326   : >> { %v4929_v8 = vpop.eup %4928  ;;  %4954 = vlog2.f32 %v8552_v9  ;;  %v7499_v9 = vpop.xlane.xlu1 %2577 }
 0x327   : >> { %v4931_v47 = vpop.eup %4930  ;;  %2697 = vadd.xlane.f32.xlu1 %v2696_v30  ;;  %v2651_v5 = vadd.f32 %v4929_v8, %v4927_v41  ;;  %4956 = vlog2.f32 %v8553_v42  ;;  %v7502_v42 = vpop.xlane.xlu0 %2712 }
 0x328   : >> { %v4933_v60 = vpop.eup %4932  ;;  %4958 = vlog2.f32 %v8554_v4 }
 0x329   : >> { %v4935_v21 = vpop.eup %4934  ;;  %2652 = vadd.xlane.f32.xlu0 %v2651_v5  ;;  %v2606_v2 = vadd.f32 %v4933_v60, %v4931_v47  ;;  %4960 = vlog2.f32 %v8555_v38 }
 0x32a   : >> { %v4937_v32 = vpop.eup %4936  ;;  %4962 = vlog2.f32 %v2769_v11 }
 0x32b   : >> { %v4939_v45 = vpop.eup %4938  ;;  %2607 = vadd.xlane.f32.xlu1 %v2606_v2  ;;  %v2741_v14 = vadd.f32 %v4937_v32, %v4935_v21  ;;  %4964 = vlog2.f32 %v2753_v34 }
 0x32c   : >> { %v4941_v0 = vpop.eup %4940  ;;  %4966 = vlog2.f32 %v2770_v61 }
 0x32d   : >> { %v4943_v29 = vpop.eup %4942  ;;  %2742 = vadd.xlane.f32.xlu0 %v2741_v14  ;;  %v2699_v10 = vadd.f32 %v4941_v0, %v4939_v45  ;;  %4968 = vlog2.f32 %v2754_v25 }
 0x32e   : >> { %v4945_v18 = vpop.eup %4944  ;;  %4970 = vlog2.f32 %v2771_v51 }
 0x32f   : >> { %v4947_v49 = vpop.eup %4946  ;;  %2700 = vadd.xlane.f32.xlu1 %v2699_v10  ;;  %v2654_v40 = vadd.f32 %v4945_v18, %v4943_v29  ;;  %4972 = vlog2.f32 %v2755_v39 }
 0x330   : >> { %v4949_v55 = vpop.eup %4948  ;;  %v2109_v56 = vmul.f32 0.6931472, %v4947_v49  ;;  %4974 = vlog2.f32 %v2786_v52  ;;  %v7509_v49 = vpop.xlane.xlu1 %2670 }
 0x331   : >> { %v4951_v48 = vpop.eup %4950  ;;  %2655 = vadd.xlane.f32.xlu0 %v2654_v40  ;;  %v2111_v17 = vmul.f32 0.6931472, %v4949_v55  ;;  %4976 = vlog2.f32 %v2785_v16 }
 0x332   : >> { %v4953_v22 = vpop.eup %4952  ;;  %v2271_v36 = vmul.f32 %v2109_v56, %v8443_v13  ;;  %v2165_v28 = vmul.f32 0.6931472, %v4951_v48  ;;  %4978 = vlog2.f32 %v2772_v3 }
 0x333   : >> { %v4955_v62 = vpop.eup %4954  ;;  %v2272_v23 = vmul.f32 %v2111_v17, %v8443_v13  ;;  %v2167_v24 = vmul.f32 0.6931472, %v4953_v22  ;;  %4980 = vlog2.f32 %v2756_v53 }
 0x334   : >> { %v4957_v27 = vpop.eup %4956  ;;  %v2493_v43 = vmul.f32 1.442695, %v2271_v36  ;;  %v2299_v46 = vmul.f32 %v2165_v28, %v8443_v13  ;;  %v2169_v35 = vmul.f32 0.6931472, %v4955_v62  ;;  %4982 = vlog2.f32 %v2801_v15  ;;  %v7512_v15 = vpop.xlane.xlu0 %2625 }
 0x335   : >> { %v4959_v31 = vpop.eup %4958  ;;  %v2495_v44 = vmul.f32 1.442695, %v2272_v23  ;;  %v2300_v26 = vmul.f32 %v2167_v24, %v8443_v13  ;;  %v2171_v59 = vmul.f32 0.6931472, %v4957_v27  ;;  %4984 = vlog2.f32 %v2787_v54 }
 0x336   : >> { %v4961_v1 = vpop.eup %4960  ;;  %4986 = vpow2.f32 %v2493_v43  ;;  %v2549_v63 = vmul.f32 1.442695, %v2299_v46  ;;  %v2301_v6 = vmul.f32 %v2169_v35, %v8443_v13  ;;  %v2173_v41 = vmul.f32 0.6931472, %v4959_v31 }
 0x337   : >> { %v4963_v30 = vpop.eup %4962  ;;  %4988 = vpow2.f32 %v2495_v44  ;;  %v2551_v57 = vmul.f32 1.442695, %v2300_v26  ;;  %v2302_v19 = vmul.f32 %v2171_v59, %v8443_v13  ;;  %v2175_v8 = vmul.f32 0.6931472, %v4961_v1 }
 0x338   : >> { %v4965_v11 = vpop.eup %4964  ;;  %4990 = vpow2.f32 %v2549_v63  ;;  %v2553_v50 = vmul.f32 1.442695, %v2301_v6  ;;  %v2303_v47 = vmul.f32 %v2173_v41, %v8443_v13  ;;  %v2850_v5 = vmul.f32 0.6931472, %v4963_v30  ;;  %v2581_v6 = vpop.xlane.xlu1 %2580 }
 0x339   : >> { %v4967_v34 = vpop.eup %4966  ;;  %4992 = vpow2.f32 %v2551_v57  ;;  %v2555_v60 = vmul.f32 1.442695, %v2302_v19  ;;  %v2304_v4 = vmul.f32 %v2175_v8, %v8443_v13  ;;  %v2818_v61 = vmul.f32 0.6931472, %v4965_v11  ;;  %v2716_v19 = vpop.xlane.xlu0 %2715 }
 0x33a   : >> { %v4969_v21 = vpop.eup %4968  ;;  %4994 = vpow2.f32 %v2553_v50  ;;  %v2557_v2 = vmul.f32 1.442695, %v2303_v47  ;;  %v2962_v38 = vmul.f32 %v7490_v58, %v2850_v5  ;;  %v2852_v25 = vmul.f32 0.6931472, %v4967_v34 }
 0x33b   : >> { %v4971_v32 = vpop.eup %4970  ;;  %4996 = vpow2.f32 %v2555_v60  ;;  %v2559_v51 = vmul.f32 1.442695, %v2304_v4  ;;  %v2946_v45 = vmul.f32 %v7490_v58, %v2818_v61  ;;  %v2820_v14 = vmul.f32 0.6931472, %v4969_v21 }
 0x33c   : >> { %v4973_v39 = vpop.eup %4972  ;;  %4998 = vpow2.f32 %v2557_v2  ;;  %v3042_v0 = vmul.f32 1.442695, %v2962_v38  ;;  %v2963_v52 = vmul.f32 %v7490_v58, %v2852_v25  ;;  %v2854_v29 = vmul.f32 0.6931472, %v4971_v32 }
 0x33d   : >> { %v4975_v10 = vpop.eup %4974  ;;  %5000 = vpow2.f32 %v2559_v51  ;;  %v3010_v16 = vmul.f32 1.442695, %v2946_v45  ;;  %v2947_v18 = vmul.f32 %v7490_v58, %v2820_v14  ;;  %v2822_v3 = vmul.f32 0.6931472, %v4973_v39  ;;  %v2674_v39 = vpop.xlane.xlu1 %2673 }
 0x33e   : >> { %v4977_v40 = vpop.eup %4976  ;;  %5002 = vpow2.f32 %v3042_v0  ;;  %v3044_v53 = vmul.f32 1.442695, %v2963_v52  ;;  %v2964_v55 = vmul.f32 %v7490_v58, %v2854_v29  ;;  %v2884_v56 = vmul.f32 0.6931472, %v4975_v10  ;;  %v2629_v29 = vpop.xlane.xlu0 %2628 }
 0x33f   : >> { %v4979_v48 = vpop.eup %4978  ;;  %5004 = vpow2.f32 %v3010_v16  ;;  %v3012_v17 = vmul.f32 1.442695, %v2947_v18  ;;  %v2948_v54 = vmul.f32 %v7490_v58, %v2822_v3  ;;  %v2882_v22 = vmul.f32 0.6931472, %v4977_v40 }
 0x340   : >> { %v4981_v36 = vpop.eup %4980  ;;  %5006 = vpow2.f32 %v3044_v53  ;;  %v3046_v28 = vmul.f32 1.442695, %v2964_v55  ;;  %v2979_v62 = vmul.f32 %v7490_v58, %v2884_v56  ;;  %v2856_v23 = vmul.f32 0.6931472, %v4979_v48 }
 0x341   : >> { %v7516_v24 = vpop.eup %4982  ;;  %5008 = vpow2.f32 %v3012_v17  ;;  %v3014_v27 = vmul.f32 1.442695, %v2948_v54  ;;  %v2978_v43 = vmul.f32 %v7490_v58, %v2882_v22  ;;  %v2824_v46 = vmul.f32 0.6931472, %v4981_v36 }
 0x342   : >> { %v4985_v35 = vpop.eup %4984  ;;  %5010 = vpow2.f32 %v3046_v28  ;;  %v3076_v31 = vmul.f32 1.442695, %v2979_v62  ;;  %v2965_v44 = vmul.f32 %v7490_v58, %v2856_v23  ;;  %v7522_v30 = vand.u32 127, %v3202_v33  ;;  %v2584_v62 = vpop.xlane.xlu1 %2583 }
 0x343   : >> { %v4987_v26 = vpop.eup %4986  ;;  %5012 = vpow2.f32 %v3014_v27  ;;  %v3074_v59 = vmul.f32 1.442695, %v2978_v43  ;;  %v2949_v1 = vmul.f32 %v7490_v58, %v2824_v46  ;;  %v2886_v63 = vmul.f32 0.6931472, %v4985_v35  ;;  %v2719_v46 = vpop.xlane.xlu0 %2718 }
 0x344   : >> { %v4989_v41 = vpop.eup %4988  ;;  %5014 = vpow2.f32 %v3076_v31  ;;  %v3048_v57 = vmul.f32 1.442695, %v2965_v44  ;;  %v7526_v34 = vshrl.u32 %v3202_v33, 7  ;;  %v3208_v60 = vadd.s32 4294967288, %v7522_v30 }
 0x345   : >> { %v4991_v8 = vpop.eup %4990  ;;  %v2702_v11 = vadd.f32 %v4989_v41, %v4987_v26  ;;  %5016 = vpow2.f32 %v3074_v59  ;;  %v3016_v50 = vmul.f32 1.442695, %v2949_v1  ;;  %v2980_v47 = vmul.f32 %v7490_v58, %v2886_v63 }
 0x346   : >> { %v4993_v5 = vpop.eup %4992  ;;  %5018 = vpow2.f32 %v3048_v57  ;;  %v2757_v4 = vmul.f32 0.00390625, %v7480_v20  ;;  %v2802_v38 = vmul.f32 0.00390625, %v7483_v7  ;;  %v3215_v32 = vadd.s32 4294967280, %v7522_v30 }
 0x347   : >> { %v4995_v61 = vpop.eup %4994  ;;  %2703 = vadd.xlane.f32.xlu1 %v2702_v11  ;;  %v2744_v21 = vadd.f32 %v4993_v5, %v4991_v8  ;;  %5020 = vpow2.f32 %v3016_v50  ;;  %v3078_v2 = vmul.f32 1.442695, %v2980_v47  ;;  %v2788_v51 = vmul.f32 0.00390625, %v7486_v12 }
 0x348   : >> { %v4997_v25 = vpop.eup %4996  ;;  %v3222_v14 = vadd.s32 4294967272, %v7522_v30  ;;  %v2773_v20 = vmul.f32 0.00390625, %v7492_v37  ;;  %v7537_v52 = vsub.s32 %v7522_v30, %v7526_v34  ;;  %v7540_v7 = vsub.s32 %v3208_v60, %v7526_v34 }
 0x349   : >> { %v4999_v33 = vpop.eup %4998  ;;  %2745 = vadd.xlane.f32.xlu0 %v2744_v21  ;;  %v2747_v45 = vadd.f32 %v4997_v25, %v4995_v61  ;;  %5022 = vpow2.f32 %v3078_v2  ;;  %v2758_v12 = vmul.f32 0.00390625, %v7499_v9  ;;  %v2803_v18 = vmul.f32 0.00390625, %v7502_v42 }
 0x34a   : >> { %v5001_v0 = vpop.eup %5000  ;;  %5024 = vlog2.f32 %v2757_v4  ;;  %v7545_v3 = vsub.s32 %v3215_v32, %v7526_v34  ;;  %v2789_v40 = vmul.f32 0.00390625, %v7509_v49  ;;  %v7549_v9 = vsub.s32 %v3222_v14, %v7526_v34 }
 0x34b   : >> { %v5003_v10 = vpop.eup %5002  ;;  %v2750_v16 = vadd.f32 %v5001_v0, %v4999_v33  ;;  %5026 = vlog2.f32 %v2802_v38  ;;  %v2774_v55 = vmul.f32 0.00390625, %v7512_v15  ;;  %v2759_v56 = vmul.f32 0.00390625, %v2581_v6 }
 0x34c   : >> { %v5005_v37 = vpop.eup %5004  ;;  %5028 = vlog2.f32 %v2788_v51  ;;  %v3316_v42 = vrot.slane %v5003_v10, %v7537_v52  ;;  %v2804_v54 = vmul.f32 0.00390625, %v2716_v19  ;;  %v2914_v28 = vmul.f32 0.6931472, %v7516_v24 }
 0x34d   : >> { %v5007_v53 = vpop.eup %5006  ;;  %2748 = vadd.xlane.f32.xlu0 %v2747_v45  ;;  %2751 = vadd.xlane.f32.xlu1 %v2750_v16  ;;  %5030 = vlog2.f32 %v2773_v20  ;;  %v3207_v49 = vrot.slane %v5005_v37, %v7537_v52  ;;  %v2790_v43 = vmul.f32 0.00390625, %v2674_v39  ;;  %v2775_v26 = vmul.f32 0.00390625, %v2629_v29 }
 0x34e   : >> { %v5009_v48 = vpop.eup %5008  ;;  %v3320_v17 = vrot.slane %v5007_v53, %v7540_v7  ;;  %5032 = vlog2.f32 %v2758_v12  ;;  %v2760_v63 = vmul.f32 0.00390625, %v2584_v62  ;;  %v2805_v19 = vmul.f32 0.00390625, %v2719_v46  ;;  %v7587_v46 = vpop.xlane.xlu1 %2676 }
 0x34f   : >> { %v5011_v22 = vpop.eup %5010  ;;  %v3212_v36 = vrot.slane %v5009_v48, %v7540_v7  ;;  %5034 = vlog2.f32 %v2803_v18  ;;  %v2994_v5 = vmul.f32 %v7490_v58, %v2914_v28  ;;  %v3229_v16 = vadd.s32 4294967264, %v7522_v30 }
 0x350   : >> { %v5013_v23 = vpop.eup %5012  ;;  %v3321_v15 = vsel %vm3213_vm2, %v3320_v17, %v3316_v42  ;;  %v3325_v27 = vrot.slane %v5011_v22, %v7545_v3  ;;  %5036 = vlog2.f32 %v2789_v40 }
 0x351   : >> { %v5015_v35 = vpop.eup %5014  ;;  %v3214_v31 = vsel %vm3213_vm2, %v3212_v36, %v3207_v49  ;;  %v3219_v44 = vrot.slane %v5013_v23, %v7545_v3  ;;  %5038 = vlog2.f32 %v2774_v55  ;;  %v3106_v51 = vmul.f32 1.442695, %v2994_v5 }
 0x352   : >> { %v5017_v59 = vpop.eup %5016  ;;  %v3326_v24 = vsel %vm3220_vm3, %v3325_v27, %v3321_v15  ;;  %v3399_v1 = vrot.slane %v5015_v35, %v7540_v7  ;;  %5040 = vlog2.f32 %v2759_v56 }
 0x353   : >> { %v5019_v6 = vpop.eup %5018  ;;  %v3221_v41 = vsel %vm3220_vm3, %v3219_v44, %v3214_v31  ;;  %v3395_v57 = vrot.slane %v5017_v59, %v7537_v52  ;;  %5042 = vlog2.f32 %v2804_v54 }
 0x354   : >> { %v5021_v8 = vpop.eup %5020  ;;  %v3330_v11 = vrot.slane %v5019_v6, %v7549_v9  ;;  %5044 = vlog2.f32 %v2790_v43  ;;  %v7591_v6 = vpop.xlane.xlu0 %2631 }
 0x355   : >> { %v3400_v50 = vsel %vm3213_vm2, %v3399_v1, %v3395_v57  ;;  %v3226_v47 = vrot.slane %v5021_v8, %v7549_v9  ;;  %5046 = vlog2.f32 %v2775_v26 }
 0x356   : >> { %v5023_v60 = vpop.eup %5022  ;;  %v7570_v4 = vsel %vm3227_vm4, %v3330_v11, %v3326_v24  ;;  %5048 = vlog2.f32 %v2760_v63 }
 0x357   : >> { %v5025_v61 = vpop.eup %5024  ;;  %v7573_v21 = vsel %vm3227_vm4, %v3226_v47, %v3221_v41  ;;  %v3404_v2 = vrot.slane %v5023_v60, %v7545_v3  ;;  %5050 = vlog2.f32 %v2805_v19 }
 0x358   : >> { %v5027_v38 = vpop.eup %5026  ;;  %v2826_v25 = vmul.f32 0.6931472, %v5025_v61  ;;  %5052 = vpow2.f32 %v3106_v51 }
 0x359   : >> { %v5029_v32 = vpop.eup %5028  ;;  %v7577_v33 = vsel %vm3220_vm3, %v3404_v2, %v3400_v50  ;;  %v2916_v45 = vmul.f32 0.6931472, %v5027_v38 }
 0x35a   : >> { %v5031_v14 = vpop.eup %5030  ;;  %v2950_v20 = vmul.f32 %v7490_v58, %v2826_v25  ;;  %v2888_v39 = vmul.f32 0.6931472, %v5029_v32  ;;  %v7597_v32 = vpop.xlane.xlu1 %2586 }
 0x35b   : >> { %v5033_v0 = vpop.eup %5032  ;;  %v2995_v12 = vmul.f32 %v7490_v58, %v2916_v45  ;;  %v2858_v29 = vmul.f32 0.6931472, %v5031_v14  ;;  %v7601_v14 = vsub.s32 %v3229_v16, %v7526_v34  ;;  %v3243_v16 = vadd.s32 4294967248, %v7522_v30 }
 0x35c   : >> { %v5035_v10 = vpop.eup %5034  ;;  %v3018_v18 = vmul.f32 1.442695, %v2950_v20  ;;  %v2981_v37 = vmul.f32 %v7490_v58, %v2888_v39  ;;  %v2828_v40 = vmul.f32 0.6931472, %v5033_v0  ;;  %v3236_v20 = vadd.s32 4294967256, %v7522_v30  ;;  %v7604_v0 = vpop.xlane.xlu0 %2721 }
 0x35d   : >> { %v5037_v53 = vpop.eup %5036  ;;  %v3108_v55 = vmul.f32 1.442695, %v2995_v12  ;;  %v2966_v56 = vmul.f32 %v7490_v58, %v2858_v29  ;;  %v2918_v48 = vmul.f32 0.6931472, %v5035_v10 }
 0x35e   : >> { %v5039_v42 = vpop.eup %5038  ;;  %5054 = vpow2.f32 %v3018_v18  ;;  %v3080_v17 = vmul.f32 1.442695, %v2981_v37  ;;  %v2951_v54 = vmul.f32 %v7490_v58, %v2828_v40  ;;  %v2890_v22 = vmul.f32 0.6931472, %v5037_v53  ;;  %v2680_v53 = vpop.xlane.xlu1 %2679 }
 0x35f   : >> { %v5041_v49 = vpop.eup %5040  ;;  %5056 = vpow2.f32 %v3108_v55  ;;  %v3050_v36 = vmul.f32 1.442695, %v2966_v56  ;;  %v2996_v28 = vmul.f32 %v7490_v58, %v2918_v48  ;;  %v2860_v62 = vmul.f32 0.6931472, %v5039_v42 }
 0x360   : >> { %v5043_v23 = vpop.eup %5042  ;;  %5058 = vpow2.f32 %v3080_v17  ;;  %v3020_v15 = vmul.f32 1.442695, %v2951_v54  ;;  %v2982_v27 = vmul.f32 %v7490_v58, %v2890_v22  ;;  %v2830_v43 = vmul.f32 0.6931472, %v5041_v49  ;;  %v2635_v22 = vpop.xlane.xlu0 %2634 }
 0x361   : >> { %v5045_v35 = vpop.eup %5044  ;;  %5060 = vpow2.f32 %v3050_v36  ;;  %v3110_v31 = vmul.f32 1.442695, %v2996_v28  ;;  %v2967_v44 = vmul.f32 %v7490_v58, %v2860_v62  ;;  %v2920_v26 = vmul.f32 0.6931472, %v5043_v23 }
 0x362   : >> { %v5047_v59 = vpop.eup %5046  ;;  %5062 = vpow2.f32 %v3020_v15  ;;  %v3082_v24 = vmul.f32 1.442695, %v2982_v27  ;;  %v2952_v1 = vmul.f32 %v7490_v58, %v2830_v43  ;;  %v2892_v63 = vmul.f32 0.6931472, %v5045_v35 }
 0x363   : >> { %v5049_v41 = vpop.eup %5048  ;;  %5064 = vpow2.f32 %v3110_v31  ;;  %v3052_v57 = vmul.f32 1.442695, %v2967_v44  ;;  %v2997_v19 = vmul.f32 %v7490_v58, %v2920_v26  ;;  %v2862_v8 = vmul.f32 0.6931472, %v5047_v59  ;;  %v2590_v26 = vpop.xlane.xlu1 %2589 }
 0x364   : >> { %v5051_v11 = vpop.eup %5050  ;;  %5066 = vpow2.f32 %v3082_v24  ;;  %v3022_v50 = vmul.f32 1.442695, %v2952_v1  ;;  %v2983_v47 = vmul.f32 %v7490_v58, %v2892_v63  ;;  %v2832_v5 = vmul.f32 0.6931472, %v5049_v41 }
 0x365   : >> { %5068 = vpow2.f32 %v3052_v57  ;;  %v3112_v60 = vmul.f32 1.442695, %v2997_v19  ;;  %v2968_v61 = vmul.f32 %v7490_v58, %v2862_v8  ;;  %v2922_v2 = vmul.f32 0.6931472, %v5051_v11  ;;  %v5053_v29 = vpop.eup %5052 }
 0x366   : >> { %5070 = vpow2.f32 %v3022_v50  ;;  %v3084_v38 = vmul.f32 1.442695, %v2983_v47  ;;  %v2953_v25 = vmul.f32 %v7490_v58, %v2832_v5  ;;  %v7608_v40 = vsub.s32 %v3236_v20, %v7526_v34 }
 0x367   : >> { %5072 = vpow2.f32 %v3112_v60  ;;  %v3054_v51 = vmul.f32 1.442695, %v2968_v61  ;;  %v2998_v45 = vmul.f32 %v7490_v58, %v2922_v2  ;;  %v3474_v56 = vrot.slane %v5053_v29, %v7537_v52 }
 0x368   : >> { %5074 = vpow2.f32 %v3084_v38  ;;  %v3024_v39 = vmul.f32 1.442695, %v2953_v25 }
 0x369   : >> { %5076 = vpow2.f32 %v3054_v51  ;;  %v3114_v12 = vmul.f32 1.442695, %v2998_v45  ;;  %v7649_v51 = vpop.xlane.xlu1 %2682 }
 0x36a   : >> { %5078 = vpow2.f32 %v3024_v39 }
 0x36b   : >> { %v5055_v10 = vpop.eup %5054  ;;  %5080 = vpow2.f32 %v3114_v12 }
 0x36c   : >> { %v5057_v18 = vpop.eup %5056  ;;  %v3233_v37 = vrot.slane %v5055_v10, %v7601_v14 }
 0x36d   : >> { %v5059_v55 = vpop.eup %5058  ;;  %v3478_v48 = vrot.slane %v5057_v18, %v7540_v7  ;;  %v7622_v7 = vsub.s32 %v3243_v16, %v7526_v34  ;;  %v2593_v29 = vpop.xlane.xlu1 %2592  ;;  %v2791_v18 = vmul.f32 0.00390625, %v7587_v46 }
 0x36e   : >> { %v5061_v42 = vpop.eup %5060  ;;  %v3235_v17 = vsel %vm3234_vm5, %v3233_v37, %v7573_v21  ;;  %v3409_v54 = vrot.slane %v5059_v55, %v7549_v9  ;;  %v3250_v21 = vadd.s32 4294967240, %v7522_v30  ;;  %v2776_v37 = vmul.f32 0.00390625, %v7591_v6 }
 0x36f   : >> { %v5063_v49 = vpop.eup %5062  ;;  %v3479_v36 = vsel %vm3213_vm2, %v3478_v48, %v3474_v56  ;;  %v3335_v28 = vrot.slane %v5061_v42, %v7601_v14  ;;  %5082 = vlog2.f32 %v2791_v18  ;;  %v2806_v56 = vmul.f32 0.00390625, %v7604_v0 }
 0x370   : >> { %v5065_v62 = vpop.eup %5064  ;;  %v3410_v23 = vsel %vm3227_vm4, %v3409_v54, %v7577_v33  ;;  %v3240_v52 = vrot.slane %v5063_v49, %v7608_v40  ;;  %5084 = vlog2.f32 %v2776_v37  ;;  %v2792_v48 = vmul.f32 0.00390625, %v2680_v53 }
 0x371   : >> { %v5067_v15 = vpop.eup %5066  ;;  %v3336_v27 = vsel %vm3234_vm5, %v3335_v28, %v7570_v4  ;;  %v3483_v43 = vrot.slane %v5065_v62, %v7545_v3  ;;  %v7635_v4 = vsub.s32 %v3250_v21, %v7526_v34  ;;  %v7637_v3 = vpop.xlane.xlu0 %2724  ;;  %v2762_v28 = vmul.f32 0.00390625, %v2590_v26 }
 0x372   : >> { %v5069_v35 = vpop.eup %5068  ;;  %v3242_v31 = vsel %vm3241_vm6, %v3240_v52, %v3235_v17  ;;  %v3414_v44 = vrot.slane %v5067_v15, %v7601_v14  ;;  %v7665_v16 = vpop.xlane.xlu1 %2685  ;;  %v2777_v17 = vmul.f32 0.00390625, %v2635_v22  ;;  %v2763_v0 = vmul.f32 0.00390625, %v2593_v29 }
 0x373   : >> { %v5071_v33 = vpop.eup %5070  ;;  %v3484_v59 = vsel %vm3220_vm3, %v3483_v43, %v3479_v36  ;;  %v3340_v24 = vrot.slane %v5069_v35, %v7608_v40  ;;  %vm3552_vm2 = vcmask 1042434   ;;  %vm3554_vm3 = vcmask 1043459  }
 0x374   : >> { %v5073_v1 = vpop.eup %5072  ;;  %v3415_v63 = vsel %vm3234_vm5, %v3414_v44, %v3410_v23  ;;  %v3247_v41 = vrot.slane %v5071_v33, %v7622_v7 }
 0x375   : >> { %v5075_v57 = vpop.eup %5074  ;;  %v3341_v19 = vsel %vm3241_vm6, %v3340_v24, %v3336_v27  ;;  %v3488_v8 = vrot.slane %v5073_v1, %v7549_v9  ;;  %v2638_v39 = vpop.xlane.xlu0 %2637 }
 0x376   : >> { %v5077_v11 = vpop.eup %5076  ;;  %v3249_v50 = vsel %vm3248_vm7, %v3247_v41, %v3242_v31  ;;  %v3419_v47 = vrot.slane %v5075_v57, %v7608_v40  ;;  %v2778_v23 = vmul.f32 0.00390625, %v2638_v39 }
 0x377   : >> { %v5079_v5 = vpop.eup %5078  ;;  %v3489_v60 = vsel %vm3227_vm4, %v3488_v8, %v3484_v59  ;;  %v3345_v61 = vrot.slane %v5077_v11, %v7622_v7 }
 0x378   : >> { %v5081_v2 = vpop.eup %5080  ;;  %v7646_v38 = vsel %vm3241_vm6, %v3419_v47, %v3415_v63  ;;  %v3254_v25 = vrot.slane %v5079_v5, %v7635_v4 }
 0x379   : >> { %v7652_v9 = vsel %vm3248_vm7, %v3345_v61, %v3341_v19  ;;  %v3493_v45 = vrot.slane %v5081_v2, %v7601_v14  ;;  %v7661_v10 = vpop.xlane.xlu0 %2727  ;;  %v2761_v14 = vmul.f32 0.00390625, %v7597_v32 }
 0x37a   : >> { %v7656_v20 = vsel %vm3255_vm8, %v3254_v25, %v3249_v50 }
 0x37b   : >> { %v7659_v12 = vsel %vm3234_vm5, %v3493_v45, %v3489_v60  ;;  %5086 = vlog2.f32 %v2761_v14 }
 0x37c   : >> { %5088 = vlog2.f32 %v2806_v56  ;;  %v5083_v49 = vpop.eup %5082 }
 0x37d   : >> { %v2641_v55 = vpop.xlane.xlu0 %2640  ;;  %5090 = vlog2.f32 %v2792_v48  ;;  %v5085_v36 = vpop.eup %5084  ;;  %v2894_v62 = vmul.f32 0.6931472, %v5083_v49 }
 0x37e   : >> { %5092 = vlog2.f32 %v2777_v17  ;;  %v2864_v52 = vmul.f32 0.6931472, %v5085_v36  ;;  %v2779_v21 = vmul.f32 0.00390625, %v2641_v55 }
 0x37f   : >> { %5094 = vlog2.f32 %v2762_v28  ;;  %v2984_v27 = vmul.f32 %v7490_v58, %v2894_v62  ;;  %v2793_v62 = vmul.f32 0.00390625, %v7649_v51 }
 0x380   : >> { %v2596_v42 = vpop.xlane.xlu1 %2595  ;;  %5096 = vlog2.f32 %v2778_v23  ;;  %v2969_v35 = vmul.f32 %v7490_v58, %v2864_v52  ;;  %v2808_v52 = vmul.f32 0.00390625, %v7661_v10 }
 0x381   : >> { %5098 = vlog2.f32 %v2763_v0  ;;  %v3086_v59 = vmul.f32 1.442695, %v2984_v27  ;;  %v2764_v19 = vmul.f32 0.00390625, %v2596_v42  ;;  %v2807_v42 = vmul.f32 0.00390625, %v7637_v3 }
 0x382   : >> { %v7669_v54 = vpop.xlane.xlu0 %2730  ;;  %5100 = vlog2.f32 %v2779_v21  ;;  %v3056_v63 = vmul.f32 1.442695, %v2969_v35  ;;  %v2794_v21 = vmul.f32 0.00390625, %v7665_v16 }
 0x383   : >> { %5102 = vpow2.f32 %v3086_v59 }
 0x384   : >> { %v7671_v46 = vpop.xlane.xlu1 %2688  ;;  %5104 = vpow2.f32 %v3056_v63 }
 0x385   : >> { %5106 = vlog2.f32 %v2764_v19 }
 0x386   : >> { %v2644_v6 = vpop.xlane.xlu0 %2643 }
 0x387   : >> { %v2780_v11 = vmul.f32 0.00390625, %v2644_v6 }
 0x388   : >> { %v2599_v32 = vpop.xlane.xlu1 %2598  ;;  %v5087_v22 = vpop.eup %5086 }
 0x389   : >> { %v5089_v15 = vpop.eup %5088  ;;  %v2834_v31 = vmul.f32 0.6931472, %v5087_v22  ;;  %v2765_v47 = vmul.f32 0.00390625, %v2599_v32  ;;  %5108 = vlog2.f32 %v2780_v11 }
 0x38a   : >> { %v7673_v53 = vpop.xlane.xlu0 %2733  ;;  %v5091_v43 = vpop.eup %5090  ;;  %v2924_v33 = vmul.f32 0.6931472, %v5089_v15 }
 0x38b   : >> { %v5093_v26 = vpop.eup %5092  ;;  %v2896_v24 = vmul.f32 0.6931472, %v5091_v43  ;;  %v2954_v41 = vmul.f32 %v7490_v58, %v2834_v31  ;;  %5110 = vlog2.f32 %v2765_v47  ;;  %v2809_v43 = vmul.f32 0.00390625, %v7669_v54 }
 0x38c   : >> { %v7677_v44 = vpop.xlane.xlu1 %2691  ;;  %v2866_v57 = vmul.f32 0.6931472, %v5093_v26  ;;  %v2999_v8 = vmul.f32 %v7490_v58, %v2924_v33  ;;  %v5095_v45 = vpop.eup %5094 }
 0x38d   : >> { %v2985_v50 = vmul.f32 %v7490_v58, %v2896_v24  ;;  %v3026_v61 = vmul.f32 1.442695, %v2954_v41  ;;  %v5097_v18 = vpop.eup %5096  ;;  %v2836_v14 = vmul.f32 0.6931472, %v5095_v45 }
 0x38e   : >> { %v2647_v1 = vpop.xlane.xlu0 %2646  ;;  %v2970_v2 = vmul.f32 %v7490_v58, %v2866_v57  ;;  %v3116_v39 = vmul.f32 1.442695, %v2999_v8  ;;  %v5099_v48 = vpop.eup %5098  ;;  %v2868_v6 = vmul.f32 0.6931472, %v5097_v18 }
 0x38f   : >> { %v2781_v60 = vmul.f32 0.00390625, %v2647_v1  ;;  %v3088_v29 = vmul.f32 1.442695, %v2985_v50  ;;  %v5101_v17 = vpop.eup %5100  ;;  %v2955_v28 = vmul.f32 %v7490_v58, %v2836_v14  ;;  %v2838_v23 = vmul.f32 0.6931472, %v5099_v48 }
 0x390   : >> { %v2602_v5 = vpop.xlane.xlu1 %2601  ;;  %v3058_v55 = vmul.f32 1.442695, %v2970_v2  ;;  %v2870_v0 = vmul.f32 0.6931472, %v5101_v17  ;;  %v2971_v3 = vmul.f32 %v7490_v58, %v2868_v6  ;;  %v7695_v27 = vpop.eup %5102  ;;  %v3257_v14 = vadd.s32 4294967232, %v7522_v30 }
 0x391   : >> { %5112 = vlog2.f32 %v2781_v60  ;;  %v2766_v37 = vmul.f32 0.00390625, %v2602_v5  ;;  %v7698_v51 = vpop.eup %5104  ;;  %v3028_v35 = vmul.f32 1.442695, %v2955_v28  ;;  %v2956_v10 = vmul.f32 %v7490_v58, %v2838_v23 }
 0x392   : >> { %v7683_v25 = vpop.xlane.xlu0 %2736  ;;  %5114 = vpow2.f32 %v3026_v61  ;;  %v5107_v26 = vpop.eup %5106  ;;  %v2972_v16 = vmul.f32 %v7490_v58, %v2870_v0  ;;  %v3060_v59 = vmul.f32 1.442695, %v2971_v3  ;;  %v2795_v60 = vmul.f32 0.00390625, %v7671_v46 }
 0x393   : >> { %5116 = vpow2.f32 %v3116_v39  ;;  %v3030_v41 = vmul.f32 1.442695, %v2956_v10  ;;  %v2840_v57 = vmul.f32 0.6931472, %v5107_v26  ;;  %v3264_v48 = vadd.s32 4294967224, %v7522_v30 }
 0x394   : >> { %5118 = vpow2.f32 %v3088_v29  ;;  %v3062_v11 = vmul.f32 1.442695, %v2972_v16  ;;  %v3271_v17 = vadd.s32 4294967216, %v7522_v30  ;;  %v2811_v23 = vmul.f32 0.00390625, %v7683_v25 }
 0x395   : >> { %5120 = vlog2.f32 %v2766_v37  ;;  %v2957_v18 = vmul.f32 %v7490_v58, %v2840_v57  ;;  %v2810_v37 = vmul.f32 0.00390625, %v7673_v53  ;;  %v3278_v0 = vadd.s32 4294967208, %v7522_v30 }
 0x396   : >> { %5122 = vpow2.f32 %v3058_v55  ;;  %v5109_v33 = vpop.eup %5108  ;;  %v7733_v10 = vsub.s32 %v3271_v17, %v7526_v34 }
 0x397   : >> { %5124 = vlog2.f32 %v2807_v42  ;;  %v2872_v50 = vmul.f32 0.6931472, %v5109_v33 }
 0x398   : >> { %v5111_v1 = vpop.eup %5110 }
 0x399   : >> { %v2842_v61 = vmul.f32 0.6931472, %v5111_v1  ;;  %v2973_v46 = vmul.f32 %v7490_v58, %v2872_v50  ;;  %v3292_v50 = vadd.s32 4294967192, %v7522_v30 }
 0x39b   : >> { %v2958_v6 = vmul.f32 %v7490_v58, %v2842_v61 }
 0x39d   : >> { %v3034_v25 = vmul.f32 1.442695, %v2958_v6 }
 0x39e   : >> { %v5113_v63 = vpop.eup %5112 }
 0x39f   : >> { %v7704_v8 = vpop.eup %5114  ;;  %v2874_v39 = vmul.f32 0.6931472, %v5113_v63  ;;  %v7737_v63 = vsub.s32 %v3278_v0, %v7526_v34 }
 0x3a0   : >> { %v7706_v5 = vpop.eup %5116 }
 0x3a1   : >> { %v7711_v45 = vpop.eup %5118  ;;  %v2974_v53 = vmul.f32 %v7490_v58, %v2874_v39 }
 0x3a2   : >> { %v5121_v29 = vpop.eup %5120 }
 0x3a3   : >> { %v7715_v55 = vpop.eup %5122  ;;  %v3066_v33 = vmul.f32 1.442695, %v2974_v53 }
 0x3a4   : >> { %v5125_v42 = vpop.eup %5124 }
 0x3a8   : >> { %v7685_v56 = vpop.xlane.xlu1 %2694 }
 0x3a9   : >> { %v2797_v57 = vmul.f32 0.00390625, %v7685_v56 }
 0x3aa   : >> { %v2650_v49 = vpop.xlane.xlu0 %2649 }
 0x3ab   : >> { %v2782_v36 = vmul.f32 0.00390625, %v2650_v49  ;;  %v2796_v49 = vmul.f32 0.00390625, %v7677_v44  ;;  %v3064_v44 = vmul.f32 1.442695, %v2973_v46 }
 0x3ac   : >> { %v2605_v32 = vpop.xlane.xlu1 %2604 }
 0x3ad   : >> { %v2767_v22 = vmul.f32 0.00390625, %v2605_v32  ;;  %5126 = vlog2.f32 %v2782_v36 }
 0x3ae   : >> { %v7693_v15 = vpop.xlane.xlu0 %2739 }
 0x3af   : >> { %5128 = vlog2.f32 %v2767_v22  ;;  %v3032_v22 = vmul.f32 1.442695, %v2957_v18 }
 0x3b0   : >> { %5130 = vlog2.f32 %v2793_v62  ;;  %v7701_v31 = vpop.xlane.xlu1 %2697  ;;  %v2844_v62 = vmul.f32 0.6931472, %v5121_v29 }
 0x3b1   : >> { %5132 = vlog2.f32 %v2808_v52 }
 0x3b2   : >> { %5134 = vlog2.f32 %v2794_v21  ;;  %v2653_v24 = vpop.xlane.xlu0 %2652  ;;  %v7727_v21 = vsub.s32 %v3257_v14, %v7526_v34 }
 0x3b3   : >> { %5136 = vlog2.f32 %v2809_v43  ;;  %v2783_v54 = vmul.f32 0.00390625, %v2653_v24  ;;  %v7730_v43 = vsub.s32 %v3264_v48, %v7526_v34 }
 0x3b4   : >> { %5138 = vpow2.f32 %v3028_v35  ;;  %v2608_v19 = vpop.xlane.xlu1 %2607 }
 0x3b5   : >> { %5140 = vlog2.f32 %v2783_v54  ;;  %v2768_v47 = vmul.f32 0.00390625, %v2608_v19 }
 0x3b6   : >> { %5142 = vpow2.f32 %v3060_v59  ;;  %v7709_v2 = vpop.xlane.xlu0 %2742  ;;  %v2959_v59 = vmul.f32 %v7490_v58, %v2844_v62 }
 0x3b7   : >> { %5144 = vlog2.f32 %v2768_v47  ;;  %v2798_v47 = vmul.f32 0.00390625, %v7701_v31  ;;  %v2812_v31 = vmul.f32 0.00390625, %v7693_v15 }
 0x3b8   : >> { %5146 = vpow2.f32 %v3030_v41  ;;  %v2701_v1 = vpop.xlane.xlu1 %2700  ;;  %v3285_v41 = vadd.s32 4294967200, %v7522_v30 }
 0x3b9   : >> { %5148 = vpow2.f32 %v3062_v11  ;;  %v2926_v11 = vmul.f32 0.6931472, %v5125_v42  ;;  %v2799_v29 = vmul.f32 0.00390625, %v2701_v1 }
 0x3ba   : >> { %5150 = vlog2.f32 %v2795_v60  ;;  %v2656_v36 = vpop.xlane.xlu0 %2655  ;;  %v5127_v28 = vpop.eup %5126  ;;  %v7750_v42 = vsub.s32 %v3285_v41, %v7526_v34 }
 0x3bb   : >> { %v2784_v32 = vmul.f32 0.00390625, %v2656_v36  ;;  %5152 = vlog2.f32 %v2810_v37  ;;  %v2876_v26 = vmul.f32 0.6931472, %v5127_v28  ;;  %v3036_v37 = vmul.f32 1.442695, %v2959_v59 }
 0x3bc   : >> { %v5129_v52 = vpop.eup %5128  ;;  %v2813_v36 = vmul.f32 0.00390625, %v7709_v2  ;;  %v3000_v53 = vmul.f32 %v7490_v58, %v2926_v11 }
 0x3bd   : >> { %v5131_v3 = vpop.eup %5130  ;;  %5154 = vlog2.f32 %v2784_v32  ;;  %v2846_v24 = vmul.f32 0.6931472, %v5129_v52  ;;  %v2975_v39 = vmul.f32 %v7490_v58, %v2876_v26 }
 0x3be   : >> { %v5133_v35 = vpop.eup %5132  ;;  %5156 = vlog2.f32 %v2796_v49  ;;  %v2898_v61 = vmul.f32 0.6931472, %v5131_v3 }
 0x3bf   : >> { %v5135_v16 = vpop.eup %5134  ;;  %5158 = vlog2.f32 %v2811_v23  ;;  %v2960_v56 = vmul.f32 %v7490_v58, %v2846_v24  ;;  %v2928_v46 = vmul.f32 0.6931472, %v5133_v35  ;;  %v3068_v23 = vmul.f32 1.442695, %v2975_v39 }
 0x3c0   : >> { %v5137_v54 = vpop.eup %5136  ;;  %5160 = vpow2.f32 %v3032_v22  ;;  %v2900_v62 = vmul.f32 0.6931472, %v5135_v16  ;;  %v2986_v52 = vmul.f32 %v7490_v58, %v2898_v61  ;;  %v3299_v35 = vadd.s32 4294967184, %v7522_v30 }
 0x3c1   : >> { %v7741_v19 = vpop.eup %5138  ;;  %5162 = vpow2.f32 %v3064_v44  ;;  %v3038_v15 = vmul.f32 1.442695, %v2960_v56  ;;  %v3001_v22 = vmul.f32 %v7490_v58, %v2928_v46  ;;  %v2930_v3 = vmul.f32 0.6931472, %v5137_v54 }
 0x3c2   : >> { %v5141_v60 = vpop.eup %5140  ;;  %5164 = vpow2.f32 %v3034_v25  ;;  %v3306_v25 = vadd.s32 4294967176, %v7522_v30  ;;  %v2987_v59 = vmul.f32 %v7490_v58, %v2900_v62  ;;  %v3350_v54 = vrot.slane %v7698_v51, %v7635_v4 }
 0x3c3   : >> { %v7746_v18 = vpop.eup %5142  ;;  %5166 = vpow2.f32 %v3066_v33  ;;  %v2878_v14 = vmul.f32 0.6931472, %v5141_v60  ;;  %v3118_v33 = vmul.f32 1.442695, %v3000_v53  ;;  %v3090_v41 = vmul.f32 1.442695, %v2986_v52 }
 0x3c4   : >> { %v5145_v48 = vpop.eup %5144  ;;  %5168 = vlog2.f32 %v2797_v57  ;;  %v3120_v30 = vmul.f32 1.442695, %v3001_v22  ;;  %v7772_v60 = vsub.s32 %v3292_v50, %v7526_v34  ;;  %v7777_v39 = vsub.s32 %v3299_v35, %v7526_v34 }
 0x3c5   : >> { %v7753_v17 = vpop.eup %5146  ;;  %5170 = vlog2.f32 %v2798_v47  ;;  %v2976_v6 = vmul.f32 %v7490_v58, %v2878_v14  ;;  %v2848_v49 = vmul.f32 0.6931472, %v5145_v48  ;;  %v3002_v47 = vmul.f32 %v7490_v58, %v2930_v3 }
 0x3c6   : >> { %v7757_v28 = vpop.eup %5148  ;;  %5172 = vlog2.f32 %v2799_v29  ;;  %v7780_v51 = vsub.s32 %v3306_v25, %v7526_v34  ;;  %v3261_v56 = vrot.slane %v7704_v8, %v7727_v21  ;;  %v3092_v50 = vmul.f32 1.442695, %v2987_v59 }
 0x3c7   : >> { %v5151_v32 = vpop.eup %5150  ;;  %5174 = vpow2.f32 %v3036_v37  ;;  %v2961_v0 = vmul.f32 %v7490_v58, %v2848_v49  ;;  %v3070_v2 = vmul.f32 1.442695, %v2976_v6  ;;  %v3351_v46 = vsel %vm3255_vm8, %v3350_v54, %v7652_v9 }
 0x3c8   : >> { %5176 = vlog2.f32 %v2812_v31  ;;  %v5153_v44 = vpop.eup %5152  ;;  %v2902_v24 = vmul.f32 0.6931472, %v5151_v32  ;;  %v3355_v49 = vrot.slane %v7715_v55, %v7727_v21  ;;  %v3360_v32 = vrot.slane %v7746_v18, %v7730_v43 }
 0x3c9   : >> { %v3040_v26 = vmul.f32 1.442695, %v2961_v0  ;;  %5178 = vlog2.f32 %v2813_v36  ;;  %v3122_v36 = vmul.f32 1.442695, %v3002_v47  ;;  %v2932_v8 = vmul.f32 0.6931472, %v5153_v44 }
 0x3ca   : >> { %v5155_v16 = vpop.eup %5154  ;;  %5180 = vpow2.f32 %v3068_v23  ;;  %v2988_v14 = vmul.f32 %v7490_v58, %v2902_v24  ;;  %v3268_v23 = vrot.slane %v7741_v19, %v7730_v43  ;;  %v3365_v55 = vrot.slane %v7757_v28, %v7733_v10 }
 0x3cb   : >> { %v5157_v1 = vpop.eup %5156  ;;  %5182 = vpow2.f32 %v3038_v15  ;;  %v2880_v57 = vmul.f32 0.6931472, %v5155_v16  ;;  %v3275_v15 = vrot.slane %v7753_v17, %v7733_v10  ;;  %v3263_v19 = vsel %vm3262_vm9, %v3261_v56, %v7656_v20 }
 0x3cc   : >> { %v7768_v11 = vpop.eup %5158  ;;  %5184 = vpow2.f32 %v3070_v2  ;;  %v2904_v34 = vmul.f32 0.6931472, %v5157_v1  ;;  %v3094_v0 = vmul.f32 1.442695, %v2988_v14  ;;  %v3356_v17 = vsel %vm3262_vm9, %v3355_v49, %v3351_v46 }
 0x3cd   : >> { %v7774_v61 = vpop.eup %5160  ;;  %5186 = vpow2.f32 %v3040_v26  ;;  %v2977_v29 = vmul.f32 %v7490_v58, %v2880_v57  ;;  %v3003_v35 = vmul.f32 %v7490_v58, %v2932_v8  ;;  %v3270_v26 = vsel %vm3269_vm10, %v3268_v23, %v3263_v19 }
 0x3ce   : >> { %v7783_v37 = vpop.eup %5162  ;;  %5188 = vpow2.f32 %v3118_v33  ;;  %v2989_v18 = vmul.f32 %v7490_v58, %v2904_v34  ;;  %v3361_v16 = vsel %vm3269_vm10, %v3360_v32, %v3356_v17  ;;  %v3277_v59 = vsel %vm3276_vm11, %v3275_v15, %v3270_v26 }
 0x3cf   : >> { %v7788_v48 = vpop.eup %5164  ;;  %5190 = vpow2.f32 %v3090_v41  ;;  %v3072_v31 = vmul.f32 1.442695, %v2977_v29  ;;  %v3366_v24 = vsel %vm3276_vm11, %v3365_v55, %v3361_v16  ;;  %v2934_v47 = vmul.f32 0.6931472, %v7768_v11 }
 0x3d0   : >> { %v7792_v6 = vpop.eup %5166  ;;  %5192 = vpow2.f32 %v3120_v30  ;;  %v2704_v53 = vpop.xlane.xlu1 %2703  ;;  %v3096_v30 = vmul.f32 1.442695, %v2989_v18  ;;  %v3282_v14 = vrot.slane %v7774_v61, %v7737_v63  ;;  %v3124_v46 = vmul.f32 1.442695, %v3003_v35 }
 0x3d1   : >> { %v5169_v62 = vpop.eup %5168  ;;  %5194 = vpow2.f32 %v3072_v31  ;;  %v2800_v9 = vmul.f32 0.00390625, %v2704_v53  ;;  %v3289_v8 = vrot.slane %v7788_v48, %v7750_v42 }
 0x3d2   : >> { %v5171_v52 = vpop.eup %5170  ;;  %5196 = vpow2.f32 %v3092_v50  ;;  %v2746_v22 = vpop.xlane.xlu0 %2745  ;;  %v2906_v28 = vmul.f32 0.6931472, %v5169_v62  ;;  %v3375_v62 = vrot.slane %v7792_v6, %v7750_v42 }
 0x3d3   : >> { %v5173_v3 = vpop.eup %5172  ;;  %5198 = vlog2.f32 %v2800_v9  ;;  %v2814_v2 = vmul.f32 0.00390625, %v2746_v22  ;;  %v2908_v20 = vmul.f32 0.6931472, %v5171_v52  ;;  %v3004_v9 = vmul.f32 %v7490_v58, %v2934_v47 }
 0x3d4   : >> { %v7807_v44 = vpop.eup %5174  ;;  %5200 = vpow2.f32 %v3122_v36  ;;  %v2910_v1 = vmul.f32 0.6931472, %v5173_v3  ;;  %v2990_v34 = vmul.f32 %v7490_v58, %v2906_v28  ;;  %v3370_v36 = vrot.slane %v7783_v37, %v7737_v63 }
 0x3d5   : >> { %v5177_v25 = vpop.eup %5176  ;;  %5202 = vlog2.f32 %v2814_v2  ;;  %v2991_v11 = vmul.f32 %v7490_v58, %v2908_v20  ;;  %v3296_v37 = vrot.slane %v7807_v44, %v7772_v60  ;;  %v3284_v3 = vsel %vm3283_vm12, %v3282_v14, %v3277_v59 }
 0x3d6   : >> { %v5179_v33 = vpop.eup %5178  ;;  %5204 = vpow2.f32 %v3094_v0  ;;  %v2749_v54 = vpop.xlane.xlu0 %2748  ;;  %v2936_v31 = vmul.f32 0.6931472, %v5177_v25  ;;  %v2992_v61 = vmul.f32 %v7490_v58, %v2910_v1  ;;  %v3098_v15 = vmul.f32 1.442695, %v2990_v34 }
 0x3d7   : >> { %v2752_v41 = vpop.xlane.xlu1 %2751  ;;  %v5181_v57 = vpop.eup %5180  ;;  %v2815_v29 = vmul.f32 0.00390625, %v2749_v54  ;;  %v2938_v23 = vmul.f32 0.6931472, %v5179_v33  ;;  %v3371_v19 = vsel %vm3283_vm12, %v3370_v36, %v3366_v24  ;;  %v3100_v18 = vmul.f32 1.442695, %v2991_v11 }
 0x3d8   : >> { %v2816_v56 = vmul.f32 0.00390625, %v2752_v41  ;;  %v5183_v50 = vpop.eup %5182  ;;  %v3380_v48 = vrot.slane %v5181_v57, %v7772_v60  ;;  %v3005_v6 = vmul.f32 %v7490_v58, %v2936_v31  ;;  %v3291_v17 = vsel %vm3290_vm13, %v3289_v8, %v3284_v3 }
 0x3d9   : >> { %v5185_v49 = vpop.eup %5184  ;;  %5206 = vlog2.f32 %v2815_v29  ;;  %v3303_v55 = vrot.slane %v5183_v50, %v7777_v39  ;;  %v3376_v35 = vsel %vm3290_vm13, %v3375_v62, %v3371_v19  ;;  %v3006_v28 = vmul.f32 %v7490_v58, %v2938_v23 }
 0x3da   : >> { %v5187_v53 = vpop.eup %5186  ;;  %5208 = vlog2.f32 %v2816_v56  ;;  %v3385_v0 = vrot.slane %v5185_v49, %v7777_v39  ;;  %v3102_v25 = vmul.f32 1.442695, %v2992_v61  ;;  %v3298_v16 = vsel %vm3297_vm14, %v3296_v37, %v3291_v17 }
 0x3db   : >> { %v7827_v32 = vpop.eup %5188  ;;  %5210 = vpow2.f32 %v3096_v30  ;;  %v3310_v2 = vrot.slane %v5187_v53, %v7780_v51  ;;  %v3126_v20 = vmul.f32 1.442695, %v3004_v9  ;;  %v3381_v33 = vsel %vm3297_vm14, %v3380_v48, %v3376_v35 }
 0x3dc   : >> { %v7833_v52 = vpop.eup %5190  ;;  %5212 = vpow2.f32 %v3098_v15  ;;  %v3305_v1 = vsel %vm3304_vm15, %v3303_v55, %v3298_v16  ;;  %v3128_v54 = vmul.f32 1.442695, %v3005_v6  ;;  %v3386_v41 = vsel %vm3304_vm15, %v3385_v0, %v3381_v33 }
 0x3dd   : >> { %v7838_v22 = vpop.eup %5192  ;;  %5214 = vpow2.f32 %v3100_v18  ;;  %v3312_v30 = vsel %vm3311_vm0, %v3310_v2, %v3305_v1  ;;  %v3130_v50 = vmul.f32 1.442695, %v3006_v28  ;;  %v3429_v15 = vrot.slane %v7711_v45, %v7635_v4 }
 0x3de   : >> { %v5195_v44 = vpop.eup %5194  ;;  %5216 = vpow2.f32 %v3102_v25  ;;  %v3434_v6 = vrot.slane %v7833_v52, %v7727_v21  ;;  %v3498_v52 = vrot.slane %v7706_v5, %v7608_v40  ;;  %v3508_v33 = vrot.slane %v7838_v22, %v7635_v4 }
 0x3df   : >> { %v5197_v26 = vpop.eup %5196  ;;  %v3390_v59 = vrot.slane %v5195_v44, %v7780_v51  ;;  %5218 = vpow2.f32 %v3124_v46  ;;  %v3424_v46 = vrot.slane %v7695_v27, %v7622_v7 }
 0x3e0   : >> { %v5199_v24 = vpop.eup %5198  ;;  %5220 = vpow2.f32 %v3126_v20  ;;  %v3439_v19 = vrot.slane %v5197_v26, %v7730_v43 }
 0x3e1   : >> { %v7851_v57 = vpop.eup %5200  ;;  %v3391_v47 = vsel %vm3311_vm0, %v3390_v59, %v3386_v41  ;;  %v2912_v29 = vmul.f32 0.6931472, %v5199_v24  ;;  %5222 = vpow2.f32 %v3128_v54  ;;  %v3425_v2 = vsel %vm3248_vm7, %v3424_v46, %v7646_v38 }
 0x3e2   : >> { %v5203_v56 = vpop.eup %5202  ;;  %v7856_v14 = vsel %vm3550_vm1, %v3391_v47, %v3312_v30  ;;  %5224 = vpow2.f32 %v3130_v50  ;;  %v3430_v44 = vsel %vm3255_vm8, %v3429_v15, %v3425_v2  ;;  %v3503_v38 = vrot.slane %v7827_v32, %v7622_v7 }
 0x3e3   : >> { %v5205_v34 = vpop.eup %5204  ;;  %v2993_v31 = vmul.f32 %v7490_v58, %v2912_v29  ;;  %v2940_v49 = vmul.f32 0.6931472, %v5203_v56  ;;  %v3435_v35 = vsel %vm3262_vm9, %v3434_v6, %v3430_v44  ;;  %v3513_v24 = vrot.slane %v7851_v57, %v7727_v21 }
 0x3e4   : >> { %v3444_v27 = vrot.slane %v5205_v34, %v7733_v10  ;;  %v3440_v26 = vsel %vm3269_vm10, %v3439_v19, %v3435_v35  ;;  %v3499_v7 = vsel %vm3241_vm6, %v3498_v52, %v7659_v12 }
 0x3e5   : >> { %v3104_v36 = vmul.f32 1.442695, %v2993_v31  ;;  %v3007_v8 = vmul.f32 %v7490_v58, %v2940_v49  ;;  %v3504_v4 = vsel %vm3248_vm7, %v3503_v38, %v3499_v7 }
 0x3e6   : >> { %v5207_v11 = vpop.eup %5206  ;;  %v3445_v59 = vsel %vm3276_vm11, %v3444_v27, %v3440_v26  ;;  %v3509_v47 = vsel %vm3255_vm8, %v3508_v33, %v3504_v4 }
 0x3e7   : >> { %v5209_v53 = vpop.eup %5208  ;;  %5226 = vpow2.f32 %v3104_v36  ;;  %v3132_v62 = vmul.f32 1.442695, %v3007_v8  ;;  %v2942_v23 = vmul.f32 0.6931472, %v5207_v11 }
 0x3e8   : >> { %v5211_v61 = vpop.eup %5210  ;;  %v2944_v37 = vmul.f32 0.6931472, %v5209_v53 }
 0x3e9   : >> { %5228 = vpow2.f32 %v3132_v62  ;;  %v3008_v9 = vmul.f32 %v7490_v58, %v2942_v23  ;;  %v5213_v3 = vpop.eup %5212  ;;  %v3449_v45 = vrot.slane %v5211_v61, %v7737_v63 }
 0x3ea   : >> { %v3009_v48 = vmul.f32 %v7490_v58, %v2944_v37  ;;  %v5215_v18 = vpop.eup %5214  ;;  %v3454_v28 = vrot.slane %v5213_v3, %v7750_v42 }
 0x3eb   : >> { %v3134_v55 = vmul.f32 1.442695, %v3008_v9  ;;  %v5217_v58 = vpop.eup %5216  ;;  %v3459_v16 = vrot.slane %v5215_v18, %v7772_v60  ;;  %v3450_v1 = vsel %vm3283_vm12, %v3449_v45, %v3445_v59 }
 0x3ec   : >> { %v3136_v0 = vmul.f32 1.442695, %v3009_v48  ;;  %v5219_v17 = vpop.eup %5218  ;;  %v3464_v40 = vrot.slane %v5217_v58, %v7777_v39  ;;  %v3455_v41 = vsel %vm3290_vm13, %v3454_v28, %v3450_v1 }
 0x3ed   : >> { %5230 = vpow2.f32 %v3134_v55  ;;  %v5221_v25 = vpop.eup %5220  ;;  %v3518_v32 = vrot.slane %v5219_v17, %v7730_v43  ;;  %v3460_v30 = vsel %vm3297_vm14, %v3459_v16, %v3455_v41  ;;  %v3514_v43 = vsel %vm3262_vm9, %v3513_v24, %v3509_v47 }
 0x3ee   : >> { %5232 = vpow2.f32 %v3136_v0  ;;  %v5223_v20 = vpop.eup %5222  ;;  %v3523_v22 = vrot.slane %v5221_v25, %v7733_v10  ;;  %v3465_v12 = vsel %vm3304_vm15, %v3464_v40, %v3460_v30 }
 0x3ef   : >> { %v5225_v5 = vpop.eup %5224  ;;  %v3528_v29 = vrot.slane %v5223_v20, %v7737_v63  ;;  %v3519_v10 = vsel %vm3269_vm10, %v3518_v32, %v3514_v43 }
 0x3f0   : >> { %v3533_v56 = vrot.slane %v5225_v5, %v7750_v42  ;;  %v3524_v49 = vsel %vm3276_vm11, %v3523_v22, %v3519_v10 }
 0x3f1   : >> { %v3529_v8 = vsel %vm3283_vm12, %v3528_v29, %v3524_v49 }
 0x3f2   : >> { %v3534_v11 = vsel %vm3290_vm13, %v3533_v56, %v3529_v8 }
 0x3f4   : >> { %v5227_v54 = vpop.eup %5226 }
 0x3f5   : >> { %v3469_v21 = vrot.slane %v5227_v54, %v7780_v51 }
 0x3f6   : >> { %v5229_v57 = vpop.eup %5228 }
 0x3f7   : >> { %v3470_v50 = vsel %vm3311_vm0, %v3469_v21, %v3465_v12  ;;  %v3538_v31 = vrot.slane %v5229_v57, %v7772_v60 }
 0x3f8   : >> { %v3553_v34 = vsel %vm3552_vm2, %v3470_v50, %v7856_v14 }
 0x3f9   : >> { %v3539_v42 = vsel %vm3297_vm14, %v3538_v31, %v3534_v11 }
 0x3fa   : >> { %v5231_v36 = vpop.eup %5230 }
 0x3fb   : >> { %v5233_v63 = vpop.eup %5232  ;;  %v3543_v53 = vrot.slane %v5231_v36, %v7777_v39 }
 0x3fc   : >> { %v3548_v62 = vrot.slane %v5233_v63, %v7780_v51 }
 0x3fd   : >> { %v3544_v14 = vsel %vm3304_vm15, %v3543_v53, %v3539_v42 }
 0x3fe   : >> { %v3549_v60 = vsel %vm3311_vm0, %v3548_v62, %v3544_v14 }
 0x3ff   : >> { %v3555_v23 = vsel %vm3554_vm3, %v3549_v60, %v3553_v34 }
 0x400   : >> { %3559 = vst [vmem:[%s3558_s30] sm:$0xf] %v3555_v23 }
 0x401 PF: >> { %s8556_s28 = smov %s5654_s12  ;;  %p8557_p12 = scmp.ge.s32.totalorder %s5654_s12, 2 }
 0x403   : > { %306 = sbr.rel (!%p8557_p12) target bundleno = 136 (0x88), region = 123 }
 0x407   : > { %v3560_v39 = vld [vmem:[#allocation4] sm:$0xff] (%p8557_p12)  }
 0x408   : > { %3561 = vst [vmem:[#allocation5] sm:$0xff] %v3560_v39  }
 0x409 PF: > { %v5234_v51 = vld [vmem:[%s5603_s9 + $0x78] sm:$0xff]   ;;  %v5470_v37 = vmov 0.0   ;;  %v5236_v9 = vld [vmem:[%s5603_s9 + $0x70] sm:$0xff]   ;;  %v5238_v46 = vld [vmem:[%s5603_s9 + $0x68] sm:$0xff]   ;;  %vm5471_vm4 = vmmov 0   ;;  %s8558_s20 = scalar_lea.vmem %s7988_s3, %s5617_s29  ;;  %p4051_p7 = scmp.ne.s32.totalorder %s5443_s23, 3 }
 0x40a   : > { %v5235_v61 = vld [vmem:[%s5603_s9 + $0x38] sm:$0xff]   ;;  %4095 = vmatprep.subr.bf16.mxu1 %v5470_v37  ;;  %4064 = vmatprep.subr.bf16.mxu0 %v5234_v51  ;;  %v5237_v13 = vld [vmem:[%s5603_s9 + $0x30] sm:$0xff]   ;;  %v5239_v48 = vld [vmem:[%s5603_s9 + $0x28] sm:$0xff]  }
 0x40b   : > { %4065 = vmatpush3.bf16.msra.mxu0 %v5235_v61  ;;  %v5240_v15 = vld [vmem:[%s5603_s9 + $0x60] sm:$0xff]   ;;  %v5242_v6 = vld [vmem:[%s5603_s9 + $0x58] sm:$0xff]   ;;  %v5244_v3 = vld [vmem:[%s5603_s9 + $0x50] sm:$0xff]   ;;  %4111 = vmatprep.mubr.msk.bf16.mxu1 %vm5471_vm4, %v5470_v37 }
 0x40c   : > { %4066 = vmatprep.subr.bf16.mxu0 %v5236_v9  ;;  %v5241_v55 = vld [vmem:[%s5603_s9 + $0x20] sm:$0xff]   ;;  %v5243_v0 = vld [vmem:[%s5603_s9 + $0x18] sm:$0xff]   ;;  %v5245_v18 = vld [vmem:[%s5603_s9 + $0x10] sm:$0xff]  }
 0x40d   : > { %v5251_v27 = vld [vmem:[%s5609_s15 + $0x38] sm:$0xff]   ;;  %v5246_v58 = vld [vmem:[%s5603_s9 + $0x48] sm:$0xff]   ;;  %v5248_v17 = vld [vmem:[%s5603_s9 + $0x40] sm:$0xff]  }
 0x40e   : > { %4096 = vmatpush3.bf16.msra.mxu1 %v5251_v27  ;;  %v5247_v45 = vld [vmem:[%s5603_s9 + $0x8] sm:$0xff]   ;;  %v5249_v52 = vld [vmem:[%s5603_s9] sm:$0xff]   ;;  %v5252_v28 = vld [vmem:[%s5609_s15 + $0x30] sm:$0xff]  }
 0x40f   : > { %4067 = vmatpush3.bf16.msra.mxu0 %v5237_v13  ;;  %v3565_v19 = vld [vmem:[#allocation5] sm:$0xff]  ;;  %4097 = vmatprep.subr.bf16.mxu1 %v5470_v37  ;;  %v5253_v25 = vld [vmem:[%s5609_s15 + $0x28] sm:$0xff]   ;;  %v5254_v38 = vld [vmem:[%s5609_s15 + $0x20] sm:$0xff]  }
 0x410   : > { %4068 = vmatprep.subr.bf16.mxu0 %v5238_v46  ;;  %v3567_v2 = vcombine.high %v3565_v19, %v3565_v19  ;;  %v3569_v35 = vpack.c.bf16 %v3565_v19, %v3565_v19  ;;  %v5255_v26 = vld [vmem:[%s5609_s15 + $0x18] sm:$0xff]   ;;  %v5256_v16 = vld [vmem:[%s5609_s15 + $0x10] sm:$0xff]   ;;  %v5257_v20 = vld [vmem:[%s5609_s15 + $0x8] sm:$0xff]  }
 0x411   : > { %v5258_v33 = vld [vmem:[%s5609_s15] sm:$0xff]   ;;  %v4025_v40 = vld [vmem:[%s8558_s20] ss:$0 sm:$0xff]  ;;  %v3752_v57 = vld [vmem:[#allocation6] sm:$0xf] }
 0x412   : > { %v3570_v44 = vpack.c.bf16 %v3567_v2, %v3567_v2  ;;  %4098 = vmatpush3.bf16.msra.mxu1 %v5252_v28 }
 0x413   : > { %4069 = vmatpush3.bf16.msra.mxu0 %v5239_v48  ;;  %4099 = vmatprep.subr.bf16.mxu1 %v5470_v37 }
 0x414   : > { %4070 = vmatprep.subr.bf16.mxu0 %v5240_v15  ;;  %3738 = vmatprep.mubr.bf16.mxu0 %v3570_v44 }
 0x416   : > { %4100 = vmatpush3.bf16.msra.mxu1 %v5253_v25 }
 0x417   : > { %4071 = vmatpush3.bf16.msra.mxu0 %v5241_v55  ;;  %4101 = vmatprep.subr.bf16.mxu1 %v5470_v37 }
 0x418   : > { %4072 = vmatprep.subr.bf16.mxu0 %v5242_v6 }
 0x41a   : > { %4102 = vmatpush3.bf16.msra.mxu1 %v5254_v38 }
 0x41b   : > { %4073 = vmatpush3.bf16.msra.mxu0 %v5243_v0  ;;  %4103 = vmatprep.subr.bf16.mxu1 %v5470_v37 }
 0x41c   : > { %4074 = vmatprep.subr.bf16.mxu0 %v5244_v3 }
 0x41e   : > { %4104 = vmatpush3.bf16.msra.mxu1 %v5255_v26 }
 0x41f   : > { %4075 = vmatpush3.bf16.msra.mxu0 %v5245_v18  ;;  %4105 = vmatprep.subr.bf16.mxu1 %v5470_v37 }
 0x420   : > { %4076 = vmatprep.subr.bf16.mxu0 %v5246_v58 }
 0x422   : > { %4106 = vmatpush3.bf16.msra.mxu1 %v5256_v16 }
 0x423   : > { %4077 = vmatpush3.bf16.msra.mxu0 %v5247_v45  ;;  %4107 = vmatprep.subr.bf16.mxu1 %v5470_v37 }
 0x424   : > { %4078 = vmatprep.subr.bf16.mxu0 %v5248_v17 }
 0x426   : > { %4108 = vmatpush3.bf16.msra.mxu1 %v5257_v20 }
 0x427   : > { %4079 = vmatpush3.bf16.msra.mxu0 %v5249_v52  ;;  %4109 = vmatprep.subr.bf16.mxu1 %v5470_v37 }
 0x42a   : > { %3739 = vmatmul.mubr.bf16.vlgmr.msra.gmra.mxu0 %v3569_v35  ;;  %4110 = vmatpush3.bf16.msra.mxu1 %v5258_v33 }
 0x4ea   : > { %v4080_v59 = vpop.f32.mrf.mxu0 }
 0x4ec   : > { %v4081_v5 = vpop.f32.mrf.mxu0 }
 0x4ed   : > { %v4082_v24 = vadd.f32 %v4081_v5, %v4080_v59 }
 0x4ee   : > { %v4083_v1 = vpop.f32.mrf.mxu0 }
 0x4ef   : > { %v3741_v54 = vadd.f32 %v4082_v24, %v4025_v40 }
 0x4f0   : > { %v4084_v7 = vpop.f32.mrf.mxu0 }
 0x4f1   : > { %v3747_v32 = vmin.f32 %v3741_v54, 0.0  ;;  %vm3746_vm5 = vcmp.gt.f32.partialorder %v3741_v54, 0.0 }
 0x4f3   : > { %v3748_v41 = vmul.f32 1.442695, %v3747_v32 }
 0x4f5   : > { %5259 = vpow2.f32 %v3748_v41 }
 0x502   : > { %v5260_v4 = vpop.eup %5259 }
 0x503   : > { %v4042_v22 = vadd.f32 -1.0, %v5260_v4 }
 0x505   : > { %v3751_v30 = vsel %vm3746_vm5, %v3741_v54, %v4042_v22 }
 0x506   : > { %v3753_v21 = vpack.c.bf16 %v3751_v30, %v3751_v30 }
 0x508   : > { %4112 = vmatmul.mubr.bf16.vlgmr.msra.gmra.mxu1 %v3753_v21 }
 0x5c8   : > { %v3852_v47 = vpop.f32.mrf.mxu1 }
 0x5c9   : > { %v3858_v29 = vadd.f32 %v3852_v47, %v3752_v57 }
 0x5ca   : > { %v4113_v12 = vpop.f32.mrf.mxu1  ;;  %3863 = sbr.rel (%p4051_p7) target bundleno = 1492 (0x5d4), region = 67 }
 0x5cb   : > { %3859 = vst [vmem:[#allocation6] sm:$0xf] %v3858_v29 }
 0x5cc   : > { %v3855_v43 = vpop.f32.mrf.mxu1 }
 0x5ce   : > { %v4114_v56 = vpop.f32.mrf.mxu1 }
 0x5d2   : > { %v3864_v50 = vld [vmem:[#allocation6] sm:$0xf] }
 0x5d3   : > { %3865 = vst [vmem:[#allocation14] sm:$0xf] %v3864_v50 }
 0x5d4 PF: > { %s8559_s15 = sadd.s32 4294967295, %s5451_s25   ;;  %s5472_s11 = smov [#allocation14]  }
 0x5d5   : > { %p7952_p13 = scmp.eq.s32.totalorder %s8559_s15, 3  ;;  %s3875_s28 = sshll.u32 %s5472_s11, 4  ;;  %s3876_s28 = int_to_ptr.vmem [resolvable:$true] %s3875_s28 }
 0x5d6   : > { %s5363_s12 = scalar_lea.vmem %s3876_s28, 64  ;;  %p5370_p11 = scmp.lt.s32.totalorder %s3876_s28, %s3876_s28 }
 0x5d7   : > { %p5364_p1 = scmp.ne.s32.totalorder %s3876_s28, %s5363_s12  ;;  %p5371_p3 = scmp.lt.s32.totalorder %s5363_s12, %s5363_s12 }
 0x5d9   : > { %p5365_p2 = pnand %p5364_p1, %p7952_p13  ;;  %p5372_p4 = por %p5371_p3, %p5370_p11 }
 0x5db   : > { %p5366_p9 = pneg %p5365_p2 }
 0x5dd   : > { %p5373_p5 = pnand %p5372_p4, %p5366_p9 }
 0x5df   : > { %5376 = shalt.err (!%p5373_p5)
}
 0x5e0   : > { %4124 = dma.vmem_to_hbm [thread:$0]  (%p7952_p13), %s3876_s28, 64, %s7990_s5, [#allocation11]  }
 0x5e1   : > { %5426 = dma.done.wait (%p7952_p13), [#allocation11], 64  }
 0x5e2   : > { %5428 = vsyncadd (%p7952_p13), [#allocation11], 4294967232 }
 0x5e3 PF: > { %s23_s25 = sadd.s32 1, %s5451_s25   ;;  %s8561_s8 = sld [smem:[#allocation21_spill]] }
 0x5e4   : > { %p20_p6 = scmp.ge.s32.totalorder %s23_s25, 6   ;;  %s8562_s20 = smov %s5435_s21 }
 0x5e5   : > { %s8563_s21 = smov %s5439_s22  ;;  %s8564_s22 = smov %s5557_s6 }
 0x5e6   : > { %s8565_s23 = smov %s5447_s24  ;;  %22 = sbr.rel (!%p20_p6) target bundleno = 11 (0xb), region = 134 }
 0x5e9   : > { %s8566_s24 = smov %s8561_s8 }
 0x5eb   :  { %3888 = vsyncpa [#allocation10], 1 }
 0x5ec   :  { %3890 = vsyncpa [#allocation10 + $0x1], 1 }
 0x5ed   :  { %3891 = vsyncpa [#allocation13], 1 }
 0x5ee   :  { %3893 = vsyncpa [#allocation13 + $0x1], 1 }
 0x5ef   :  { %3894 = vsyncpa [#allocation11], 1 }
 0x5f0   :  { %3896 = vsyncpa [#allocation11 + $0x1], 1 }
 0x5f1   :  { %3897 = vsyncmov [#allocation3] }
 0x5f4   :  { %s3898_s27 = vpop.sfrf %3897 }
 0x5f5   :  { %p4056_p8 = scmp.ne.s32.totalorder %s3898_s27, 0 }
 0x5f7   :  { %3902 = shalt.err (%p4056_p8)  }
 0x5f8   :  { %3904 = vsyncmov [#allocation3 + $0x1] }
 0x5fb   :  { %s3905_s0 = vpop.sfrf %3904 }
 0x5fc   :  { %p4057_p10 = scmp.ne.s32.totalorder %s3905_s0, 0 }
 0x5fe   :  { %3909 = shalt.err (%p4057_p10)  }

</bundles_post_ra>
